<compile_context>
chip_gen: v7x
topology: tpu7x:2x2x1
jax: 0.10.0
libtpu: 0.0.40
codegen_flags: <defaults>
</compile_context>

<pallas_src>
import functools
import math

import jax
import jax.numpy as jnp
import numpy as np
from jax.experimental import pallas as pl
from jax.experimental.pallas import tpu as pltpu


# ------------------------------ fused kernel ------------------------------- #

def _seq2seq_kernel(enc_x_ref, dec_x_ref,
                    w_enc_ref, b_enc_ref, w_dec_ref, b_dec_ref,
                    attn_ref, comb_ref, outw_ref,
                    out_ref, hseq_ref,
                    *, n_layers, T_enc, T_dec, B, H, I, ML):
    """Whole forward pass (encoder GRU stack + attention decoder) in one kernel.

    enc_x_ref : (T_enc*B, I)      time-major encoder input (row = t*B + b)
    dec_x_ref : (T_dec, B, I)     time-major decoder input
    w_enc_ref : (I+(2L-1)*H, 3H)  [wih_0; whh_0; wih_1; whh_1; ...] pre-transposed,
                                  gate columns ordered [r | z | n]
    b_enc_ref : (2*n_layers, 3H)  [bih_0; bhh_0; bih_1; bhh_1; ...]
    w_dec_ref, b_dec_ref          same layout for the decoder GRU stack
    attn_ref  : (I+H+1, ML)       rows [0:I]=W_input, [I:I+H]=W_hidden, [I+H]=bias
    comb_ref  : (I+H+1, I)        rows [0:I]=W_input, [I:I+H]=W_context, [I+H]=bias
    outw_ref  : (H+1, O)          rows [0:H]=W, [H]=bias
    out_ref   : (T_dec, B, O)
    hseq_ref  : (T_enc*B, H)      VMEM scratch: one layer's hidden sequence
    """
    L = T_enc

    def gru_cell(gi_t, h, whh, bhh):
        # PyTorch GRU cell: n = tanh(W_in x + b_in + r * (W_hn h + b_hn))
        gh = jnp.dot(h, whh, preferred_element_type=jnp.float32) + bhh
        r = jax.nn.sigmoid(gi_t[:, :H] + gh[:, :H])
        z = jax.nn.sigmoid(gi_t[:, H:2 * H] + gh[:, H:2 * H])
        n = jnp.tanh(gi_t[:, 2 * H:] + r * gh[:, 2 * H:])
        return (1.0 - z) * n + z * h

    # ----------------------------- encoder ------------------------------- #
    x = enc_x_ref[...]                                        # (T_enc*B, in)
    h_fin = []                                                # final h per layer
    enc_tops = None                                           # top-layer h per timestep
    row = 0
    for l in range(n_layers):
        in_l = I if l == 0 else H
        wih = w_enc_ref[row:row + in_l, :]                    # (in_l, 3H)
        whh = w_enc_ref[row + in_l:row + in_l + H, :]         # (H, 3H)
        row += in_l + H
        bih = b_enc_ref[2 * l:2 * l + 1, :]
        bhh = b_enc_ref[2 * l + 1:2 * l + 2, :]

        # Whole-sequence input->hidden gates: ONE (T*B,in)x(in,3H) matmul per layer.
        gi = jnp.dot(x, wih, preferred_element_type=jnp.float32) + bih
        h = jnp.zeros((B, H), jnp.float32)
        last = (l == n_layers - 1)
        tops = []
        for t in range(T_enc):                                # static unroll (T small)
            h = gru_cell(gi[t * B:(t + 1) * B, :], h, whh, bhh)
            if last:
                tops.append(h)                                # keep as values (no store)
            else:
                hseq_ref[t * B:(t + 1) * B, :] = h            # feeds next layer's matmul
        h_fin.append(h)
        if last:
            enc_tops = tops
        else:
            x = hseq_ref[...]                                 # (T_enc*B, H)

    # ----------------------------- decoder ------------------------------- #
    awi = attn_ref[0:I, :]                                    # (I, ML)
    awh = attn_ref[I:I + H, :]                                # (H, ML)
    ab = attn_ref[I + H:I + H + 1, :]                         # (1, ML)
    cwi = comb_ref[0:I, :]                                    # (I, I)
    cwc = comb_ref[I:I + H, :]                                # (H, I)
    cb = comb_ref[I + H:I + H + 1, :]                         # (1, I)
    ow = outw_ref[0:H, :]                                     # (H, O)
    ob = outw_ref[H:H + 1, :]                                 # (1, O)

    dec_w = []
    row = 0
    for l in range(n_layers):
        in_l = I if l == 0 else H
        dec_w.append((w_dec_ref[row:row + in_l, :],
                      w_dec_ref[row + in_l:row + in_l + H, :],
                      b_dec_ref[2 * l:2 * l + 1, :],
                      b_dec_ref[2 * l + 1:2 * l + 2, :]))
        row += in_l + H

    hs = list(h_fin)                                          # decoder h0 = encoder h_n
    renorm = ML > L                                           # static branch
    for ii in range(T_dec):                                   # static unroll (T_dec small)
        inp = dec_x_ref[ii]                                   # (B, I)
        h_top = hs[-1]

        # attention scores = softmax(cat(inp, h_top) @ W_attn^T + b)
        s = (jnp.dot(inp, awi, preferred_element_type=jnp.float32)
             + jnp.dot(h_top, awh, preferred_element_type=jnp.float32) + ab)
        s = s - jnp.max(s, axis=-1, keepdims=True)
        e = jnp.exp(s)
        p = e * pl.reciprocal(jnp.sum(e, axis=-1, keepdims=True), approx=True)
        if renorm:
            p = p[:, :L]
            p = p * pl.reciprocal(jnp.sum(p, axis=-1, keepdims=True) + 1e-5,
                                  approx=True)

        # context over the FLIPPED encoder outputs; flip folded into static reverse
        # indexing; kept on VPU/XLU (broadcast-multiply-add), not the MXU.
        ctx = p[:, L - 1:L] * enc_tops[0]
        for l in range(1, L):
            ctx = ctx + p[:, L - 1 - l:L - l] * enc_tops[l]   # (B, H)

        # attn_combine + ReLU
        comb = (jnp.dot(inp, cwi, preferred_element_type=jnp.float32)
                + jnp.dot(ctx, cwc, preferred_element_type=jnp.float32) + cb)
        layer_in = jnp.maximum(comb, 0.0)                     # (B, I)

        # one step through the decoder GRU stack
        for l in range(n_layers):
            wih, whh, bih, bhh = dec_w[l]
            gi = jnp.dot(layer_in, wih, preferred_element_type=jnp.float32) + bih
            h = gru_cell(gi, hs[l], whh, bhh)
            hs[l] = h
            layer_in = h

        out_ref[ii] = (jnp.dot(layer_in, ow, preferred_element_type=jnp.float32) + ob)


def _fused_forward(enc_x, dec_x, kp, *, n_layers, T_enc, T_dec, B, H, I, ML, O):
    kernel = functools.partial(_seq2seq_kernel, n_layers=n_layers, T_enc=T_enc,
                               T_dec=T_dec, B=B, H=H, I=I, ML=ML)
    return pl.pallas_call(
        kernel,
        out_shape=jax.ShapeDtypeStruct((T_dec, B, O), jnp.float32),
        scratch_shapes=[pltpu.VMEM((T_enc * B, H), jnp.float32)],
    )(enc_x, dec_x, kp["w_enc"], kp["b_enc"], kp["w_dec"], kp["b_dec"],
      kp["attn"], kp["comb"], kp["out"])


# ----------------------------- Model (glue) -------------------------------- #

@functools.partial(jax.jit, static_argnames=("target_len",))
def seq2seq_attn_r_forward(enc_input, dec_input, kparams, target_len=4):
    B, T_enc, I = enc_input.shape
    H = kparams["b_enc"].shape[1] // 3
    n_layers = kparams["b_enc"].shape[0] // 2
    ML = kparams["attn"].shape[1]
    O = kparams["out"].shape[1]
    assert T_enc <= ML, "encoder length must be <= max_length (same as torch module)"

    enc_x = jnp.transpose(enc_input, (1, 0, 2)).reshape(T_enc * B, I)   # time-major flat
    dec_x = jnp.transpose(dec_input[:, :target_len, :], (1, 0, 2))      # (T_dec, B, I)

    out_tm = _fused_forward(enc_x, dec_x, kparams, n_layers=n_layers, T_enc=T_enc,
                            T_dec=target_len, B=B, H=H, I=I, ML=ML, O=O)
    return jnp.transpose(out_tm, (1, 0, 2))                             # (B, T_dec, O)


# ---------------------- deterministic parameter init ----------------------- #

def init_params(key, input_size, hidden_size, output_size, n_layers, max_length):
    keys = iter(jax.random.split(key, 64))

    def uni(shape, fan):
        bound = 1.0 / math.sqrt(fan)
        return jax.random.uniform(next(keys), shape, jnp.float32, -bound, bound)

    def gru_layers(first_in):
        layers = []
        for l in range(n_layers):
            in_sz = first_in if l == 0 else hidden_size
            wih = uni((3 * hidden_size, in_sz), hidden_size)
            whh = uni((3 * hidden_size, hidden_size), hidden_size)
            bih = uni((3 * hidden_size,), hidden_size)
            bhh = uni((3 * hidden_size,), hidden_size)
            layers.append((wih, whh, bih, bhh))
        return layers

    return {
        "enc_gru": gru_layers(input_size),
        "dec_gru": gru_layers(input_size),
        "attn_w": uni((max_length, hidden_size + input_size), hidden_size + input_size),
        "attn_b": uni((max_length,), hidden_size + input_size),
        "comb_w": uni((input_size, hidden_size + input_size), hidden_size + input_size),
        "comb_b": uni((input_size,), hidden_size + input_size),
        "out_w": uni((output_size, hidden_size), hidden_size),
        "out_b": uni((output_size,), hidden_size),
    }


def prepare_params(params, input_size, hidden_size):
    """One-time layout change: pre-transpose, gate-concatenate, pack into few slabs."""
    I = input_size

    def pack_gru(layers):
        w_rows, b_rows = [], []
        for (wih, whh, bih, bhh) in layers:
            w_rows.append(wih.T)                   # (in, 3H), gate cols [r|z|n]
            w_rows.append(whh.T)                   # (H, 3H)
            b_rows.append(bih.reshape(1, -1))
            b_rows.append(bhh.reshape(1, -1))
        return jnp.concatenate(w_rows, axis=0), jnp.concatenate(b_rows, axis=0)

    w_enc, b_enc = pack_gru(params["enc_gru"])
    w_dec, b_dec = pack_gru(params["dec_gru"])
    attn = jnp.concatenate([params["attn_w"][:, :I].T,          # (I, ML)
                            params["attn_w"][:, I:].T,          # (H, ML)
                            params["attn_b"].reshape(1, -1)], axis=0)
    comb = jnp.concatenate([params["comb_w"][:, :I].T,          # (I, I)
                            params["comb_w"][:, I:].T,          # (H, I)
                            params["comb_b"].reshape(1, -1)], axis=0)
    outw = jnp.concatenate([params["out_w"].T,                  # (H, O)
                            params["out_b"].reshape(1, -1)], axis=0)
    return {"w_enc": w_enc, "b_enc": b_enc, "w_dec": w_dec, "b_dec": b_dec,
            "attn": attn, "comb": comb, "out": outw}


# ----------------------------- pure-JAX reference --------------------------- #

def _ref_gru_cell(x, h, wih, whh, bih, bhh):
    H = h.shape[1]
    gi = jnp.dot(x, wih.T, precision="highest") + bih
    gh = jnp.dot(h, whh.T, precision="highest") + bhh
    r = jax.nn.sigmoid(gi[:, :H] + gh[:, :H])
    z = jax.nn.sigmoid(gi[:, H:2 * H] + gh[:, H:2 * H])
    n = jnp.tanh(gi[:, 2 * H:] + r * gh[:, 2 * H:])
    return (1.0 - z) * n + z * h


def reference_forward(enc_input, dec_input, params, target_len=4):
    B = enc_input.shape[0]
    n_layers = len(params["enc_gru"])
    H = params["enc_gru"][0][1].shape[1]
    h = [jnp.zeros((B, H), jnp.float32) for _ in range(n_layers)]
    enc_outs = []
    for t in range(enc_input.shape[1]):
        inp = enc_input[:, t, :]
        for l, (wih, whh, bih, bhh) in enumerate(params["enc_gru"]):
            h[l] = _ref_gru_cell(inp, h[l], wih, whh, bih, bhh)
            inp = h[l]
        enc_outs.append(inp)
    enc_outputs = jnp.stack(enc_outs, axis=1)

    dec_outs = []
    for ii in range(target_len):
        inp = dec_input[:, ii, :]
        cat = jnp.concatenate([inp, h[-1]], axis=-1)
        s = jax.nn.softmax(jnp.dot(cat, params["attn_w"].T, precision="highest")
                           + params["attn_b"], axis=-1)
        L = enc_outputs.shape[1]
        if s.shape[1] > L:
            s = s[:, :L]
            s = s / (jnp.sum(s, axis=-1, keepdims=True) + 1e-5)
        enc_rev = jnp.flip(enc_outputs, axis=1)
        ctx = jnp.einsum("bl,blh->bh", s, enc_rev, precision="highest")
        comb = jax.nn.relu(jnp.dot(jnp.concatenate([inp, ctx], axis=-1),
                                   params["comb_w"].T, precision="highest")
                           + params["comb_b"])
        layer_in = comb
        for l, (wih, whh, bih, bhh) in enumerate(params["dec_gru"]):
            h[l] = _ref_gru_cell(layer_in, h[l], wih, whh, bih, bhh)
            layer_in = h[l]
        out = jnp.dot(layer_in, params["out_w"].T, precision="highest") + params["out_b"]
        dec_outs.append(out)
    return jnp.stack(dec_outs, axis=1)


# ----------------------------------- main ----------------------------------- #

if __name__ == "__main__":
    B = 2
    input_size = 8
    hidden_size = 32
    output_size = 8
    n_layers = 2
    max_length = 16
    T_enc = 12          # < max_length -> exercises the truncate+renormalize path
    target_len = 4

    key = jax.random.PRNGKey(0)
    k_p, k_e, k_d = jax.random.split(key, 3)
    params = init_params(k_p, input_size, hidden_size, output_size, n_layers, max_length)
    kparams = prepare_params(params, input_size, hidden_size)

    enc_input = jax.random.normal(k_e, (B, T_enc, input_size), jnp.float32)
    dec_input = jax.random.normal(k_d, (B, target_len, input_size), jnp.float32)

    out = seq2seq_attn_r_forward(enc_input, dec_input, kparams, target_len=target_len)
    out = jax.block_until_ready(out)

    ref = jax.block_until_ready(
        reference_forward(enc_input, dec_input, params, target_len=target_len))

    assert out.shape == (B, target_len, output_size)
    np.testing.assert_allclose(np.asarray(out), np.asarray(ref), rtol=2e-3, atol=2e-3)
    print("KERNEL_OK")
</pallas_src>

<mosaic_0001>
module attributes {stable_mosaic.version = 11 : i64} {
  func.func @_seq2seq_kernel(%arg0: memref<24x8xf32, #tpu.memory_space<vmem>>, %arg1: memref<4x2x8xf32, #tpu.memory_space<vmem>>, %arg2: memref<104x96xf32, #tpu.memory_space<vmem>>, %arg3: memref<4x96xf32, #tpu.memory_space<vmem>>, %arg4: memref<104x96xf32, #tpu.memory_space<vmem>>, %arg5: memref<4x96xf32, #tpu.memory_space<vmem>>, %arg6: memref<41x16xf32, #tpu.memory_space<vmem>>, %arg7: memref<41x8xf32, #tpu.memory_space<vmem>>, %arg8: memref<33x8xf32, #tpu.memory_space<vmem>>, %arg9: memref<4x2x8xf32, #tpu.memory_space<vmem>>, %arg10: memref<24x32xf32, #tpu.memory_space<vmem>>) attributes {dimension_semantics = [], scalar_prefetch = 0 : i64, scratch_operands = 1 : i64, tpu.core_type = #tpu.core_type<tc>} {
    %c0 = arith.constant 0 : index
    %c0_0 = arith.constant 0 : index
    %0 = vector.load %arg0[%c0, %c0_0] : memref<24x8xf32, #tpu.memory_space<vmem>>, vector<24x8xf32>
    %c0_1 = arith.constant 0 : index
    %c0_2 = arith.constant 0 : index
    %1 = vector.load %arg2[%c0_1, %c0_2] : memref<104x96xf32, #tpu.memory_space<vmem>>, vector<8x96xf32>
    %c8 = arith.constant 8 : index
    %c0_3 = arith.constant 0 : index
    %2 = vector.load %arg2[%c8, %c0_3] : memref<104x96xf32, #tpu.memory_space<vmem>>, vector<32x96xf32>
    %c0_4 = arith.constant 0 : index
    %c0_5 = arith.constant 0 : index
    %3 = vector.load %arg3[%c0_4, %c0_5] : memref<4x96xf32, #tpu.memory_space<vmem>>, vector<1x96xf32>
    %c1 = arith.constant 1 : index
    %c0_6 = arith.constant 0 : index
    %4 = vector.load %arg3[%c1, %c0_6] : memref<4x96xf32, #tpu.memory_space<vmem>>, vector<1x96xf32>
    %cst = arith.constant dense<0.000000e+00> : vector<24x96xf32>
    %5 = tpu.matmul %0, %1, %cst {dimension_numbers = #tpu.dot_dimension_numbers<[1], [0], [0], [1], [0, 0, 1, 1], [], []>} : vector<24x8xf32>, vector<8x96xf32>, vector<24x96xf32> -> vector<24x96xf32>
    %6 = vector.broadcast %3 : vector<1x96xf32> to vector<24x96xf32>
    %7 = arith.addf %5, %6 : vector<24x96xf32>
    %cst_7 = arith.constant 0.000000e+00 : f32
    %8 = vector.broadcast %cst_7 : f32 to vector<2x32xf32>
    %9 = vector.extract_strided_slice %7 {offsets = [0, 0], sizes = [2, 96], strides = [1, 1]} : vector<24x96xf32> to vector<2x96xf32>
    %cst_8 = arith.constant dense<0.000000e+00> : vector<2x96xf32>
    %10 = tpu.matmul %8, %2, %cst_8 {dimension_numbers = #tpu.dot_dimension_numbers<[1], [0], [0], [1], [0, 0, 1, 1], [], []>} : vector<2x32xf32>, vector<32x96xf32>, vector<2x96xf32> -> vector<2x96xf32>
    %11 = vector.broadcast %4 : vector<1x96xf32> to vector<2x96xf32>
    %12 = arith.addf %10, %11 : vector<2x96xf32>
    %13 = vector.extract_strided_slice %9 {offsets = [0, 0], sizes = [2, 32], strides = [1, 1]} : vector<2x96xf32> to vector<2x32xf32>
    %14 = vector.extract_strided_slice %12 {offsets = [0, 0], sizes = [2, 32], strides = [1, 1]} : vector<2x96xf32> to vector<2x32xf32>
    %15 = arith.addf %13, %14 : vector<2x32xf32>
    %16 = arith.negf %15 : vector<2x32xf32>
    %17 = math.exp %16 : vector<2x32xf32>
    %cst_9 = arith.constant 1.000000e+00 : f32
    %18 = vector.broadcast %cst_9 : f32 to vector<2x32xf32>
    %19 = arith.addf %18, %17 : vector<2x32xf32>
    %20 = arith.divf %18, %19 : vector<2x32xf32>
    %21 = vector.extract_strided_slice %9 {offsets = [0, 32], sizes = [2, 32], strides = [1, 1]} : vector<2x96xf32> to vector<2x32xf32>
    %22 = vector.extract_strided_slice %12 {offsets = [0, 32], sizes = [2, 32], strides = [1, 1]} : vector<2x96xf32> to vector<2x32xf32>
    %23 = arith.addf %21, %22 : vector<2x32xf32>
    %24 = arith.negf %23 : vector<2x32xf32>
    %25 = math.exp %24 : vector<2x32xf32>
    %cst_10 = arith.constant 1.000000e+00 : f32
    %26 = vector.broadcast %cst_10 : f32 to vector<2x32xf32>
    %27 = arith.addf %26, %25 : vector<2x32xf32>
    %28 = arith.divf %26, %27 : vector<2x32xf32>
    %29 = vector.extract_strided_slice %9 {offsets = [0, 64], sizes = [2, 32], strides = [1, 1]} : vector<2x96xf32> to vector<2x32xf32>
    %30 = vector.extract_strided_slice %12 {offsets = [0, 64], sizes = [2, 32], strides = [1, 1]} : vector<2x96xf32> to vector<2x32xf32>
    %31 = arith.mulf %20, %30 : vector<2x32xf32>
    %32 = arith.addf %29, %31 : vector<2x32xf32>
    %33 = math.tanh %32 : vector<2x32xf32>
    %cst_11 = arith.constant 1.000000e+00 : f32
    %34 = vector.broadcast %cst_11 : f32 to vector<2x32xf32>
    %35 = arith.subf %34, %28 : vector<2x32xf32>
    %36 = arith.mulf %35, %33 : vector<2x32xf32>
    %37 = arith.mulf %28, %8 : vector<2x32xf32>
    %38 = arith.addf %36, %37 : vector<2x32xf32>
    %c0_12 = arith.constant 0 : index
    %c0_13 = arith.constant 0 : index
    %39 = vector.load %arg10[%c0_12, %c0_13] : memref<24x32xf32, #tpu.memory_space<vmem>>, vector<2x32xf32>
    tpu.vector_store %arg10[%c0_12, %c0_13], %38 {strides = array<i32>} : memref<24x32xf32, #tpu.memory_space<vmem>>, vector<2x32xf32>,
    %40 = vector.extract_strided_slice %7 {offsets = [2, 0], sizes = [2, 96], strides = [1, 1]} : vector<24x96xf32> to vector<2x96xf32>
    %cst_14 = arith.constant dense<0.000000e+00> : vector<2x96xf32>
    %41 = tpu.matmul %38, %2, %cst_14 {dimension_numbers = #tpu.dot_dimension_numbers<[1], [0], [0], [1], [0, 0, 1, 1], [], []>} : vector<2x32xf32>, vector<32x96xf32>, vector<2x96xf32> -> vector<2x96xf32>
    %42 = vector.broadcast %4 : vector<1x96xf32> to vector<2x96xf32>
    %43 = arith.addf %41, %42 : vector<2x96xf32>
    %44 = vector.extract_strided_slice %40 {offsets = [0, 0], sizes = [2, 32], strides = [1, 1]} : vector<2x96xf32> to vector<2x32xf32>
    %45 = vector.extract_strided_slice %43 {offsets = [0, 0], sizes = [2, 32], strides = [1, 1]} : vector<2x96xf32> to vector<2x32xf32>
    %46 = arith.addf %44, %45 : vector<2x32xf32>
    %47 = arith.negf %46 : vector<2x32xf32>
    %48 = math.exp %47 : vector<2x32xf32>
    %cst_15 = arith.constant 1.000000e+00 : f32
    %49 = vector.broadcast %cst_15 : f32 to vector<2x32xf32>
    %50 = arith.addf %49, %48 : vector<2x32xf32>
    %51 = arith.divf %49, %50 : vector<2x32xf32>
    %52 = vector.extract_strided_slice %40 {offsets = [0, 32], sizes = [2, 32], strides = [1, 1]} : vector<2x96xf32> to vector<2x32xf32>
    %53 = vector.extract_strided_slice %43 {offsets = [0, 32], sizes = [2, 32], strides = [1, 1]} : vector<2x96xf32> to vector<2x32xf32>
    %54 = arith.addf %52, %53 : vector<2x32xf32>
    %55 = arith.negf %54 : vector<2x32xf32>
    %56 = math.exp %55 : vector<2x32xf32>
    %cst_16 = arith.constant 1.000000e+00 : f32
    %57 = vector.broadcast %cst_16 : f32 to vector<2x32xf32>
    %58 = arith.addf %57, %56 : vector<2x32xf32>
    %59 = arith.divf %57, %58 : vector<2x32xf32>
    %60 = vector.extract_strided_slice %40 {offsets = [0, 64], sizes = [2, 32], strides = [1, 1]} : vector<2x96xf32> to vector<2x32xf32>
    %61 = vector.extract_strided_slice %43 {offsets = [0, 64], sizes = [2, 32], strides = [1, 1]} : vector<2x96xf32> to vector<2x32xf32>
    %62 = arith.mulf %51, %61 : vector<2x32xf32>
    %63 = arith.addf %60, %62 : vector<2x32xf32>
    %64 = math.tanh %63 : vector<2x32xf32>
    %cst_17 = arith.constant 1.000000e+00 : f32
    %65 = vector.broadcast %cst_17 : f32 to vector<2x32xf32>
    %66 = arith.subf %65, %59 : vector<2x32xf32>
    %67 = arith.mulf %66, %64 : vector<2x32xf32>
    %68 = arith.mulf %59, %38 : vector<2x32xf32>
    %69 = arith.addf %67, %68 : vector<2x32xf32>
    %c2 = arith.constant 2 : index
    %c0_18 = arith.constant 0 : index
    %70 = vector.load %arg10[%c2, %c0_18] : memref<24x32xf32, #tpu.memory_space<vmem>>, vector<2x32xf32>
    tpu.vector_store %arg10[%c2, %c0_18], %69 {strides = array<i32>} : memref<24x32xf32, #tpu.memory_space<vmem>>, vector<2x32xf32>,
    %71 = vector.extract_strided_slice %7 {offsets = [4, 0], sizes = [2, 96], strides = [1, 1]} : vector<24x96xf32> to vector<2x96xf32>
    %cst_19 = arith.constant dense<0.000000e+00> : vector<2x96xf32>
    %72 = tpu.matmul %69, %2, %cst_19 {dimension_numbers = #tpu.dot_dimension_numbers<[1], [0], [0], [1], [0, 0, 1, 1], [], []>} : vector<2x32xf32>, vector<32x96xf32>, vector<2x96xf32> -> vector<2x96xf32>
    %73 = vector.broadcast %4 : vector<1x96xf32> to vector<2x96xf32>
    %74 = arith.addf %72, %73 : vector<2x96xf32>
    %75 = vector.extract_strided_slice %71 {offsets = [0, 0], sizes = [2, 32], strides = [1, 1]} : vector<2x96xf32> to vector<2x32xf32>
    %76 = vector.extract_strided_slice %74 {offsets = [0, 0], sizes = [2, 32], strides = [1, 1]} : vector<2x96xf32> to vector<2x32xf32>
    %77 = arith.addf %75, %76 : vector<2x32xf32>
    %78 = arith.negf %77 : vector<2x32xf32>
    %79 = math.exp %78 : vector<2x32xf32>
    %cst_20 = arith.constant 1.000000e+00 : f32
    %80 = vector.broadcast %cst_20 : f32 to vector<2x32xf32>
    %81 = arith.addf %80, %79 : vector<2x32xf32>
    %82 = arith.divf %80, %81 : vector<2x32xf32>
    %83 = vector.extract_strided_slice %71 {offsets = [0, 32], sizes = [2, 32], strides = [1, 1]} : vector<2x96xf32> to vector<2x32xf32>
    %84 = vector.extract_strided_slice %74 {offsets = [0, 32], sizes = [2, 32], strides = [1, 1]} : vector<2x96xf32> to vector<2x32xf32>
    %85 = arith.addf %83, %84 : vector<2x32xf32>
    %86 = arith.negf %85 : vector<2x32xf32>
    %87 = math.exp %86 : vector<2x32xf32>
    %cst_21 = arith.constant 1.000000e+00 : f32
    %88 = vector.broadcast %cst_21 : f32 to vector<2x32xf32>
    %89 = arith.addf %88, %87 : vector<2x32xf32>
    %90 = arith.divf %88, %89 : vector<2x32xf32>
    %91 = vector.extract_strided_slice %71 {offsets = [0, 64], sizes = [2, 32], strides = [1, 1]} : vector<2x96xf32> to vector<2x32xf32>
    %92 = vector.extract_strided_slice %74 {offsets = [0, 64], sizes = [2, 32], strides = [1, 1]} : vector<2x96xf32> to vector<2x32xf32>
    %93 = arith.mulf %82, %92 : vector<2x32xf32>
    %94 = arith.addf %91, %93 : vector<2x32xf32>
    %95 = math.tanh %94 : vector<2x32xf32>
    %cst_22 = arith.constant 1.000000e+00 : f32
    %96 = vector.broadcast %cst_22 : f32 to vector<2x32xf32>
    %97 = arith.subf %96, %90 : vector<2x32xf32>
    %98 = arith.mulf %97, %95 : vector<2x32xf32>
    %99 = arith.mulf %90, %69 : vector<2x32xf32>
    %100 = arith.addf %98, %99 : vector<2x32xf32>
    %c4 = arith.constant 4 : index
    %c0_23 = arith.constant 0 : index
    %101 = vector.load %arg10[%c4, %c0_23] : memref<24x32xf32, #tpu.memory_space<vmem>>, vector<2x32xf32>
    tpu.vector_store %arg10[%c4, %c0_23], %100 {strides = array<i32>} : memref<24x32xf32, #tpu.memory_space<vmem>>, vector<2x32xf32>,
    %102 = vector.extract_strided_slice %7 {offsets = [6, 0], sizes = [2, 96], strides = [1, 1]} : vector<24x96xf32> to vector<2x96xf32>
    %cst_24 = arith.constant dense<0.000000e+00> : vector<2x96xf32>
    %103 = tpu.matmul %100, %2, %cst_24 {dimension_numbers = #tpu.dot_dimension_numbers<[1], [0], [0], [1], [0, 0, 1, 1], [], []>} : vector<2x32xf32>, vector<32x96xf32>, vector<2x96xf32> -> vector<2x96xf32>
    %104 = vector.broadcast %4 : vector<1x96xf32> to vector<2x96xf32>
    %105 = arith.addf %103, %104 : vector<2x96xf32>
    %106 = vector.extract_strided_slice %102 {offsets = [0, 0], sizes = [2, 32], strides = [1, 1]} : vector<2x96xf32> to vector<2x32xf32>
    %107 = vector.extract_strided_slice %105 {offsets = [0, 0], sizes = [2, 32], strides = [1, 1]} : vector<2x96xf32> to vector<2x32xf32>
    %108 = arith.addf %106, %107 : vector<2x32xf32>
    %109 = arith.negf %108 : vector<2x32xf32>
    %110 = math.exp %109 : vector<2x32xf32>
    %cst_25 = arith.constant 1.000000e+00 : f32
    %111 = vector.broadcast %cst_25 : f32 to vector<2x32xf32>
    %112 = arith.addf %111, %110 : vector<2x32xf32>
    %113 = arith.divf %111, %112 : vector<2x32xf32>
    %114 = vector.extract_strided_slice %102 {offsets = [0, 32], sizes = [2, 32], strides = [1, 1]} : vector<2x96xf32> to vector<2x32xf32>
    %115 = vector.extract_strided_slice %105 {offsets = [0, 32], sizes = [2, 32], strides = [1, 1]} : vector<2x96xf32> to vector<2x32xf32>
    %116 = arith.addf %114, %115 : vector<2x32xf32>
    %117 = arith.negf %116 : vector<2x32xf32>
    %118 = math.exp %117 : vector<2x32xf32>
    %cst_26 = arith.constant 1.000000e+00 : f32
    %119 = vector.broadcast %cst_26 : f32 to vector<2x32xf32>
    %120 = arith.addf %119, %118 : vector<2x32xf32>
    %121 = arith.divf %119, %120 : vector<2x32xf32>
    %122 = vector.extract_strided_slice %102 {offsets = [0, 64], sizes = [2, 32], strides = [1, 1]} : vector<2x96xf32> to vector<2x32xf32>
    %123 = vector.extract_strided_slice %105 {offsets = [0, 64], sizes = [2, 32], strides = [1, 1]} : vector<2x96xf32> to vector<2x32xf32>
    %124 = arith.mulf %113, %123 : vector<2x32xf32>
    %125 = arith.addf %122, %124 : vector<2x32xf32>
    %126 = math.tanh %125 : vector<2x32xf32>
    %cst_27 = arith.constant 1.000000e+00 : f32
    %127 = vector.broadcast %cst_27 : f32 to vector<2x32xf32>
    %128 = arith.subf %127, %121 : vector<2x32xf32>
    %129 = arith.mulf %128, %126 : vector<2x32xf32>
    %130 = arith.mulf %121, %100 : vector<2x32xf32>
    %131 = arith.addf %129, %130 : vector<2x32xf32>
    %c6 = arith.constant 6 : index
    %c0_28 = arith.constant 0 : index
    %132 = vector.load %arg10[%c6, %c0_28] : memref<24x32xf32, #tpu.memory_space<vmem>>, vector<2x32xf32>
    tpu.vector_store %arg10[%c6, %c0_28], %131 {strides = array<i32>} : memref<24x32xf32, #tpu.memory_space<vmem>>, vector<2x32xf32>,
    %133 = vector.extract_strided_slice %7 {offsets = [8, 0], sizes = [2, 96], strides = [1, 1]} : vector<24x96xf32> to vector<2x96xf32>
    %cst_29 = arith.constant dense<0.000000e+00> : vector<2x96xf32>
    %134 = tpu.matmul %131, %2, %cst_29 {dimension_numbers = #tpu.dot_dimension_numbers<[1], [0], [0], [1], [0, 0, 1, 1], [], []>} : vector<2x32xf32>, vector<32x96xf32>, vector<2x96xf32> -> vector<2x96xf32>
    %135 = vector.broadcast %4 : vector<1x96xf32> to vector<2x96xf32>
    %136 = arith.addf %134, %135 : vector<2x96xf32>
    %137 = vector.extract_strided_slice %133 {offsets = [0, 0], sizes = [2, 32], strides = [1, 1]} : vector<2x96xf32> to vector<2x32xf32>
    %138 = vector.extract_strided_slice %136 {offsets = [0, 0], sizes = [2, 32], strides = [1, 1]} : vector<2x96xf32> to vector<2x32xf32>
    %139 = arith.addf %137, %138 : vector<2x32xf32>
    %140 = arith.negf %139 : vector<2x32xf32>
    %141 = math.exp %140 : vector<2x32xf32>
    %cst_30 = arith.constant 1.000000e+00 : f32
    %142 = vector.broadcast %cst_30 : f32 to vector<2x32xf32>
    %143 = arith.addf %142, %141 : vector<2x32xf32>
    %144 = arith.divf %142, %143 : vector<2x32xf32>
    %145 = vector.extract_strided_slice %133 {offsets = [0, 32], sizes = [2, 32], strides = [1, 1]} : vector<2x96xf32> to vector<2x32xf32>
    %146 = vector.extract_strided_slice %136 {offsets = [0, 32], sizes = [2, 32], strides = [1, 1]} : vector<2x96xf32> to vector<2x32xf32>
    %147 = arith.addf %145, %146 : vector<2x32xf32>
    %148 = arith.negf %147 : vector<2x32xf32>
    %149 = math.exp %148 : vector<2x32xf32>
    %cst_31 = arith.constant 1.000000e+00 : f32
    %150 = vector.broadcast %cst_31 : f32 to vector<2x32xf32>
    %151 = arith.addf %150, %149 : vector<2x32xf32>
    %152 = arith.divf %150, %151 : vector<2x32xf32>
    %153 = vector.extract_strided_slice %133 {offsets = [0, 64], sizes = [2, 32], strides = [1, 1]} : vector<2x96xf32> to vector<2x32xf32>
    %154 = vector.extract_strided_slice %136 {offsets = [0, 64], sizes = [2, 32], strides = [1, 1]} : vector<2x96xf32> to vector<2x32xf32>
    %155 = arith.mulf %144, %154 : vector<2x32xf32>
    %156 = arith.addf %153, %155 : vector<2x32xf32>
    %157 = math.tanh %156 : vector<2x32xf32>
    %cst_32 = arith.constant 1.000000e+00 : f32
    %158 = vector.broadcast %cst_32 : f32 to vector<2x32xf32>
    %159 = arith.subf %158, %152 : vector<2x32xf32>
    %160 = arith.mulf %159, %157 : vector<2x32xf32>
    %161 = arith.mulf %152, %131 : vector<2x32xf32>
    %162 = arith.addf %160, %161 : vector<2x32xf32>
    %c8_33 = arith.constant 8 : index
    %c0_34 = arith.constant 0 : index
    %163 = vector.load %arg10[%c8_33, %c0_34] : memref<24x32xf32, #tpu.memory_space<vmem>>, vector<2x32xf32>
    tpu.vector_store %arg10[%c8_33, %c0_34], %162 {strides = array<i32>} : memref<24x32xf32, #tpu.memory_space<vmem>>, vector<2x32xf32>,
    %164 = vector.extract_strided_slice %7 {offsets = [10, 0], sizes = [2, 96], strides = [1, 1]} : vector<24x96xf32> to vector<2x96xf32>
    %cst_35 = arith.constant dense<0.000000e+00> : vector<2x96xf32>
    %165 = tpu.matmul %162, %2, %cst_35 {dimension_numbers = #tpu.dot_dimension_numbers<[1], [0], [0], [1], [0, 0, 1, 1], [], []>} : vector<2x32xf32>, vector<32x96xf32>, vector<2x96xf32> -> vector<2x96xf32>
    %166 = vector.broadcast %4 : vector<1x96xf32> to vector<2x96xf32>
    %167 = arith.addf %165, %166 : vector<2x96xf32>
    %168 = vector.extract_strided_slice %164 {offsets = [0, 0], sizes = [2, 32], strides = [1, 1]} : vector<2x96xf32> to vector<2x32xf32>
    %169 = vector.extract_strided_slice %167 {offsets = [0, 0], sizes = [2, 32], strides = [1, 1]} : vector<2x96xf32> to vector<2x32xf32>
    %170 = arith.addf %168, %169 : vector<2x32xf32>
    %171 = arith.negf %170 : vector<2x32xf32>
    %172 = math.exp %171 : vector<2x32xf32>
    %cst_36 = arith.constant 1.000000e+00 : f32
    %173 = vector.broadcast %cst_36 : f32 to vector<2x32xf32>
    %174 = arith.addf %173, %172 : vector<2x32xf32>
    %175 = arith.divf %173, %174 : vector<2x32xf32>
    %176 = vector.extract_strided_slice %164 {offsets = [0, 32], sizes = [2, 32], strides = [1, 1]} : vector<2x96xf32> to vector<2x32xf32>
    %177 = vector.extract_strided_slice %167 {offsets = [0, 32], sizes = [2, 32], strides = [1, 1]} : vector<2x96xf32> to vector<2x32xf32>
    %178 = arith.addf %176, %177 : vector<2x32xf32>
    %179 = arith.negf %178 : vector<2x32xf32>
    %180 = math.exp %179 : vector<2x32xf32>
    %cst_37 = arith.constant 1.000000e+00 : f32
    %181 = vector.broadcast %cst_37 : f32 to vector<2x32xf32>
    %182 = arith.addf %181, %180 : vector<2x32xf32>
    %183 = arith.divf %181, %182 : vector<2x32xf32>
    %184 = vector.extract_strided_slice %164 {offsets = [0, 64], sizes = [2, 32], strides = [1, 1]} : vector<2x96xf32> to vector<2x32xf32>
    %185 = vector.extract_strided_slice %167 {offsets = [0, 64], sizes = [2, 32], strides = [1, 1]} : vector<2x96xf32> to vector<2x32xf32>
    %186 = arith.mulf %175, %185 : vector<2x32xf32>
    %187 = arith.addf %184, %186 : vector<2x32xf32>
    %188 = math.tanh %187 : vector<2x32xf32>
    %cst_38 = arith.constant 1.000000e+00 : f32
    %189 = vector.broadcast %cst_38 : f32 to vector<2x32xf32>
    %190 = arith.subf %189, %183 : vector<2x32xf32>
    %191 = arith.mulf %190, %188 : vector<2x32xf32>
    %192 = arith.mulf %183, %162 : vector<2x32xf32>
    %193 = arith.addf %191, %192 : vector<2x32xf32>
    %c10 = arith.constant 10 : index
    %c0_39 = arith.constant 0 : index
    %194 = vector.load %arg10[%c10, %c0_39] : memref<24x32xf32, #tpu.memory_space<vmem>>, vector<2x32xf32>
    tpu.vector_store %arg10[%c10, %c0_39], %193 {strides = array<i32>} : memref<24x32xf32, #tpu.memory_space<vmem>>, vector<2x32xf32>,
    %195 = vector.extract_strided_slice %7 {offsets = [12, 0], sizes = [2, 96], strides = [1, 1]} : vector<24x96xf32> to vector<2x96xf32>
    %cst_40 = arith.constant dense<0.000000e+00> : vector<2x96xf32>
    %196 = tpu.matmul %193, %2, %cst_40 {dimension_numbers = #tpu.dot_dimension_numbers<[1], [0], [0], [1], [0, 0, 1, 1], [], []>} : vector<2x32xf32>, vector<32x96xf32>, vector<2x96xf32> -> vector<2x96xf32>
    %197 = vector.broadcast %4 : vector<1x96xf32> to vector<2x96xf32>
    %198 = arith.addf %196, %197 : vector<2x96xf32>
    %199 = vector.extract_strided_slice %195 {offsets = [0, 0], sizes = [2, 32], strides = [1, 1]} : vector<2x96xf32> to vector<2x32xf32>
    %200 = vector.extract_strided_slice %198 {offsets = [0, 0], sizes = [2, 32], strides = [1, 1]} : vector<2x96xf32> to vector<2x32xf32>
    %201 = arith.addf %199, %200 : vector<2x32xf32>
    %202 = arith.negf %201 : vector<2x32xf32>
    %203 = math.exp %202 : vector<2x32xf32>
    %cst_41 = arith.constant 1.000000e+00 : f32
    %204 = vector.broadcast %cst_41 : f32 to vector<2x32xf32>
    %205 = arith.addf %204, %203 : vector<2x32xf32>
    %206 = arith.divf %204, %205 : vector<2x32xf32>
    %207 = vector.extract_strided_slice %195 {offsets = [0, 32], sizes = [2, 32], strides = [1, 1]} : vector<2x96xf32> to vector<2x32xf32>
    %208 = vector.extract_strided_slice %198 {offsets = [0, 32], sizes = [2, 32], strides = [1, 1]} : vector<2x96xf32> to vector<2x32xf32>
    %209 = arith.addf %207, %208 : vector<2x32xf32>
    %210 = arith.negf %209 : vector<2x32xf32>
    %211 = math.exp %210 : vector<2x32xf32>
    %cst_42 = arith.constant 1.000000e+00 : f32
    %212 = vector.broadcast %cst_42 : f32 to vector<2x32xf32>
    %213 = arith.addf %212, %211 : vector<2x32xf32>
    %214 = arith.divf %212, %213 : vector<2x32xf32>
    %215 = vector.extract_strided_slice %195 {offsets = [0, 64], sizes = [2, 32], strides = [1, 1]} : vector<2x96xf32> to vector<2x32xf32>
    %216 = vector.extract_strided_slice %198 {offsets = [0, 64], sizes = [2, 32], strides = [1, 1]} : vector<2x96xf32> to vector<2x32xf32>
    %217 = arith.mulf %206, %216 : vector<2x32xf32>
    %218 = arith.addf %215, %217 : vector<2x32xf32>
    %219 = math.tanh %218 : vector<2x32xf32>
    %cst_43 = arith.constant 1.000000e+00 : f32
    %220 = vector.broadcast %cst_43 : f32 to vector<2x32xf32>
    %221 = arith.subf %220, %214 : vector<2x32xf32>
    %222 = arith.mulf %221, %219 : vector<2x32xf32>
    %223 = arith.mulf %214, %193 : vector<2x32xf32>
    %224 = arith.addf %222, %223 : vector<2x32xf32>
    %c12 = arith.constant 12 : index
    %c0_44 = arith.constant 0 : index
    %225 = vector.load %arg10[%c12, %c0_44] : memref<24x32xf32, #tpu.memory_space<vmem>>, vector<2x32xf32>
    tpu.vector_store %arg10[%c12, %c0_44], %224 {strides = array<i32>} : memref<24x32xf32, #tpu.memory_space<vmem>>, vector<2x32xf32>,
    %226 = vector.extract_strided_slice %7 {offsets = [14, 0], sizes = [2, 96], strides = [1, 1]} : vector<24x96xf32> to vector<2x96xf32>
    %cst_45 = arith.constant dense<0.000000e+00> : vector<2x96xf32>
    %227 = tpu.matmul %224, %2, %cst_45 {dimension_numbers = #tpu.dot_dimension_numbers<[1], [0], [0], [1], [0, 0, 1, 1], [], []>} : vector<2x32xf32>, vector<32x96xf32>, vector<2x96xf32> -> vector<2x96xf32>
    %228 = vector.broadcast %4 : vector<1x96xf32> to vector<2x96xf32>
    %229 = arith.addf %227, %228 : vector<2x96xf32>
    %230 = vector.extract_strided_slice %226 {offsets = [0, 0], sizes = [2, 32], strides = [1, 1]} : vector<2x96xf32> to vector<2x32xf32>
    %231 = vector.extract_strided_slice %229 {offsets = [0, 0], sizes = [2, 32], strides = [1, 1]} : vector<2x96xf32> to vector<2x32xf32>
    %232 = arith.addf %230, %231 : vector<2x32xf32>
    %233 = arith.negf %232 : vector<2x32xf32>
    %234 = math.exp %233 : vector<2x32xf32>
    %cst_46 = arith.constant 1.000000e+00 : f32
    %235 = vector.broadcast %cst_46 : f32 to vector<2x32xf32>
    %236 = arith.addf %235, %234 : vector<2x32xf32>
    %237 = arith.divf %235, %236 : vector<2x32xf32>
    %238 = vector.extract_strided_slice %226 {offsets = [0, 32], sizes = [2, 32], strides = [1, 1]} : vector<2x96xf32> to vector<2x32xf32>
    %239 = vector.extract_strided_slice %229 {offsets = [0, 32], sizes = [2, 32], strides = [1, 1]} : vector<2x96xf32> to vector<2x32xf32>
    %240 = arith.addf %238, %239 : vector<2x32xf32>
    %241 = arith.negf %240 : vector<2x32xf32>
    %242 = math.exp %241 : vector<2x32xf32>
    %cst_47 = arith.constant 1.000000e+00 : f32
    %243 = vector.broadcast %cst_47 : f32 to vector<2x32xf32>
    %244 = arith.addf %243, %242 : vector<2x32xf32>
    %245 = arith.divf %243, %244 : vector<2x32xf32>
    %246 = vector.extract_strided_slice %226 {offsets = [0, 64], sizes = [2, 32], strides = [1, 1]} : vector<2x96xf32> to vector<2x32xf32>
    %247 = vector.extract_strided_slice %229 {offsets = [0, 64], sizes = [2, 32], strides = [1, 1]} : vector<2x96xf32> to vector<2x32xf32>
    %248 = arith.mulf %237, %247 : vector<2x32xf32>
    %249 = arith.addf %246, %248 : vector<2x32xf32>
    %250 = math.tanh %249 : vector<2x32xf32>
    %cst_48 = arith.constant 1.000000e+00 : f32
    %251 = vector.broadcast %cst_48 : f32 to vector<2x32xf32>
    %252 = arith.subf %251, %245 : vector<2x32xf32>
    %253 = arith.mulf %252, %250 : vector<2x32xf32>
    %254 = arith.mulf %245, %224 : vector<2x32xf32>
    %255 = arith.addf %253, %254 : vector<2x32xf32>
    %c14 = arith.constant 14 : index
    %c0_49 = arith.constant 0 : index
    %256 = vector.load %arg10[%c14, %c0_49] : memref<24x32xf32, #tpu.memory_space<vmem>>, vector<2x32xf32>
    tpu.vector_store %arg10[%c14, %c0_49], %255 {strides = array<i32>} : memref<24x32xf32, #tpu.memory_space<vmem>>, vector<2x32xf32>,
    %257 = vector.extract_strided_slice %7 {offsets = [16, 0], sizes = [2, 96], strides = [1, 1]} : vector<24x96xf32> to vector<2x96xf32>
    %cst_50 = arith.constant dense<0.000000e+00> : vector<2x96xf32>
    %258 = tpu.matmul %255, %2, %cst_50 {dimension_numbers = #tpu.dot_dimension_numbers<[1], [0], [0], [1], [0, 0, 1, 1], [], []>} : vector<2x32xf32>, vector<32x96xf32>, vector<2x96xf32> -> vector<2x96xf32>
    %259 = vector.broadcast %4 : vector<1x96xf32> to vector<2x96xf32>
    %260 = arith.addf %258, %259 : vector<2x96xf32>
    %261 = vector.extract_strided_slice %257 {offsets = [0, 0], sizes = [2, 32], strides = [1, 1]} : vector<2x96xf32> to vector<2x32xf32>
    %262 = vector.extract_strided_slice %260 {offsets = [0, 0], sizes = [2, 32], strides = [1, 1]} : vector<2x96xf32> to vector<2x32xf32>
    %263 = arith.addf %261, %262 : vector<2x32xf32>
    %264 = arith.negf %263 : vector<2x32xf32>
    %265 = math.exp %264 : vector<2x32xf32>
    %cst_51 = arith.constant 1.000000e+00 : f32
    %266 = vector.broadcast %cst_51 : f32 to vector<2x32xf32>
    %267 = arith.addf %266, %265 : vector<2x32xf32>
    %268 = arith.divf %266, %267 : vector<2x32xf32>
    %269 = vector.extract_strided_slice %257 {offsets = [0, 32], sizes = [2, 32], strides = [1, 1]} : vector<2x96xf32> to vector<2x32xf32>
    %270 = vector.extract_strided_slice %260 {offsets = [0, 32], sizes = [2, 32], strides = [1, 1]} : vector<2x96xf32> to vector<2x32xf32>
    %271 = arith.addf %269, %270 : vector<2x32xf32>
    %272 = arith.negf %271 : vector<2x32xf32>
    %273 = math.exp %272 : vector<2x32xf32>
    %cst_52 = arith.constant 1.000000e+00 : f32
    %274 = vector.broadcast %cst_52 : f32 to vector<2x32xf32>
    %275 = arith.addf %274, %273 : vector<2x32xf32>
    %276 = arith.divf %274, %275 : vector<2x32xf32>
    %277 = vector.extract_strided_slice %257 {offsets = [0, 64], sizes = [2, 32], strides = [1, 1]} : vector<2x96xf32> to vector<2x32xf32>
    %278 = vector.extract_strided_slice %260 {offsets = [0, 64], sizes = [2, 32], strides = [1, 1]} : vector<2x96xf32> to vector<2x32xf32>
    %279 = arith.mulf %268, %278 : vector<2x32xf32>
    %280 = arith.addf %277, %279 : vector<2x32xf32>
    %281 = math.tanh %280 : vector<2x32xf32>
    %cst_53 = arith.constant 1.000000e+00 : f32
    %282 = vector.broadcast %cst_53 : f32 to vector<2x32xf32>
    %283 = arith.subf %282, %276 : vector<2x32xf32>
    %284 = arith.mulf %283, %281 : vector<2x32xf32>
    %285 = arith.mulf %276, %255 : vector<2x32xf32>
    %286 = arith.addf %284, %285 : vector<2x32xf32>
    %c16 = arith.constant 16 : index
    %c0_54 = arith.constant 0 : index
    %287 = vector.load %arg10[%c16, %c0_54] : memref<24x32xf32, #tpu.memory_space<vmem>>, vector<2x32xf32>
    tpu.vector_store %arg10[%c16, %c0_54], %286 {strides = array<i32>} : memref<24x32xf32, #tpu.memory_space<vmem>>, vector<2x32xf32>,
    %288 = vector.extract_strided_slice %7 {offsets = [18, 0], sizes = [2, 96], strides = [1, 1]} : vector<24x96xf32> to vector<2x96xf32>
    %cst_55 = arith.constant dense<0.000000e+00> : vector<2x96xf32>
    %289 = tpu.matmul %286, %2, %cst_55 {dimension_numbers = #tpu.dot_dimension_numbers<[1], [0], [0], [1], [0, 0, 1, 1], [], []>} : vector<2x32xf32>, vector<32x96xf32>, vector<2x96xf32> -> vector<2x96xf32>
    %290 = vector.broadcast %4 : vector<1x96xf32> to vector<2x96xf32>
    %291 = arith.addf %289, %290 : vector<2x96xf32>
    %292 = vector.extract_strided_slice %288 {offsets = [0, 0], sizes = [2, 32], strides = [1, 1]} : vector<2x96xf32> to vector<2x32xf32>
    %293 = vector.extract_strided_slice %291 {offsets = [0, 0], sizes = [2, 32], strides = [1, 1]} : vector<2x96xf32> to vector<2x32xf32>
    %294 = arith.addf %292, %293 : vector<2x32xf32>
    %295 = arith.negf %294 : vector<2x32xf32>
    %296 = math.exp %295 : vector<2x32xf32>
    %cst_56 = arith.constant 1.000000e+00 : f32
    %297 = vector.broadcast %cst_56 : f32 to vector<2x32xf32>
    %298 = arith.addf %297, %296 : vector<2x32xf32>
    %299 = arith.divf %297, %298 : vector<2x32xf32>
    %300 = vector.extract_strided_slice %288 {offsets = [0, 32], sizes = [2, 32], strides = [1, 1]} : vector<2x96xf32> to vector<2x32xf32>
    %301 = vector.extract_strided_slice %291 {offsets = [0, 32], sizes = [2, 32], strides = [1, 1]} : vector<2x96xf32> to vector<2x32xf32>
    %302 = arith.addf %300, %301 : vector<2x32xf32>
    %303 = arith.negf %302 : vector<2x32xf32>
    %304 = math.exp %303 : vector<2x32xf32>
    %cst_57 = arith.constant 1.000000e+00 : f32
    %305 = vector.broadcast %cst_57 : f32 to vector<2x32xf32>
    %306 = arith.addf %305, %304 : vector<2x32xf32>
    %307 = arith.divf %305, %306 : vector<2x32xf32>
    %308 = vector.extract_strided_slice %288 {offsets = [0, 64], sizes = [2, 32], strides = [1, 1]} : vector<2x96xf32> to vector<2x32xf32>
    %309 = vector.extract_strided_slice %291 {offsets = [0, 64], sizes = [2, 32], strides = [1, 1]} : vector<2x96xf32> to vector<2x32xf32>
    %310 = arith.mulf %299, %309 : vector<2x32xf32>
    %311 = arith.addf %308, %310 : vector<2x32xf32>
    %312 = math.tanh %311 : vector<2x32xf32>
    %cst_58 = arith.constant 1.000000e+00 : f32
    %313 = vector.broadcast %cst_58 : f32 to vector<2x32xf32>
    %314 = arith.subf %313, %307 : vector<2x32xf32>
    %315 = arith.mulf %314, %312 : vector<2x32xf32>
    %316 = arith.mulf %307, %286 : vector<2x32xf32>
    %317 = arith.addf %315, %316 : vector<2x32xf32>
    %c18 = arith.constant 18 : index
    %c0_59 = arith.constant 0 : index
    %318 = vector.load %arg10[%c18, %c0_59] : memref<24x32xf32, #tpu.memory_space<vmem>>, vector<2x32xf32>
    tpu.vector_store %arg10[%c18, %c0_59], %317 {strides = array<i32>} : memref<24x32xf32, #tpu.memory_space<vmem>>, vector<2x32xf32>,
    %319 = vector.extract_strided_slice %7 {offsets = [20, 0], sizes = [2, 96], strides = [1, 1]} : vector<24x96xf32> to vector<2x96xf32>
    %cst_60 = arith.constant dense<0.000000e+00> : vector<2x96xf32>
    %320 = tpu.matmul %317, %2, %cst_60 {dimension_numbers = #tpu.dot_dimension_numbers<[1], [0], [0], [1], [0, 0, 1, 1], [], []>} : vector<2x32xf32>, vector<32x96xf32>, vector<2x96xf32> -> vector<2x96xf32>
    %321 = vector.broadcast %4 : vector<1x96xf32> to vector<2x96xf32>
    %322 = arith.addf %320, %321 : vector<2x96xf32>
    %323 = vector.extract_strided_slice %319 {offsets = [0, 0], sizes = [2, 32], strides = [1, 1]} : vector<2x96xf32> to vector<2x32xf32>
    %324 = vector.extract_strided_slice %322 {offsets = [0, 0], sizes = [2, 32], strides = [1, 1]} : vector<2x96xf32> to vector<2x32xf32>
    %325 = arith.addf %323, %324 : vector<2x32xf32>
    %326 = arith.negf %325 : vector<2x32xf32>
    %327 = math.exp %326 : vector<2x32xf32>
    %cst_61 = arith.constant 1.000000e+00 : f32
    %328 = vector.broadcast %cst_61 : f32 to vector<2x32xf32>
    %329 = arith.addf %328, %327 : vector<2x32xf32>
    %330 = arith.divf %328, %329 : vector<2x32xf32>
    %331 = vector.extract_strided_slice %319 {offsets = [0, 32], sizes = [2, 32], strides = [1, 1]} : vector<2x96xf32> to vector<2x32xf32>
    %332 = vector.extract_strided_slice %322 {offsets = [0, 32], sizes = [2, 32], strides = [1, 1]} : vector<2x96xf32> to vector<2x32xf32>
    %333 = arith.addf %331, %332 : vector<2x32xf32>
    %334 = arith.negf %333 : vector<2x32xf32>
    %335 = math.exp %334 : vector<2x32xf32>
    %cst_62 = arith.constant 1.000000e+00 : f32
    %336 = vector.broadcast %cst_62 : f32 to vector<2x32xf32>
    %337 = arith.addf %336, %335 : vector<2x32xf32>
    %338 = arith.divf %336, %337 : vector<2x32xf32>
    %339 = vector.extract_strided_slice %319 {offsets = [0, 64], sizes = [2, 32], strides = [1, 1]} : vector<2x96xf32> to vector<2x32xf32>
    %340 = vector.extract_strided_slice %322 {offsets = [0, 64], sizes = [2, 32], strides = [1, 1]} : vector<2x96xf32> to vector<2x32xf32>
    %341 = arith.mulf %330, %340 : vector<2x32xf32>
    %342 = arith.addf %339, %341 : vector<2x32xf32>
    %343 = math.tanh %342 : vector<2x32xf32>
    %cst_63 = arith.constant 1.000000e+00 : f32
    %344 = vector.broadcast %cst_63 : f32 to vector<2x32xf32>
    %345 = arith.subf %344, %338 : vector<2x32xf32>
    %346 = arith.mulf %345, %343 : vector<2x32xf32>
    %347 = arith.mulf %338, %317 : vector<2x32xf32>
    %348 = arith.addf %346, %347 : vector<2x32xf32>
    %c20 = arith.constant 20 : index
    %c0_64 = arith.constant 0 : index
    %349 = vector.load %arg10[%c20, %c0_64] : memref<24x32xf32, #tpu.memory_space<vmem>>, vector<2x32xf32>
    tpu.vector_store %arg10[%c20, %c0_64], %348 {strides = array<i32>} : memref<24x32xf32, #tpu.memory_space<vmem>>, vector<2x32xf32>,
    %350 = vector.extract_strided_slice %7 {offsets = [22, 0], sizes = [2, 96], strides = [1, 1]} : vector<24x96xf32> to vector<2x96xf32>
    %cst_65 = arith.constant dense<0.000000e+00> : vector<2x96xf32>
    %351 = tpu.matmul %348, %2, %cst_65 {dimension_numbers = #tpu.dot_dimension_numbers<[1], [0], [0], [1], [0, 0, 1, 1], [], []>} : vector<2x32xf32>, vector<32x96xf32>, vector<2x96xf32> -> vector<2x96xf32>
    %352 = vector.broadcast %4 : vector<1x96xf32> to vector<2x96xf32>
    %353 = arith.addf %351, %352 : vector<2x96xf32>
    %354 = vector.extract_strided_slice %350 {offsets = [0, 0], sizes = [2, 32], strides = [1, 1]} : vector<2x96xf32> to vector<2x32xf32>
    %355 = vector.extract_strided_slice %353 {offsets = [0, 0], sizes = [2, 32], strides = [1, 1]} : vector<2x96xf32> to vector<2x32xf32>
    %356 = arith.addf %354, %355 : vector<2x32xf32>
    %357 = arith.negf %356 : vector<2x32xf32>
    %358 = math.exp %357 : vector<2x32xf32>
    %cst_66 = arith.constant 1.000000e+00 : f32
    %359 = vector.broadcast %cst_66 : f32 to vector<2x32xf32>
    %360 = arith.addf %359, %358 : vector<2x32xf32>
    %361 = arith.divf %359, %360 : vector<2x32xf32>
    %362 = vector.extract_strided_slice %350 {offsets = [0, 32], sizes = [2, 32], strides = [1, 1]} : vector<2x96xf32> to vector<2x32xf32>
    %363 = vector.extract_strided_slice %353 {offsets = [0, 32], sizes = [2, 32], strides = [1, 1]} : vector<2x96xf32> to vector<2x32xf32>
    %364 = arith.addf %362, %363 : vector<2x32xf32>
    %365 = arith.negf %364 : vector<2x32xf32>
    %366 = math.exp %365 : vector<2x32xf32>
    %cst_67 = arith.constant 1.000000e+00 : f32
    %367 = vector.broadcast %cst_67 : f32 to vector<2x32xf32>
    %368 = arith.addf %367, %366 : vector<2x32xf32>
    %369 = arith.divf %367, %368 : vector<2x32xf32>
    %370 = vector.extract_strided_slice %350 {offsets = [0, 64], sizes = [2, 32], strides = [1, 1]} : vector<2x96xf32> to vector<2x32xf32>
    %371 = vector.extract_strided_slice %353 {offsets = [0, 64], sizes = [2, 32], strides = [1, 1]} : vector<2x96xf32> to vector<2x32xf32>
    %372 = arith.mulf %361, %371 : vector<2x32xf32>
    %373 = arith.addf %370, %372 : vector<2x32xf32>
    %374 = math.tanh %373 : vector<2x32xf32>
    %cst_68 = arith.constant 1.000000e+00 : f32
    %375 = vector.broadcast %cst_68 : f32 to vector<2x32xf32>
    %376 = arith.subf %375, %369 : vector<2x32xf32>
    %377 = arith.mulf %376, %374 : vector<2x32xf32>
    %378 = arith.mulf %369, %348 : vector<2x32xf32>
    %379 = arith.addf %377, %378 : vector<2x32xf32>
    %c22 = arith.constant 22 : index
    %c0_69 = arith.constant 0 : index
    %380 = vector.load %arg10[%c22, %c0_69] : memref<24x32xf32, #tpu.memory_space<vmem>>, vector<2x32xf32>
    tpu.vector_store %arg10[%c22, %c0_69], %379 {strides = array<i32>} : memref<24x32xf32, #tpu.memory_space<vmem>>, vector<2x32xf32>,
    %c0_70 = arith.constant 0 : index
    %c0_71 = arith.constant 0 : index
    %381 = vector.load %arg10[%c0_70, %c0_71] : memref<24x32xf32, #tpu.memory_space<vmem>>, vector<24x32xf32>
    %c40 = arith.constant 40 : index
    %c0_72 = arith.constant 0 : index
    %382 = vector.load %arg2[%c40, %c0_72] : memref<104x96xf32, #tpu.memory_space<vmem>>, vector<32x96xf32>
    %c72 = arith.constant 72 : index
    %c0_73 = arith.constant 0 : index
    %383 = vector.load %arg2[%c72, %c0_73] : memref<104x96xf32, #tpu.memory_space<vmem>>, vector<32x96xf32>
    %c2_74 = arith.constant 2 : index
    %c0_75 = arith.constant 0 : index
    %384 = vector.load %arg3[%c2_74, %c0_75] : memref<4x96xf32, #tpu.memory_space<vmem>>, vector<1x96xf32>
    %c3 = arith.constant 3 : index
    %c0_76 = arith.constant 0 : index
    %385 = vector.load %arg3[%c3, %c0_76] : memref<4x96xf32, #tpu.memory_space<vmem>>, vector<1x96xf32>
    %cst_77 = arith.constant dense<0.000000e+00> : vector<24x96xf32>
    %386 = tpu.matmul %381, %382, %cst_77 {dimension_numbers = #tpu.dot_dimension_numbers<[1], [0], [0], [1], [0, 0, 1, 1], [], []>} : vector<24x32xf32>, vector<32x96xf32>, vector<24x96xf32> -> vector<24x96xf32>
    %387 = vector.broadcast %384 : vector<1x96xf32> to vector<24x96xf32>
    %388 = arith.addf %386, %387 : vector<24x96xf32>
    %cst_78 = arith.constant 0.000000e+00 : f32
    %389 = vector.broadcast %cst_78 : f32 to vector<2x32xf32>
    %390 = vector.extract_strided_slice %388 {offsets = [0, 0], sizes = [2, 96], strides = [1, 1]} : vector<24x96xf32> to vector<2x96xf32>
    %cst_79 = arith.constant dense<0.000000e+00> : vector<2x96xf32>
    %391 = tpu.matmul %389, %383, %cst_79 {dimension_numbers = #tpu.dot_dimension_numbers<[1], [0], [0], [1], [0, 0, 1, 1], [], []>} : vector<2x32xf32>, vector<32x96xf32>, vector<2x96xf32> -> vector<2x96xf32>
    %392 = vector.broadcast %385 : vector<1x96xf32> to vector<2x96xf32>
    %393 = arith.addf %391, %392 : vector<2x96xf32>
    %394 = vector.extract_strided_slice %390 {offsets = [0, 0], sizes = [2, 32], strides = [1, 1]} : vector<2x96xf32> to vector<2x32xf32>
    %395 = vector.extract_strided_slice %393 {offsets = [0, 0], sizes = [2, 32], strides = [1, 1]} : vector<2x96xf32> to vector<2x32xf32>
    %396 = arith.addf %394, %395 : vector<2x32xf32>
    %397 = arith.negf %396 : vector<2x32xf32>
    %398 = math.exp %397 : vector<2x32xf32>
    %cst_80 = arith.constant 1.000000e+00 : f32
    %399 = vector.broadcast %cst_80 : f32 to vector<2x32xf32>
    %400 = arith.addf %399, %398 : vector<2x32xf32>
    %401 = arith.divf %399, %400 : vector<2x32xf32>
    %402 = vector.extract_strided_slice %390 {offsets = [0, 32], sizes = [2, 32], strides = [1, 1]} : vector<2x96xf32> to vector<2x32xf32>
    %403 = vector.extract_strided_slice %393 {offsets = [0, 32], sizes = [2, 32], strides = [1, 1]} : vector<2x96xf32> to vector<2x32xf32>
    %404 = arith.addf %402, %403 : vector<2x32xf32>
    %405 = arith.negf %404 : vector<2x32xf32>
    %406 = math.exp %405 : vector<2x32xf32>
    %cst_81 = arith.constant 1.000000e+00 : f32
    %407 = vector.broadcast %cst_81 : f32 to vector<2x32xf32>
    %408 = arith.addf %407, %406 : vector<2x32xf32>
    %409 = arith.divf %407, %408 : vector<2x32xf32>
    %410 = vector.extract_strided_slice %390 {offsets = [0, 64], sizes = [2, 32], strides = [1, 1]} : vector<2x96xf32> to vector<2x32xf32>
    %411 = vector.extract_strided_slice %393 {offsets = [0, 64], sizes = [2, 32], strides = [1, 1]} : vector<2x96xf32> to vector<2x32xf32>
    %412 = arith.mulf %401, %411 : vector<2x32xf32>
    %413 = arith.addf %410, %412 : vector<2x32xf32>
    %414 = math.tanh %413 : vector<2x32xf32>
    %cst_82 = arith.constant 1.000000e+00 : f32
    %415 = vector.broadcast %cst_82 : f32 to vector<2x32xf32>
    %416 = arith.subf %415, %409 : vector<2x32xf32>
    %417 = arith.mulf %416, %414 : vector<2x32xf32>
    %418 = arith.mulf %409, %389 : vector<2x32xf32>
    %419 = arith.addf %417, %418 : vector<2x32xf32>
    %420 = vector.extract_strided_slice %388 {offsets = [2, 0], sizes = [2, 96], strides = [1, 1]} : vector<24x96xf32> to vector<2x96xf32>
    %cst_83 = arith.constant dense<0.000000e+00> : vector<2x96xf32>
    %421 = tpu.matmul %419, %383, %cst_83 {dimension_numbers = #tpu.dot_dimension_numbers<[1], [0], [0], [1], [0, 0, 1, 1], [], []>} : vector<2x32xf32>, vector<32x96xf32>, vector<2x96xf32> -> vector<2x96xf32>
    %422 = vector.broadcast %385 : vector<1x96xf32> to vector<2x96xf32>
    %423 = arith.addf %421, %422 : vector<2x96xf32>
    %424 = vector.extract_strided_slice %420 {offsets = [0, 0], sizes = [2, 32], strides = [1, 1]} : vector<2x96xf32> to vector<2x32xf32>
    %425 = vector.extract_strided_slice %423 {offsets = [0, 0], sizes = [2, 32], strides = [1, 1]} : vector<2x96xf32> to vector<2x32xf32>
    %426 = arith.addf %424, %425 : vector<2x32xf32>
    %427 = arith.negf %426 : vector<2x32xf32>
    %428 = math.exp %427 : vector<2x32xf32>
    %cst_84 = arith.constant 1.000000e+00 : f32
    %429 = vector.broadcast %cst_84 : f32 to vector<2x32xf32>
    %430 = arith.addf %429, %428 : vector<2x32xf32>
    %431 = arith.divf %429, %430 : vector<2x32xf32>
    %432 = vector.extract_strided_slice %420 {offsets = [0, 32], sizes = [2, 32], strides = [1, 1]} : vector<2x96xf32> to vector<2x32xf32>
    %433 = vector.extract_strided_slice %423 {offsets = [0, 32], sizes = [2, 32], strides = [1, 1]} : vector<2x96xf32> to vector<2x32xf32>
    %434 = arith.addf %432, %433 : vector<2x32xf32>
    %435 = arith.negf %434 : vector<2x32xf32>
    %436 = math.exp %435 : vector<2x32xf32>
    %cst_85 = arith.constant 1.000000e+00 : f32
    %437 = vector.broadcast %cst_85 : f32 to vector<2x32xf32>
    %438 = arith.addf %437, %436 : vector<2x32xf32>
    %439 = arith.divf %437, %438 : vector<2x32xf32>
    %440 = vector.extract_strided_slice %420 {offsets = [0, 64], sizes = [2, 32], strides = [1, 1]} : vector<2x96xf32> to vector<2x32xf32>
    %441 = vector.extract_strided_slice %423 {offsets = [0, 64], sizes = [2, 32], strides = [1, 1]} : vector<2x96xf32> to vector<2x32xf32>
    %442 = arith.mulf %431, %441 : vector<2x32xf32>
    %443 = arith.addf %440, %442 : vector<2x32xf32>
    %444 = math.tanh %443 : vector<2x32xf32>
    %cst_86 = arith.constant 1.000000e+00 : f32
    %445 = vector.broadcast %cst_86 : f32 to vector<2x32xf32>
    %446 = arith.subf %445, %439 : vector<2x32xf32>
    %447 = arith.mulf %446, %444 : vector<2x32xf32>
    %448 = arith.mulf %439, %419 : vector<2x32xf32>
    %449 = arith.addf %447, %448 : vector<2x32xf32>
    %450 = vector.extract_strided_slice %388 {offsets = [4, 0], sizes = [2, 96], strides = [1, 1]} : vector<24x96xf32> to vector<2x96xf32>
    %cst_87 = arith.constant dense<0.000000e+00> : vector<2x96xf32>
    %451 = tpu.matmul %449, %383, %cst_87 {dimension_numbers = #tpu.dot_dimension_numbers<[1], [0], [0], [1], [0, 0, 1, 1], [], []>} : vector<2x32xf32>, vector<32x96xf32>, vector<2x96xf32> -> vector<2x96xf32>
    %452 = vector.broadcast %385 : vector<1x96xf32> to vector<2x96xf32>
    %453 = arith.addf %451, %452 : vector<2x96xf32>
    %454 = vector.extract_strided_slice %450 {offsets = [0, 0], sizes = [2, 32], strides = [1, 1]} : vector<2x96xf32> to vector<2x32xf32>
    %455 = vector.extract_strided_slice %453 {offsets = [0, 0], sizes = [2, 32], strides = [1, 1]} : vector<2x96xf32> to vector<2x32xf32>
    %456 = arith.addf %454, %455 : vector<2x32xf32>
    %457 = arith.negf %456 : vector<2x32xf32>
    %458 = math.exp %457 : vector<2x32xf32>
    %cst_88 = arith.constant 1.000000e+00 : f32
    %459 = vector.broadcast %cst_88 : f32 to vector<2x32xf32>
    %460 = arith.addf %459, %458 : vector<2x32xf32>
    %461 = arith.divf %459, %460 : vector<2x32xf32>
    %462 = vector.extract_strided_slice %450 {offsets = [0, 32], sizes = [2, 32], strides = [1, 1]} : vector<2x96xf32> to vector<2x32xf32>
    %463 = vector.extract_strided_slice %453 {offsets = [0, 32], sizes = [2, 32], strides = [1, 1]} : vector<2x96xf32> to vector<2x32xf32>
    %464 = arith.addf %462, %463 : vector<2x32xf32>
    %465 = arith.negf %464 : vector<2x32xf32>
    %466 = math.exp %465 : vector<2x32xf32>
    %cst_89 = arith.constant 1.000000e+00 : f32
    %467 = vector.broadcast %cst_89 : f32 to vector<2x32xf32>
    %468 = arith.addf %467, %466 : vector<2x32xf32>
    %469 = arith.divf %467, %468 : vector<2x32xf32>
    %470 = vector.extract_strided_slice %450 {offsets = [0, 64], sizes = [2, 32], strides = [1, 1]} : vector<2x96xf32> to vector<2x32xf32>
    %471 = vector.extract_strided_slice %453 {offsets = [0, 64], sizes = [2, 32], strides = [1, 1]} : vector<2x96xf32> to vector<2x32xf32>
    %472 = arith.mulf %461, %471 : vector<2x32xf32>
    %473 = arith.addf %470, %472 : vector<2x32xf32>
    %474 = math.tanh %473 : vector<2x32xf32>
    %cst_90 = arith.constant 1.000000e+00 : f32
    %475 = vector.broadcast %cst_90 : f32 to vector<2x32xf32>
    %476 = arith.subf %475, %469 : vector<2x32xf32>
    %477 = arith.mulf %476, %474 : vector<2x32xf32>
    %478 = arith.mulf %469, %449 : vector<2x32xf32>
    %479 = arith.addf %477, %478 : vector<2x32xf32>
    %480 = vector.extract_strided_slice %388 {offsets = [6, 0], sizes = [2, 96], strides = [1, 1]} : vector<24x96xf32> to vector<2x96xf32>
    %cst_91 = arith.constant dense<0.000000e+00> : vector<2x96xf32>
    %481 = tpu.matmul %479, %383, %cst_91 {dimension_numbers = #tpu.dot_dimension_numbers<[1], [0], [0], [1], [0, 0, 1, 1], [], []>} : vector<2x32xf32>, vector<32x96xf32>, vector<2x96xf32> -> vector<2x96xf32>
    %482 = vector.broadcast %385 : vector<1x96xf32> to vector<2x96xf32>
    %483 = arith.addf %481, %482 : vector<2x96xf32>
    %484 = vector.extract_strided_slice %480 {offsets = [0, 0], sizes = [2, 32], strides = [1, 1]} : vector<2x96xf32> to vector<2x32xf32>
    %485 = vector.extract_strided_slice %483 {offsets = [0, 0], sizes = [2, 32], strides = [1, 1]} : vector<2x96xf32> to vector<2x32xf32>
    %486 = arith.addf %484, %485 : vector<2x32xf32>
    %487 = arith.negf %486 : vector<2x32xf32>
    %488 = math.exp %487 : vector<2x32xf32>
    %cst_92 = arith.constant 1.000000e+00 : f32
    %489 = vector.broadcast %cst_92 : f32 to vector<2x32xf32>
    %490 = arith.addf %489, %488 : vector<2x32xf32>
    %491 = arith.divf %489, %490 : vector<2x32xf32>
    %492 = vector.extract_strided_slice %480 {offsets = [0, 32], sizes = [2, 32], strides = [1, 1]} : vector<2x96xf32> to vector<2x32xf32>
    %493 = vector.extract_strided_slice %483 {offsets = [0, 32], sizes = [2, 32], strides = [1, 1]} : vector<2x96xf32> to vector<2x32xf32>
    %494 = arith.addf %492, %493 : vector<2x32xf32>
    %495 = arith.negf %494 : vector<2x32xf32>
    %496 = math.exp %495 : vector<2x32xf32>
    %cst_93 = arith.constant 1.000000e+00 : f32
    %497 = vector.broadcast %cst_93 : f32 to vector<2x32xf32>
    %498 = arith.addf %497, %496 : vector<2x32xf32>
    %499 = arith.divf %497, %498 : vector<2x32xf32>
    %500 = vector.extract_strided_slice %480 {offsets = [0, 64], sizes = [2, 32], strides = [1, 1]} : vector<2x96xf32> to vector<2x32xf32>
    %501 = vector.extract_strided_slice %483 {offsets = [0, 64], sizes = [2, 32], strides = [1, 1]} : vector<2x96xf32> to vector<2x32xf32>
    %502 = arith.mulf %491, %501 : vector<2x32xf32>
    %503 = arith.addf %500, %502 : vector<2x32xf32>
    %504 = math.tanh %503 : vector<2x32xf32>
    %cst_94 = arith.constant 1.000000e+00 : f32
    %505 = vector.broadcast %cst_94 : f32 to vector<2x32xf32>
    %506 = arith.subf %505, %499 : vector<2x32xf32>
    %507 = arith.mulf %506, %504 : vector<2x32xf32>
    %508 = arith.mulf %499, %479 : vector<2x32xf32>
    %509 = arith.addf %507, %508 : vector<2x32xf32>
    %510 = vector.extract_strided_slice %388 {offsets = [8, 0], sizes = [2, 96], strides = [1, 1]} : vector<24x96xf32> to vector<2x96xf32>
    %cst_95 = arith.constant dense<0.000000e+00> : vector<2x96xf32>
    %511 = tpu.matmul %509, %383, %cst_95 {dimension_numbers = #tpu.dot_dimension_numbers<[1], [0], [0], [1], [0, 0, 1, 1], [], []>} : vector<2x32xf32>, vector<32x96xf32>, vector<2x96xf32> -> vector<2x96xf32>
    %512 = vector.broadcast %385 : vector<1x96xf32> to vector<2x96xf32>
    %513 = arith.addf %511, %512 : vector<2x96xf32>
    %514 = vector.extract_strided_slice %510 {offsets = [0, 0], sizes = [2, 32], strides = [1, 1]} : vector<2x96xf32> to vector<2x32xf32>
    %515 = vector.extract_strided_slice %513 {offsets = [0, 0], sizes = [2, 32], strides = [1, 1]} : vector<2x96xf32> to vector<2x32xf32>
    %516 = arith.addf %514, %515 : vector<2x32xf32>
    %517 = arith.negf %516 : vector<2x32xf32>
    %518 = math.exp %517 : vector<2x32xf32>
    %cst_96 = arith.constant 1.000000e+00 : f32
    %519 = vector.broadcast %cst_96 : f32 to vector<2x32xf32>
    %520 = arith.addf %519, %518 : vector<2x32xf32>
    %521 = arith.divf %519, %520 : vector<2x32xf32>
    %522 = vector.extract_strided_slice %510 {offsets = [0, 32], sizes = [2, 32], strides = [1, 1]} : vector<2x96xf32> to vector<2x32xf32>
    %523 = vector.extract_strided_slice %513 {offsets = [0, 32], sizes = [2, 32], strides = [1, 1]} : vector<2x96xf32> to vector<2x32xf32>
    %524 = arith.addf %522, %523 : vector<2x32xf32>
    %525 = arith.negf %524 : vector<2x32xf32>
    %526 = math.exp %525 : vector<2x32xf32>
    %cst_97 = arith.constant 1.000000e+00 : f32
    %527 = vector.broadcast %cst_97 : f32 to vector<2x32xf32>
    %528 = arith.addf %527, %526 : vector<2x32xf32>
    %529 = arith.divf %527, %528 : vector<2x32xf32>
    %530 = vector.extract_strided_slice %510 {offsets = [0, 64], sizes = [2, 32], strides = [1, 1]} : vector<2x96xf32> to vector<2x32xf32>
    %531 = vector.extract_strided_slice %513 {offsets = [0, 64], sizes = [2, 32], strides = [1, 1]} : vector<2x96xf32> to vector<2x32xf32>
    %532 = arith.mulf %521, %531 : vector<2x32xf32>
    %533 = arith.addf %530, %532 : vector<2x32xf32>
    %534 = math.tanh %533 : vector<2x32xf32>
    %cst_98 = arith.constant 1.000000e+00 : f32
    %535 = vector.broadcast %cst_98 : f32 to vector<2x32xf32>
    %536 = arith.subf %535, %529 : vector<2x32xf32>
    %537 = arith.mulf %536, %534 : vector<2x32xf32>
    %538 = arith.mulf %529, %509 : vector<2x32xf32>
    %539 = arith.addf %537, %538 : vector<2x32xf32>
    %540 = vector.extract_strided_slice %388 {offsets = [10, 0], sizes = [2, 96], strides = [1, 1]} : vector<24x96xf32> to vector<2x96xf32>
    %cst_99 = arith.constant dense<0.000000e+00> : vector<2x96xf32>
    %541 = tpu.matmul %539, %383, %cst_99 {dimension_numbers = #tpu.dot_dimension_numbers<[1], [0], [0], [1], [0, 0, 1, 1], [], []>} : vector<2x32xf32>, vector<32x96xf32>, vector<2x96xf32> -> vector<2x96xf32>
    %542 = vector.broadcast %385 : vector<1x96xf32> to vector<2x96xf32>
    %543 = arith.addf %541, %542 : vector<2x96xf32>
    %544 = vector.extract_strided_slice %540 {offsets = [0, 0], sizes = [2, 32], strides = [1, 1]} : vector<2x96xf32> to vector<2x32xf32>
    %545 = vector.extract_strided_slice %543 {offsets = [0, 0], sizes = [2, 32], strides = [1, 1]} : vector<2x96xf32> to vector<2x32xf32>
    %546 = arith.addf %544, %545 : vector<2x32xf32>
    %547 = arith.negf %546 : vector<2x32xf32>
    %548 = math.exp %547 : vector<2x32xf32>
    %cst_100 = arith.constant 1.000000e+00 : f32
    %549 = vector.broadcast %cst_100 : f32 to vector<2x32xf32>
    %550 = arith.addf %549, %548 : vector<2x32xf32>
    %551 = arith.divf %549, %550 : vector<2x32xf32>
    %552 = vector.extract_strided_slice %540 {offsets = [0, 32], sizes = [2, 32], strides = [1, 1]} : vector<2x96xf32> to vector<2x32xf32>
    %553 = vector.extract_strided_slice %543 {offsets = [0, 32], sizes = [2, 32], strides = [1, 1]} : vector<2x96xf32> to vector<2x32xf32>
    %554 = arith.addf %552, %553 : vector<2x32xf32>
    %555 = arith.negf %554 : vector<2x32xf32>
    %556 = math.exp %555 : vector<2x32xf32>
    %cst_101 = arith.constant 1.000000e+00 : f32
    %557 = vector.broadcast %cst_101 : f32 to vector<2x32xf32>
    %558 = arith.addf %557, %556 : vector<2x32xf32>
    %559 = arith.divf %557, %558 : vector<2x32xf32>
    %560 = vector.extract_strided_slice %540 {offsets = [0, 64], sizes = [2, 32], strides = [1, 1]} : vector<2x96xf32> to vector<2x32xf32>
    %561 = vector.extract_strided_slice %543 {offsets = [0, 64], sizes = [2, 32], strides = [1, 1]} : vector<2x96xf32> to vector<2x32xf32>
    %562 = arith.mulf %551, %561 : vector<2x32xf32>
    %563 = arith.addf %560, %562 : vector<2x32xf32>
    %564 = math.tanh %563 : vector<2x32xf32>
    %cst_102 = arith.constant 1.000000e+00 : f32
    %565 = vector.broadcast %cst_102 : f32 to vector<2x32xf32>
    %566 = arith.subf %565, %559 : vector<2x32xf32>
    %567 = arith.mulf %566, %564 : vector<2x32xf32>
    %568 = arith.mulf %559, %539 : vector<2x32xf32>
    %569 = arith.addf %567, %568 : vector<2x32xf32>
    %570 = vector.extract_strided_slice %388 {offsets = [12, 0], sizes = [2, 96], strides = [1, 1]} : vector<24x96xf32> to vector<2x96xf32>
    %cst_103 = arith.constant dense<0.000000e+00> : vector<2x96xf32>
    %571 = tpu.matmul %569, %383, %cst_103 {dimension_numbers = #tpu.dot_dimension_numbers<[1], [0], [0], [1], [0, 0, 1, 1], [], []>} : vector<2x32xf32>, vector<32x96xf32>, vector<2x96xf32> -> vector<2x96xf32>
    %572 = vector.broadcast %385 : vector<1x96xf32> to vector<2x96xf32>
    %573 = arith.addf %571, %572 : vector<2x96xf32>
    %574 = vector.extract_strided_slice %570 {offsets = [0, 0], sizes = [2, 32], strides = [1, 1]} : vector<2x96xf32> to vector<2x32xf32>
    %575 = vector.extract_strided_slice %573 {offsets = [0, 0], sizes = [2, 32], strides = [1, 1]} : vector<2x96xf32> to vector<2x32xf32>
    %576 = arith.addf %574, %575 : vector<2x32xf32>
    %577 = arith.negf %576 : vector<2x32xf32>
    %578 = math.exp %577 : vector<2x32xf32>
    %cst_104 = arith.constant 1.000000e+00 : f32
    %579 = vector.broadcast %cst_104 : f32 to vector<2x32xf32>
    %580 = arith.addf %579, %578 : vector<2x32xf32>
    %581 = arith.divf %579, %580 : vector<2x32xf32>
    %582 = vector.extract_strided_slice %570 {offsets = [0, 32], sizes = [2, 32], strides = [1, 1]} : vector<2x96xf32> to vector<2x32xf32>
    %583 = vector.extract_strided_slice %573 {offsets = [0, 32], sizes = [2, 32], strides = [1, 1]} : vector<2x96xf32> to vector<2x32xf32>
    %584 = arith.addf %582, %583 : vector<2x32xf32>
    %585 = arith.negf %584 : vector<2x32xf32>
    %586 = math.exp %585 : vector<2x32xf32>
    %cst_105 = arith.constant 1.000000e+00 : f32
    %587 = vector.broadcast %cst_105 : f32 to vector<2x32xf32>
    %588 = arith.addf %587, %586 : vector<2x32xf32>
    %589 = arith.divf %587, %588 : vector<2x32xf32>
    %590 = vector.extract_strided_slice %570 {offsets = [0, 64], sizes = [2, 32], strides = [1, 1]} : vector<2x96xf32> to vector<2x32xf32>
    %591 = vector.extract_strided_slice %573 {offsets = [0, 64], sizes = [2, 32], strides = [1, 1]} : vector<2x96xf32> to vector<2x32xf32>
    %592 = arith.mulf %581, %591 : vector<2x32xf32>
    %593 = arith.addf %590, %592 : vector<2x32xf32>
    %594 = math.tanh %593 : vector<2x32xf32>
    %cst_106 = arith.constant 1.000000e+00 : f32
    %595 = vector.broadcast %cst_106 : f32 to vector<2x32xf32>
    %596 = arith.subf %595, %589 : vector<2x32xf32>
    %597 = arith.mulf %596, %594 : vector<2x32xf32>
    %598 = arith.mulf %589, %569 : vector<2x32xf32>
    %599 = arith.addf %597, %598 : vector<2x32xf32>
    %600 = vector.extract_strided_slice %388 {offsets = [14, 0], sizes = [2, 96], strides = [1, 1]} : vector<24x96xf32> to vector<2x96xf32>
    %cst_107 = arith.constant dense<0.000000e+00> : vector<2x96xf32>
    %601 = tpu.matmul %599, %383, %cst_107 {dimension_numbers = #tpu.dot_dimension_numbers<[1], [0], [0], [1], [0, 0, 1, 1], [], []>} : vector<2x32xf32>, vector<32x96xf32>, vector<2x96xf32> -> vector<2x96xf32>
    %602 = vector.broadcast %385 : vector<1x96xf32> to vector<2x96xf32>
    %603 = arith.addf %601, %602 : vector<2x96xf32>
    %604 = vector.extract_strided_slice %600 {offsets = [0, 0], sizes = [2, 32], strides = [1, 1]} : vector<2x96xf32> to vector<2x32xf32>
    %605 = vector.extract_strided_slice %603 {offsets = [0, 0], sizes = [2, 32], strides = [1, 1]} : vector<2x96xf32> to vector<2x32xf32>
    %606 = arith.addf %604, %605 : vector<2x32xf32>
    %607 = arith.negf %606 : vector<2x32xf32>
    %608 = math.exp %607 : vector<2x32xf32>
    %cst_108 = arith.constant 1.000000e+00 : f32
    %609 = vector.broadcast %cst_108 : f32 to vector<2x32xf32>
    %610 = arith.addf %609, %608 : vector<2x32xf32>
    %611 = arith.divf %609, %610 : vector<2x32xf32>
    %612 = vector.extract_strided_slice %600 {offsets = [0, 32], sizes = [2, 32], strides = [1, 1]} : vector<2x96xf32> to vector<2x32xf32>
    %613 = vector.extract_strided_slice %603 {offsets = [0, 32], sizes = [2, 32], strides = [1, 1]} : vector<2x96xf32> to vector<2x32xf32>
    %614 = arith.addf %612, %613 : vector<2x32xf32>
    %615 = arith.negf %614 : vector<2x32xf32>
    %616 = math.exp %615 : vector<2x32xf32>
    %cst_109 = arith.constant 1.000000e+00 : f32
    %617 = vector.broadcast %cst_109 : f32 to vector<2x32xf32>
    %618 = arith.addf %617, %616 : vector<2x32xf32>
    %619 = arith.divf %617, %618 : vector<2x32xf32>
    %620 = vector.extract_strided_slice %600 {offsets = [0, 64], sizes = [2, 32], strides = [1, 1]} : vector<2x96xf32> to vector<2x32xf32>
    %621 = vector.extract_strided_slice %603 {offsets = [0, 64], sizes = [2, 32], strides = [1, 1]} : vector<2x96xf32> to vector<2x32xf32>
    %622 = arith.mulf %611, %621 : vector<2x32xf32>
    %623 = arith.addf %620, %622 : vector<2x32xf32>
    %624 = math.tanh %623 : vector<2x32xf32>
    %cst_110 = arith.constant 1.000000e+00 : f32
    %625 = vector.broadcast %cst_110 : f32 to vector<2x32xf32>
    %626 = arith.subf %625, %619 : vector<2x32xf32>
    %627 = arith.mulf %626, %624 : vector<2x32xf32>
    %628 = arith.mulf %619, %599 : vector<2x32xf32>
    %629 = arith.addf %627, %628 : vector<2x32xf32>
    %630 = vector.extract_strided_slice %388 {offsets = [16, 0], sizes = [2, 96], strides = [1, 1]} : vector<24x96xf32> to vector<2x96xf32>
    %cst_111 = arith.constant dense<0.000000e+00> : vector<2x96xf32>
    %631 = tpu.matmul %629, %383, %cst_111 {dimension_numbers = #tpu.dot_dimension_numbers<[1], [0], [0], [1], [0, 0, 1, 1], [], []>} : vector<2x32xf32>, vector<32x96xf32>, vector<2x96xf32> -> vector<2x96xf32>
    %632 = vector.broadcast %385 : vector<1x96xf32> to vector<2x96xf32>
    %633 = arith.addf %631, %632 : vector<2x96xf32>
    %634 = vector.extract_strided_slice %630 {offsets = [0, 0], sizes = [2, 32], strides = [1, 1]} : vector<2x96xf32> to vector<2x32xf32>
    %635 = vector.extract_strided_slice %633 {offsets = [0, 0], sizes = [2, 32], strides = [1, 1]} : vector<2x96xf32> to vector<2x32xf32>
    %636 = arith.addf %634, %635 : vector<2x32xf32>
    %637 = arith.negf %636 : vector<2x32xf32>
    %638 = math.exp %637 : vector<2x32xf32>
    %cst_112 = arith.constant 1.000000e+00 : f32
    %639 = vector.broadcast %cst_112 : f32 to vector<2x32xf32>
    %640 = arith.addf %639, %638 : vector<2x32xf32>
    %641 = arith.divf %639, %640 : vector<2x32xf32>
    %642 = vector.extract_strided_slice %630 {offsets = [0, 32], sizes = [2, 32], strides = [1, 1]} : vector<2x96xf32> to vector<2x32xf32>
    %643 = vector.extract_strided_slice %633 {offsets = [0, 32], sizes = [2, 32], strides = [1, 1]} : vector<2x96xf32> to vector<2x32xf32>
    %644 = arith.addf %642, %643 : vector<2x32xf32>
    %645 = arith.negf %644 : vector<2x32xf32>
    %646 = math.exp %645 : vector<2x32xf32>
    %cst_113 = arith.constant 1.000000e+00 : f32
    %647 = vector.broadcast %cst_113 : f32 to vector<2x32xf32>
    %648 = arith.addf %647, %646 : vector<2x32xf32>
    %649 = arith.divf %647, %648 : vector<2x32xf32>
    %650 = vector.extract_strided_slice %630 {offsets = [0, 64], sizes = [2, 32], strides = [1, 1]} : vector<2x96xf32> to vector<2x32xf32>
    %651 = vector.extract_strided_slice %633 {offsets = [0, 64], sizes = [2, 32], strides = [1, 1]} : vector<2x96xf32> to vector<2x32xf32>
    %652 = arith.mulf %641, %651 : vector<2x32xf32>
    %653 = arith.addf %650, %652 : vector<2x32xf32>
    %654 = math.tanh %653 : vector<2x32xf32>
    %cst_114 = arith.constant 1.000000e+00 : f32
    %655 = vector.broadcast %cst_114 : f32 to vector<2x32xf32>
    %656 = arith.subf %655, %649 : vector<2x32xf32>
    %657 = arith.mulf %656, %654 : vector<2x32xf32>
    %658 = arith.mulf %649, %629 : vector<2x32xf32>
    %659 = arith.addf %657, %658 : vector<2x32xf32>
    %660 = vector.extract_strided_slice %388 {offsets = [18, 0], sizes = [2, 96], strides = [1, 1]} : vector<24x96xf32> to vector<2x96xf32>
    %cst_115 = arith.constant dense<0.000000e+00> : vector<2x96xf32>
    %661 = tpu.matmul %659, %383, %cst_115 {dimension_numbers = #tpu.dot_dimension_numbers<[1], [0], [0], [1], [0, 0, 1, 1], [], []>} : vector<2x32xf32>, vector<32x96xf32>, vector<2x96xf32> -> vector<2x96xf32>
    %662 = vector.broadcast %385 : vector<1x96xf32> to vector<2x96xf32>
    %663 = arith.addf %661, %662 : vector<2x96xf32>
    %664 = vector.extract_strided_slice %660 {offsets = [0, 0], sizes = [2, 32], strides = [1, 1]} : vector<2x96xf32> to vector<2x32xf32>
    %665 = vector.extract_strided_slice %663 {offsets = [0, 0], sizes = [2, 32], strides = [1, 1]} : vector<2x96xf32> to vector<2x32xf32>
    %666 = arith.addf %664, %665 : vector<2x32xf32>
    %667 = arith.negf %666 : vector<2x32xf32>
    %668 = math.exp %667 : vector<2x32xf32>
    %cst_116 = arith.constant 1.000000e+00 : f32
    %669 = vector.broadcast %cst_116 : f32 to vector<2x32xf32>
    %670 = arith.addf %669, %668 : vector<2x32xf32>
    %671 = arith.divf %669, %670 : vector<2x32xf32>
    %672 = vector.extract_strided_slice %660 {offsets = [0, 32], sizes = [2, 32], strides = [1, 1]} : vector<2x96xf32> to vector<2x32xf32>
    %673 = vector.extract_strided_slice %663 {offsets = [0, 32], sizes = [2, 32], strides = [1, 1]} : vector<2x96xf32> to vector<2x32xf32>
    %674 = arith.addf %672, %673 : vector<2x32xf32>
    %675 = arith.negf %674 : vector<2x32xf32>
    %676 = math.exp %675 : vector<2x32xf32>
    %cst_117 = arith.constant 1.000000e+00 : f32
    %677 = vector.broadcast %cst_117 : f32 to vector<2x32xf32>
    %678 = arith.addf %677, %676 : vector<2x32xf32>
    %679 = arith.divf %677, %678 : vector<2x32xf32>
    %680 = vector.extract_strided_slice %660 {offsets = [0, 64], sizes = [2, 32], strides = [1, 1]} : vector<2x96xf32> to vector<2x32xf32>
    %681 = vector.extract_strided_slice %663 {offsets = [0, 64], sizes = [2, 32], strides = [1, 1]} : vector<2x96xf32> to vector<2x32xf32>
    %682 = arith.mulf %671, %681 : vector<2x32xf32>
    %683 = arith.addf %680, %682 : vector<2x32xf32>
    %684 = math.tanh %683 : vector<2x32xf32>
    %cst_118 = arith.constant 1.000000e+00 : f32
    %685 = vector.broadcast %cst_118 : f32 to vector<2x32xf32>
    %686 = arith.subf %685, %679 : vector<2x32xf32>
    %687 = arith.mulf %686, %684 : vector<2x32xf32>
    %688 = arith.mulf %679, %659 : vector<2x32xf32>
    %689 = arith.addf %687, %688 : vector<2x32xf32>
    %690 = vector.extract_strided_slice %388 {offsets = [20, 0], sizes = [2, 96], strides = [1, 1]} : vector<24x96xf32> to vector<2x96xf32>
    %cst_119 = arith.constant dense<0.000000e+00> : vector<2x96xf32>
    %691 = tpu.matmul %689, %383, %cst_119 {dimension_numbers = #tpu.dot_dimension_numbers<[1], [0], [0], [1], [0, 0, 1, 1], [], []>} : vector<2x32xf32>, vector<32x96xf32>, vector<2x96xf32> -> vector<2x96xf32>
    %692 = vector.broadcast %385 : vector<1x96xf32> to vector<2x96xf32>
    %693 = arith.addf %691, %692 : vector<2x96xf32>
    %694 = vector.extract_strided_slice %690 {offsets = [0, 0], sizes = [2, 32], strides = [1, 1]} : vector<2x96xf32> to vector<2x32xf32>
    %695 = vector.extract_strided_slice %693 {offsets = [0, 0], sizes = [2, 32], strides = [1, 1]} : vector<2x96xf32> to vector<2x32xf32>
    %696 = arith.addf %694, %695 : vector<2x32xf32>
    %697 = arith.negf %696 : vector<2x32xf32>
    %698 = math.exp %697 : vector<2x32xf32>
    %cst_120 = arith.constant 1.000000e+00 : f32
    %699 = vector.broadcast %cst_120 : f32 to vector<2x32xf32>
    %700 = arith.addf %699, %698 : vector<2x32xf32>
    %701 = arith.divf %699, %700 : vector<2x32xf32>
    %702 = vector.extract_strided_slice %690 {offsets = [0, 32], sizes = [2, 32], strides = [1, 1]} : vector<2x96xf32> to vector<2x32xf32>
    %703 = vector.extract_strided_slice %693 {offsets = [0, 32], sizes = [2, 32], strides = [1, 1]} : vector<2x96xf32> to vector<2x32xf32>
    %704 = arith.addf %702, %703 : vector<2x32xf32>
    %705 = arith.negf %704 : vector<2x32xf32>
    %706 = math.exp %705 : vector<2x32xf32>
    %cst_121 = arith.constant 1.000000e+00 : f32
    %707 = vector.broadcast %cst_121 : f32 to vector<2x32xf32>
    %708 = arith.addf %707, %706 : vector<2x32xf32>
    %709 = arith.divf %707, %708 : vector<2x32xf32>
    %710 = vector.extract_strided_slice %690 {offsets = [0, 64], sizes = [2, 32], strides = [1, 1]} : vector<2x96xf32> to vector<2x32xf32>
    %711 = vector.extract_strided_slice %693 {offsets = [0, 64], sizes = [2, 32], strides = [1, 1]} : vector<2x96xf32> to vector<2x32xf32>
    %712 = arith.mulf %701, %711 : vector<2x32xf32>
    %713 = arith.addf %710, %712 : vector<2x32xf32>
    %714 = math.tanh %713 : vector<2x32xf32>
    %cst_122 = arith.constant 1.000000e+00 : f32
    %715 = vector.broadcast %cst_122 : f32 to vector<2x32xf32>
    %716 = arith.subf %715, %709 : vector<2x32xf32>
    %717 = arith.mulf %716, %714 : vector<2x32xf32>
    %718 = arith.mulf %709, %689 : vector<2x32xf32>
    %719 = arith.addf %717, %718 : vector<2x32xf32>
    %720 = vector.extract_strided_slice %388 {offsets = [22, 0], sizes = [2, 96], strides = [1, 1]} : vector<24x96xf32> to vector<2x96xf32>
    %cst_123 = arith.constant dense<0.000000e+00> : vector<2x96xf32>
    %721 = tpu.matmul %719, %383, %cst_123 {dimension_numbers = #tpu.dot_dimension_numbers<[1], [0], [0], [1], [0, 0, 1, 1], [], []>} : vector<2x32xf32>, vector<32x96xf32>, vector<2x96xf32> -> vector<2x96xf32>
    %722 = vector.broadcast %385 : vector<1x96xf32> to vector<2x96xf32>
    %723 = arith.addf %721, %722 : vector<2x96xf32>
    %724 = vector.extract_strided_slice %720 {offsets = [0, 0], sizes = [2, 32], strides = [1, 1]} : vector<2x96xf32> to vector<2x32xf32>
    %725 = vector.extract_strided_slice %723 {offsets = [0, 0], sizes = [2, 32], strides = [1, 1]} : vector<2x96xf32> to vector<2x32xf32>
    %726 = arith.addf %724, %725 : vector<2x32xf32>
    %727 = arith.negf %726 : vector<2x32xf32>
    %728 = math.exp %727 : vector<2x32xf32>
    %cst_124 = arith.constant 1.000000e+00 : f32
    %729 = vector.broadcast %cst_124 : f32 to vector<2x32xf32>
    %730 = arith.addf %729, %728 : vector<2x32xf32>
    %731 = arith.divf %729, %730 : vector<2x32xf32>
    %732 = vector.extract_strided_slice %720 {offsets = [0, 32], sizes = [2, 32], strides = [1, 1]} : vector<2x96xf32> to vector<2x32xf32>
    %733 = vector.extract_strided_slice %723 {offsets = [0, 32], sizes = [2, 32], strides = [1, 1]} : vector<2x96xf32> to vector<2x32xf32>
    %734 = arith.addf %732, %733 : vector<2x32xf32>
    %735 = arith.negf %734 : vector<2x32xf32>
    %736 = math.exp %735 : vector<2x32xf32>
    %cst_125 = arith.constant 1.000000e+00 : f32
    %737 = vector.broadcast %cst_125 : f32 to vector<2x32xf32>
    %738 = arith.addf %737, %736 : vector<2x32xf32>
    %739 = arith.divf %737, %738 : vector<2x32xf32>
    %740 = vector.extract_strided_slice %720 {offsets = [0, 64], sizes = [2, 32], strides = [1, 1]} : vector<2x96xf32> to vector<2x32xf32>
    %741 = vector.extract_strided_slice %723 {offsets = [0, 64], sizes = [2, 32], strides = [1, 1]} : vector<2x96xf32> to vector<2x32xf32>
    %742 = arith.mulf %731, %741 : vector<2x32xf32>
    %743 = arith.addf %740, %742 : vector<2x32xf32>
    %744 = math.tanh %743 : vector<2x32xf32>
    %cst_126 = arith.constant 1.000000e+00 : f32
    %745 = vector.broadcast %cst_126 : f32 to vector<2x32xf32>
    %746 = arith.subf %745, %739 : vector<2x32xf32>
    %747 = arith.mulf %746, %744 : vector<2x32xf32>
    %748 = arith.mulf %739, %719 : vector<2x32xf32>
    %749 = arith.addf %747, %748 : vector<2x32xf32>
    %c0_127 = arith.constant 0 : index
    %c0_128 = arith.constant 0 : index
    %750 = vector.load %arg6[%c0_127, %c0_128] : memref<41x16xf32, #tpu.memory_space<vmem>>, vector<8x16xf32>
    %c8_129 = arith.constant 8 : index
    %c0_130 = arith.constant 0 : index
    %751 = vector.load %arg6[%c8_129, %c0_130] : memref<41x16xf32, #tpu.memory_space<vmem>>, vector<32x16xf32>
    %c40_131 = arith.constant 40 : index
    %c0_132 = arith.constant 0 : index
    %752 = vector.load %arg6[%c40_131, %c0_132] : memref<41x16xf32, #tpu.memory_space<vmem>>, vector<1x16xf32>
    %c0_133 = arith.constant 0 : index
    %c0_134 = arith.constant 0 : index
    %753 = vector.load %arg7[%c0_133, %c0_134] : memref<41x8xf32, #tpu.memory_space<vmem>>, vector<8x8xf32>
    %c8_135 = arith.constant 8 : index
    %c0_136 = arith.constant 0 : index
    %754 = vector.load %arg7[%c8_135, %c0_136] : memref<41x8xf32, #tpu.memory_space<vmem>>, vector<32x8xf32>
    %c40_137 = arith.constant 40 : index
    %c0_138 = arith.constant 0 : index
    %755 = vector.load %arg7[%c40_137, %c0_138] : memref<41x8xf32, #tpu.memory_space<vmem>>, vector<1x8xf32>
    %c0_139 = arith.constant 0 : index
    %c0_140 = arith.constant 0 : index
    %756 = vector.load %arg8[%c0_139, %c0_140] : memref<33x8xf32, #tpu.memory_space<vmem>>, vector<32x8xf32>
    %c32 = arith.constant 32 : index
    %c0_141 = arith.constant 0 : index
    %757 = vector.load %arg8[%c32, %c0_141] : memref<33x8xf32, #tpu.memory_space<vmem>>, vector<1x8xf32>
    %c0_142 = arith.constant 0 : index
    %c0_143 = arith.constant 0 : index
    %758 = vector.load %arg4[%c0_142, %c0_143] : memref<104x96xf32, #tpu.memory_space<vmem>>, vector<8x96xf32>
    %c8_144 = arith.constant 8 : index
    %c0_145 = arith.constant 0 : index
    %759 = vector.load %arg4[%c8_144, %c0_145] : memref<104x96xf32, #tpu.memory_space<vmem>>, vector<32x96xf32>
    %c0_146 = arith.constant 0 : index
    %c0_147 = arith.constant 0 : index
    %760 = vector.load %arg5[%c0_146, %c0_147] : memref<4x96xf32, #tpu.memory_space<vmem>>, vector<1x96xf32>
    %c1_148 = arith.constant 1 : index
    %c0_149 = arith.constant 0 : index
    %761 = vector.load %arg5[%c1_148, %c0_149] : memref<4x96xf32, #tpu.memory_space<vmem>>, vector<1x96xf32>
    %c40_150 = arith.constant 40 : index
    %c0_151 = arith.constant 0 : index
    %762 = vector.load %arg4[%c40_150, %c0_151] : memref<104x96xf32, #tpu.memory_space<vmem>>, vector<32x96xf32>
    %c72_152 = arith.constant 72 : index
    %c0_153 = arith.constant 0 : index
    %763 = vector.load %arg4[%c72_152, %c0_153] : memref<104x96xf32, #tpu.memory_space<vmem>>, vector<32x96xf32>
    %c2_154 = arith.constant 2 : index
    %c0_155 = arith.constant 0 : index
    %764 = vector.load %arg5[%c2_154, %c0_155] : memref<4x96xf32, #tpu.memory_space<vmem>>, vector<1x96xf32>
    %c3_156 = arith.constant 3 : index
    %c0_157 = arith.constant 0 : index
    %765 = vector.load %arg5[%c3_156, %c0_157] : memref<4x96xf32, #tpu.memory_space<vmem>>, vector<1x96xf32>
    %c0_158 = arith.constant 0 : index
    %c0_159 = arith.constant 0 : index
    %c0_160 = arith.constant 0 : index
    %766 = vector.load %arg1[%c0_158, %c0_159, %c0_160] : memref<4x2x8xf32, #tpu.memory_space<vmem>>, vector<1x2x8xf32>
    %767 = vector.shape_cast %766 : vector<1x2x8xf32> to vector<2x8xf32>
    %cst_161 = arith.constant dense<0.000000e+00> : vector<2x16xf32>
    %768 = tpu.matmul %767, %750, %cst_161 {dimension_numbers = #tpu.dot_dimension_numbers<[1], [0], [0], [1], [0, 0, 1, 1], [], []>} : vector<2x8xf32>, vector<8x16xf32>, vector<2x16xf32> -> vector<2x16xf32>
    %cst_162 = arith.constant dense<0.000000e+00> : vector<2x16xf32>
    %769 = tpu.matmul %749, %751, %cst_162 {dimension_numbers = #tpu.dot_dimension_numbers<[1], [0], [0], [1], [0, 0, 1, 1], [], []>} : vector<2x32xf32>, vector<32x16xf32>, vector<2x16xf32> -> vector<2x16xf32>
    %770 = arith.addf %768, %769 : vector<2x16xf32>
    %771 = vector.broadcast %752 : vector<1x16xf32> to vector<2x16xf32>
    %772 = arith.addf %770, %771 : vector<2x16xf32>
    %cst_163 = arith.constant dense<0xFF800000> : vector<2xf32>
    %773 = vector.multi_reduction <maximumf>, %772, %cst_163 [1] : vector<2x16xf32> to vector<2xf32>
    %774 = vector.shape_cast %773 : vector<2xf32> to vector<2x1xf32>
    %775 = vector.broadcast %774 : vector<2x1xf32> to vector<2x16xf32>
    %776 = arith.subf %772, %775 : vector<2x16xf32>
    %777 = math.exp %776 : vector<2x16xf32>
    %cst_164 = arith.constant dense<0.000000e+00> : vector<2xf32>
    %778 = vector.multi_reduction <add>, %777, %cst_164 [1] : vector<2x16xf32> to vector<2xf32>
    %779 = vector.shape_cast %778 : vector<2xf32> to vector<2x1xf32>
    %780 = tpu.reciprocal %779 {approx = true} : vector<2x1xf32> -> vector<2x1xf32>
    %781 = vector.broadcast %780 : vector<2x1xf32> to vector<2x16xf32>
    %782 = arith.mulf %777, %781 : vector<2x16xf32>
    %783 = vector.extract_strided_slice %782 {offsets = [0, 0], sizes = [2, 12], strides = [1, 1]} : vector<2x16xf32> to vector<2x12xf32>
    %cst_165 = arith.constant dense<0.000000e+00> : vector<2xf32>
    %784 = vector.multi_reduction <add>, %783, %cst_165 [1] : vector<2x12xf32> to vector<2xf32>
    %785 = vector.shape_cast %784 : vector<2xf32> to vector<2x1xf32>
    %cst_166 = arith.constant 9.99999974E-6 : f32
    %786 = vector.broadcast %cst_166 : f32 to vector<2x1xf32>
    %787 = arith.addf %785, %786 : vector<2x1xf32>
    %788 = tpu.reciprocal %787 {approx = true} : vector<2x1xf32> -> vector<2x1xf32>
    %789 = vector.broadcast %788 : vector<2x1xf32> to vector<2x12xf32>
    %790 = arith.mulf %783, %789 : vector<2x12xf32>
    %791 = vector.extract_strided_slice %790 {offsets = [0, 11], sizes = [2, 1], strides = [1, 1]} : vector<2x12xf32> to vector<2x1xf32>
    %792 = vector.broadcast %791 : vector<2x1xf32> to vector<2x32xf32>
    %793 = arith.mulf %792, %419 : vector<2x32xf32>
    %794 = vector.extract_strided_slice %790 {offsets = [0, 10], sizes = [2, 1], strides = [1, 1]} : vector<2x12xf32> to vector<2x1xf32>
    %795 = vector.broadcast %794 : vector<2x1xf32> to vector<2x32xf32>
    %796 = arith.mulf %795, %449 : vector<2x32xf32>
    %797 = arith.addf %793, %796 : vector<2x32xf32>
    %798 = vector.extract_strided_slice %790 {offsets = [0, 9], sizes = [2, 1], strides = [1, 1]} : vector<2x12xf32> to vector<2x1xf32>
    %799 = vector.broadcast %798 : vector<2x1xf32> to vector<2x32xf32>
    %800 = arith.mulf %799, %479 : vector<2x32xf32>
    %801 = arith.addf %797, %800 : vector<2x32xf32>
    %802 = vector.extract_strided_slice %790 {offsets = [0, 8], sizes = [2, 1], strides = [1, 1]} : vector<2x12xf32> to vector<2x1xf32>
    %803 = vector.broadcast %802 : vector<2x1xf32> to vector<2x32xf32>
    %804 = arith.mulf %803, %509 : vector<2x32xf32>
    %805 = arith.addf %801, %804 : vector<2x32xf32>
    %806 = vector.extract_strided_slice %790 {offsets = [0, 7], sizes = [2, 1], strides = [1, 1]} : vector<2x12xf32> to vector<2x1xf32>
    %807 = vector.broadcast %806 : vector<2x1xf32> to vector<2x32xf32>
    %808 = arith.mulf %807, %539 : vector<2x32xf32>
    %809 = arith.addf %805, %808 : vector<2x32xf32>
    %810 = vector.extract_strided_slice %790 {offsets = [0, 6], sizes = [2, 1], strides = [1, 1]} : vector<2x12xf32> to vector<2x1xf32>
    %811 = vector.broadcast %810 : vector<2x1xf32> to vector<2x32xf32>
    %812 = arith.mulf %811, %569 : vector<2x32xf32>
    %813 = arith.addf %809, %812 : vector<2x32xf32>
    %814 = vector.extract_strided_slice %790 {offsets = [0, 5], sizes = [2, 1], strides = [1, 1]} : vector<2x12xf32> to vector<2x1xf32>
    %815 = vector.broadcast %814 : vector<2x1xf32> to vector<2x32xf32>
    %816 = arith.mulf %815, %599 : vector<2x32xf32>
    %817 = arith.addf %813, %816 : vector<2x32xf32>
    %818 = vector.extract_strided_slice %790 {offsets = [0, 4], sizes = [2, 1], strides = [1, 1]} : vector<2x12xf32> to vector<2x1xf32>
    %819 = vector.broadcast %818 : vector<2x1xf32> to vector<2x32xf32>
    %820 = arith.mulf %819, %629 : vector<2x32xf32>
    %821 = arith.addf %817, %820 : vector<2x32xf32>
    %822 = vector.extract_strided_slice %790 {offsets = [0, 3], sizes = [2, 1], strides = [1, 1]} : vector<2x12xf32> to vector<2x1xf32>
    %823 = vector.broadcast %822 : vector<2x1xf32> to vector<2x32xf32>
    %824 = arith.mulf %823, %659 : vector<2x32xf32>
    %825 = arith.addf %821, %824 : vector<2x32xf32>
    %826 = vector.extract_strided_slice %790 {offsets = [0, 2], sizes = [2, 1], strides = [1, 1]} : vector<2x12xf32> to vector<2x1xf32>
    %827 = vector.broadcast %826 : vector<2x1xf32> to vector<2x32xf32>
    %828 = arith.mulf %827, %689 : vector<2x32xf32>
    %829 = arith.addf %825, %828 : vector<2x32xf32>
    %830 = vector.extract_strided_slice %790 {offsets = [0, 1], sizes = [2, 1], strides = [1, 1]} : vector<2x12xf32> to vector<2x1xf32>
    %831 = vector.broadcast %830 : vector<2x1xf32> to vector<2x32xf32>
    %832 = arith.mulf %831, %719 : vector<2x32xf32>
    %833 = arith.addf %829, %832 : vector<2x32xf32>
    %834 = vector.extract_strided_slice %790 {offsets = [0, 0], sizes = [2, 1], strides = [1, 1]} : vector<2x12xf32> to vector<2x1xf32>
    %835 = vector.broadcast %834 : vector<2x1xf32> to vector<2x32xf32>
    %836 = arith.mulf %835, %749 : vector<2x32xf32>
    %837 = arith.addf %833, %836 : vector<2x32xf32>
    %cst_167 = arith.constant dense<0.000000e+00> : vector<2x8xf32>
    %838 = tpu.matmul %767, %753, %cst_167 {dimension_numbers = #tpu.dot_dimension_numbers<[1], [0], [0], [1], [0, 0, 1, 1], [], []>} : vector<2x8xf32>, vector<8x8xf32>, vector<2x8xf32> -> vector<2x8xf32>
    %cst_168 = arith.constant dense<0.000000e+00> : vector<2x8xf32>
    %839 = tpu.matmul %837, %754, %cst_168 {dimension_numbers = #tpu.dot_dimension_numbers<[1], [0], [0], [1], [0, 0, 1, 1], [], []>} : vector<2x32xf32>, vector<32x8xf32>, vector<2x8xf32> -> vector<2x8xf32>
    %840 = arith.addf %838, %839 : vector<2x8xf32>
    %841 = vector.broadcast %755 : vector<1x8xf32> to vector<2x8xf32>
    %842 = arith.addf %840, %841 : vector<2x8xf32>
    %cst_169 = arith.constant 0.000000e+00 : f32
    %843 = vector.broadcast %cst_169 : f32 to vector<2x8xf32>
    %844 = arith.maximumf %842, %843 : vector<2x8xf32>
    %cst_170 = arith.constant dense<0.000000e+00> : vector<2x96xf32>
    %845 = tpu.matmul %844, %758, %cst_170 {dimension_numbers = #tpu.dot_dimension_numbers<[1], [0], [0], [1], [0, 0, 1, 1], [], []>} : vector<2x8xf32>, vector<8x96xf32>, vector<2x96xf32> -> vector<2x96xf32>
    %846 = vector.broadcast %760 : vector<1x96xf32> to vector<2x96xf32>
    %847 = arith.addf %845, %846 : vector<2x96xf32>
    %cst_171 = arith.constant dense<0.000000e+00> : vector<2x96xf32>
    %848 = tpu.matmul %379, %759, %cst_171 {dimension_numbers = #tpu.dot_dimension_numbers<[1], [0], [0], [1], [0, 0, 1, 1], [], []>} : vector<2x32xf32>, vector<32x96xf32>, vector<2x96xf32> -> vector<2x96xf32>
    %849 = vector.broadcast %761 : vector<1x96xf32> to vector<2x96xf32>
    %850 = arith.addf %848, %849 : vector<2x96xf32>
    %851 = vector.extract_strided_slice %847 {offsets = [0, 0], sizes = [2, 32], strides = [1, 1]} : vector<2x96xf32> to vector<2x32xf32>
    %852 = vector.extract_strided_slice %850 {offsets = [0, 0], sizes = [2, 32], strides = [1, 1]} : vector<2x96xf32> to vector<2x32xf32>
    %853 = arith.addf %851, %852 : vector<2x32xf32>
    %854 = arith.negf %853 : vector<2x32xf32>
    %855 = math.exp %854 : vector<2x32xf32>
    %cst_172 = arith.constant 1.000000e+00 : f32
    %856 = vector.broadcast %cst_172 : f32 to vector<2x32xf32>
    %857 = arith.addf %856, %855 : vector<2x32xf32>
    %858 = arith.divf %856, %857 : vector<2x32xf32>
    %859 = vector.extract_strided_slice %847 {offsets = [0, 32], sizes = [2, 32], strides = [1, 1]} : vector<2x96xf32> to vector<2x32xf32>
    %860 = vector.extract_strided_slice %850 {offsets = [0, 32], sizes = [2, 32], strides = [1, 1]} : vector<2x96xf32> to vector<2x32xf32>
    %861 = arith.addf %859, %860 : vector<2x32xf32>
    %862 = arith.negf %861 : vector<2x32xf32>
    %863 = math.exp %862 : vector<2x32xf32>
    %cst_173 = arith.constant 1.000000e+00 : f32
    %864 = vector.broadcast %cst_173 : f32 to vector<2x32xf32>
    %865 = arith.addf %864, %863 : vector<2x32xf32>
    %866 = arith.divf %864, %865 : vector<2x32xf32>
    %867 = vector.extract_strided_slice %847 {offsets = [0, 64], sizes = [2, 32], strides = [1, 1]} : vector<2x96xf32> to vector<2x32xf32>
    %868 = vector.extract_strided_slice %850 {offsets = [0, 64], sizes = [2, 32], strides = [1, 1]} : vector<2x96xf32> to vector<2x32xf32>
    %869 = arith.mulf %858, %868 : vector<2x32xf32>
    %870 = arith.addf %867, %869 : vector<2x32xf32>
    %871 = math.tanh %870 : vector<2x32xf32>
    %cst_174 = arith.constant 1.000000e+00 : f32
    %872 = vector.broadcast %cst_174 : f32 to vector<2x32xf32>
    %873 = arith.subf %872, %866 : vector<2x32xf32>
    %874 = arith.mulf %873, %871 : vector<2x32xf32>
    %875 = arith.mulf %866, %379 : vector<2x32xf32>
    %876 = arith.addf %874, %875 : vector<2x32xf32>
    %cst_175 = arith.constant dense<0.000000e+00> : vector<2x96xf32>
    %877 = tpu.matmul %876, %762, %cst_175 {dimension_numbers = #tpu.dot_dimension_numbers<[1], [0], [0], [1], [0, 0, 1, 1], [], []>} : vector<2x32xf32>, vector<32x96xf32>, vector<2x96xf32> -> vector<2x96xf32>
    %878 = vector.broadcast %764 : vector<1x96xf32> to vector<2x96xf32>
    %879 = arith.addf %877, %878 : vector<2x96xf32>
    %cst_176 = arith.constant dense<0.000000e+00> : vector<2x96xf32>
    %880 = tpu.matmul %749, %763, %cst_176 {dimension_numbers = #tpu.dot_dimension_numbers<[1], [0], [0], [1], [0, 0, 1, 1], [], []>} : vector<2x32xf32>, vector<32x96xf32>, vector<2x96xf32> -> vector<2x96xf32>
    %881 = vector.broadcast %765 : vector<1x96xf32> to vector<2x96xf32>
    %882 = arith.addf %880, %881 : vector<2x96xf32>
    %883 = vector.extract_strided_slice %879 {offsets = [0, 0], sizes = [2, 32], strides = [1, 1]} : vector<2x96xf32> to vector<2x32xf32>
    %884 = vector.extract_strided_slice %882 {offsets = [0, 0], sizes = [2, 32], strides = [1, 1]} : vector<2x96xf32> to vector<2x32xf32>
    %885 = arith.addf %883, %884 : vector<2x32xf32>
    %886 = arith.negf %885 : vector<2x32xf32>
    %887 = math.exp %886 : vector<2x32xf32>
    %cst_177 = arith.constant 1.000000e+00 : f32
    %888 = vector.broadcast %cst_177 : f32 to vector<2x32xf32>
    %889 = arith.addf %888, %887 : vector<2x32xf32>
    %890 = arith.divf %888, %889 : vector<2x32xf32>
    %891 = vector.extract_strided_slice %879 {offsets = [0, 32], sizes = [2, 32], strides = [1, 1]} : vector<2x96xf32> to vector<2x32xf32>
    %892 = vector.extract_strided_slice %882 {offsets = [0, 32], sizes = [2, 32], strides = [1, 1]} : vector<2x96xf32> to vector<2x32xf32>
    %893 = arith.addf %891, %892 : vector<2x32xf32>
    %894 = arith.negf %893 : vector<2x32xf32>
    %895 = math.exp %894 : vector<2x32xf32>
    %cst_178 = arith.constant 1.000000e+00 : f32
    %896 = vector.broadcast %cst_178 : f32 to vector<2x32xf32>
    %897 = arith.addf %896, %895 : vector<2x32xf32>
    %898 = arith.divf %896, %897 : vector<2x32xf32>
    %899 = vector.extract_strided_slice %879 {offsets = [0, 64], sizes = [2, 32], strides = [1, 1]} : vector<2x96xf32> to vector<2x32xf32>
    %900 = vector.extract_strided_slice %882 {offsets = [0, 64], sizes = [2, 32], strides = [1, 1]} : vector<2x96xf32> to vector<2x32xf32>
    %901 = arith.mulf %890, %900 : vector<2x32xf32>
    %902 = arith.addf %899, %901 : vector<2x32xf32>
    %903 = math.tanh %902 : vector<2x32xf32>
    %cst_179 = arith.constant 1.000000e+00 : f32
    %904 = vector.broadcast %cst_179 : f32 to vector<2x32xf32>
    %905 = arith.subf %904, %898 : vector<2x32xf32>
    %906 = arith.mulf %905, %903 : vector<2x32xf32>
    %907 = arith.mulf %898, %749 : vector<2x32xf32>
    %908 = arith.addf %906, %907 : vector<2x32xf32>
    %cst_180 = arith.constant dense<0.000000e+00> : vector<2x8xf32>
    %909 = tpu.matmul %908, %756, %cst_180 {dimension_numbers = #tpu.dot_dimension_numbers<[1], [0], [0], [1], [0, 0, 1, 1], [], []>} : vector<2x32xf32>, vector<32x8xf32>, vector<2x8xf32> -> vector<2x8xf32>
    %910 = vector.broadcast %757 : vector<1x8xf32> to vector<2x8xf32>
    %911 = arith.addf %909, %910 : vector<2x8xf32>
    %c0_181 = arith.constant 0 : index
    %c0_182 = arith.constant 0 : index
    %c0_183 = arith.constant 0 : index
    %912 = vector.load %arg9[%c0_181, %c0_182, %c0_183] : memref<4x2x8xf32, #tpu.memory_space<vmem>>, vector<1x2x8xf32>
    %913 = vector.shape_cast %912 : vector<1x2x8xf32> to vector<2x8xf32>
    %914 = vector.shape_cast %911 : vector<2x8xf32> to vector<1x2x8xf32>
    tpu.vector_store %arg9[%c0_181, %c0_182, %c0_183], %914 {strides = array<i32>} : memref<4x2x8xf32, #tpu.memory_space<vmem>>, vector<1x2x8xf32>,
    %c1_184 = arith.constant 1 : index
    %c0_185 = arith.constant 0 : index
    %c0_186 = arith.constant 0 : index
    %915 = vector.load %arg1[%c1_184, %c0_185, %c0_186] : memref<4x2x8xf32, #tpu.memory_space<vmem>>, vector<1x2x8xf32>
    %916 = vector.shape_cast %915 : vector<1x2x8xf32> to vector<2x8xf32>
    %cst_187 = arith.constant dense<0.000000e+00> : vector<2x16xf32>
    %917 = tpu.matmul %916, %750, %cst_187 {dimension_numbers = #tpu.dot_dimension_numbers<[1], [0], [0], [1], [0, 0, 1, 1], [], []>} : vector<2x8xf32>, vector<8x16xf32>, vector<2x16xf32> -> vector<2x16xf32>
    %cst_188 = arith.constant dense<0.000000e+00> : vector<2x16xf32>
    %918 = tpu.matmul %908, %751, %cst_188 {dimension_numbers = #tpu.dot_dimension_numbers<[1], [0], [0], [1], [0, 0, 1, 1], [], []>} : vector<2x32xf32>, vector<32x16xf32>, vector<2x16xf32> -> vector<2x16xf32>
    %919 = arith.addf %917, %918 : vector<2x16xf32>
    %920 = vector.broadcast %752 : vector<1x16xf32> to vector<2x16xf32>
    %921 = arith.addf %919, %920 : vector<2x16xf32>
    %cst_189 = arith.constant dense<0xFF800000> : vector<2xf32>
    %922 = vector.multi_reduction <maximumf>, %921, %cst_189 [1] : vector<2x16xf32> to vector<2xf32>
    %923 = vector.shape_cast %922 : vector<2xf32> to vector<2x1xf32>
    %924 = vector.broadcast %923 : vector<2x1xf32> to vector<2x16xf32>
    %925 = arith.subf %921, %924 : vector<2x16xf32>
    %926 = math.exp %925 : vector<2x16xf32>
    %cst_190 = arith.constant dense<0.000000e+00> : vector<2xf32>
    %927 = vector.multi_reduction <add>, %926, %cst_190 [1] : vector<2x16xf32> to vector<2xf32>
    %928 = vector.shape_cast %927 : vector<2xf32> to vector<2x1xf32>
    %929 = tpu.reciprocal %928 {approx = true} : vector<2x1xf32> -> vector<2x1xf32>
    %930 = vector.broadcast %929 : vector<2x1xf32> to vector<2x16xf32>
    %931 = arith.mulf %926, %930 : vector<2x16xf32>
    %932 = vector.extract_strided_slice %931 {offsets = [0, 0], sizes = [2, 12], strides = [1, 1]} : vector<2x16xf32> to vector<2x12xf32>
    %cst_191 = arith.constant dense<0.000000e+00> : vector<2xf32>
    %933 = vector.multi_reduction <add>, %932, %cst_191 [1] : vector<2x12xf32> to vector<2xf32>
    %934 = vector.shape_cast %933 : vector<2xf32> to vector<2x1xf32>
    %cst_192 = arith.constant 9.99999974E-6 : f32
    %935 = vector.broadcast %cst_192 : f32 to vector<2x1xf32>
    %936 = arith.addf %934, %935 : vector<2x1xf32>
    %937 = tpu.reciprocal %936 {approx = true} : vector<2x1xf32> -> vector<2x1xf32>
    %938 = vector.broadcast %937 : vector<2x1xf32> to vector<2x12xf32>
    %939 = arith.mulf %932, %938 : vector<2x12xf32>
    %940 = vector.extract_strided_slice %939 {offsets = [0, 11], sizes = [2, 1], strides = [1, 1]} : vector<2x12xf32> to vector<2x1xf32>
    %941 = vector.broadcast %940 : vector<2x1xf32> to vector<2x32xf32>
    %942 = arith.mulf %941, %419 : vector<2x32xf32>
    %943 = vector.extract_strided_slice %939 {offsets = [0, 10], sizes = [2, 1], strides = [1, 1]} : vector<2x12xf32> to vector<2x1xf32>
    %944 = vector.broadcast %943 : vector<2x1xf32> to vector<2x32xf32>
    %945 = arith.mulf %944, %449 : vector<2x32xf32>
    %946 = arith.addf %942, %945 : vector<2x32xf32>
    %947 = vector.extract_strided_slice %939 {offsets = [0, 9], sizes = [2, 1], strides = [1, 1]} : vector<2x12xf32> to vector<2x1xf32>
    %948 = vector.broadcast %947 : vector<2x1xf32> to vector<2x32xf32>
    %949 = arith.mulf %948, %479 : vector<2x32xf32>
    %950 = arith.addf %946, %949 : vector<2x32xf32>
    %951 = vector.extract_strided_slice %939 {offsets = [0, 8], sizes = [2, 1], strides = [1, 1]} : vector<2x12xf32> to vector<2x1xf32>
    %952 = vector.broadcast %951 : vector<2x1xf32> to vector<2x32xf32>
    %953 = arith.mulf %952, %509 : vector<2x32xf32>
    %954 = arith.addf %950, %953 : vector<2x32xf32>
    %955 = vector.extract_strided_slice %939 {offsets = [0, 7], sizes = [2, 1], strides = [1, 1]} : vector<2x12xf32> to vector<2x1xf32>
    %956 = vector.broadcast %955 : vector<2x1xf32> to vector<2x32xf32>
    %957 = arith.mulf %956, %539 : vector<2x32xf32>
    %958 = arith.addf %954, %957 : vector<2x32xf32>
    %959 = vector.extract_strided_slice %939 {offsets = [0, 6], sizes = [2, 1], strides = [1, 1]} : vector<2x12xf32> to vector<2x1xf32>
    %960 = vector.broadcast %959 : vector<2x1xf32> to vector<2x32xf32>
    %961 = arith.mulf %960, %569 : vector<2x32xf32>
    %962 = arith.addf %958, %961 : vector<2x32xf32>
    %963 = vector.extract_strided_slice %939 {offsets = [0, 5], sizes = [2, 1], strides = [1, 1]} : vector<2x12xf32> to vector<2x1xf32>
    %964 = vector.broadcast %963 : vector<2x1xf32> to vector<2x32xf32>
    %965 = arith.mulf %964, %599 : vector<2x32xf32>
    %966 = arith.addf %962, %965 : vector<2x32xf32>
    %967 = vector.extract_strided_slice %939 {offsets = [0, 4], sizes = [2, 1], strides = [1, 1]} : vector<2x12xf32> to vector<2x1xf32>
    %968 = vector.broadcast %967 : vector<2x1xf32> to vector<2x32xf32>
    %969 = arith.mulf %968, %629 : vector<2x32xf32>
    %970 = arith.addf %966, %969 : vector<2x32xf32>
    %971 = vector.extract_strided_slice %939 {offsets = [0, 3], sizes = [2, 1], strides = [1, 1]} : vector<2x12xf32> to vector<2x1xf32>
    %972 = vector.broadcast %971 : vector<2x1xf32> to vector<2x32xf32>
    %973 = arith.mulf %972, %659 : vector<2x32xf32>
    %974 = arith.addf %970, %973 : vector<2x32xf32>
    %975 = vector.extract_strided_slice %939 {offsets = [0, 2], sizes = [2, 1], strides = [1, 1]} : vector<2x12xf32> to vector<2x1xf32>
    %976 = vector.broadcast %975 : vector<2x1xf32> to vector<2x32xf32>
    %977 = arith.mulf %976, %689 : vector<2x32xf32>
    %978 = arith.addf %974, %977 : vector<2x32xf32>
    %979 = vector.extract_strided_slice %939 {offsets = [0, 1], sizes = [2, 1], strides = [1, 1]} : vector<2x12xf32> to vector<2x1xf32>
    %980 = vector.broadcast %979 : vector<2x1xf32> to vector<2x32xf32>
    %981 = arith.mulf %980, %719 : vector<2x32xf32>
    %982 = arith.addf %978, %981 : vector<2x32xf32>
    %983 = vector.extract_strided_slice %939 {offsets = [0, 0], sizes = [2, 1], strides = [1, 1]} : vector<2x12xf32> to vector<2x1xf32>
    %984 = vector.broadcast %983 : vector<2x1xf32> to vector<2x32xf32>
    %985 = arith.mulf %984, %749 : vector<2x32xf32>
    %986 = arith.addf %982, %985 : vector<2x32xf32>
    %cst_193 = arith.constant dense<0.000000e+00> : vector<2x8xf32>
    %987 = tpu.matmul %916, %753, %cst_193 {dimension_numbers = #tpu.dot_dimension_numbers<[1], [0], [0], [1], [0, 0, 1, 1], [], []>} : vector<2x8xf32>, vector<8x8xf32>, vector<2x8xf32> -> vector<2x8xf32>
    %cst_194 = arith.constant dense<0.000000e+00> : vector<2x8xf32>
    %988 = tpu.matmul %986, %754, %cst_194 {dimension_numbers = #tpu.dot_dimension_numbers<[1], [0], [0], [1], [0, 0, 1, 1], [], []>} : vector<2x32xf32>, vector<32x8xf32>, vector<2x8xf32> -> vector<2x8xf32>
    %989 = arith.addf %987, %988 : vector<2x8xf32>
    %990 = vector.broadcast %755 : vector<1x8xf32> to vector<2x8xf32>
    %991 = arith.addf %989, %990 : vector<2x8xf32>
    %cst_195 = arith.constant 0.000000e+00 : f32
    %992 = vector.broadcast %cst_195 : f32 to vector<2x8xf32>
    %993 = arith.maximumf %991, %992 : vector<2x8xf32>
    %cst_196 = arith.constant dense<0.000000e+00> : vector<2x96xf32>
    %994 = tpu.matmul %993, %758, %cst_196 {dimension_numbers = #tpu.dot_dimension_numbers<[1], [0], [0], [1], [0, 0, 1, 1], [], []>} : vector<2x8xf32>, vector<8x96xf32>, vector<2x96xf32> -> vector<2x96xf32>
    %995 = vector.broadcast %760 : vector<1x96xf32> to vector<2x96xf32>
    %996 = arith.addf %994, %995 : vector<2x96xf32>
    %cst_197 = arith.constant dense<0.000000e+00> : vector<2x96xf32>
    %997 = tpu.matmul %876, %759, %cst_197 {dimension_numbers = #tpu.dot_dimension_numbers<[1], [0], [0], [1], [0, 0, 1, 1], [], []>} : vector<2x32xf32>, vector<32x96xf32>, vector<2x96xf32> -> vector<2x96xf32>
    %998 = vector.broadcast %761 : vector<1x96xf32> to vector<2x96xf32>
    %999 = arith.addf %997, %998 : vector<2x96xf32>
    %1000 = vector.extract_strided_slice %996 {offsets = [0, 0], sizes = [2, 32], strides = [1, 1]} : vector<2x96xf32> to vector<2x32xf32>
    %1001 = vector.extract_strided_slice %999 {offsets = [0, 0], sizes = [2, 32], strides = [1, 1]} : vector<2x96xf32> to vector<2x32xf32>
    %1002 = arith.addf %1000, %1001 : vector<2x32xf32>
    %1003 = arith.negf %1002 : vector<2x32xf32>
    %1004 = math.exp %1003 : vector<2x32xf32>
    %cst_198 = arith.constant 1.000000e+00 : f32
    %1005 = vector.broadcast %cst_198 : f32 to vector<2x32xf32>
    %1006 = arith.addf %1005, %1004 : vector<2x32xf32>
    %1007 = arith.divf %1005, %1006 : vector<2x32xf32>
    %1008 = vector.extract_strided_slice %996 {offsets = [0, 32], sizes = [2, 32], strides = [1, 1]} : vector<2x96xf32> to vector<2x32xf32>
    %1009 = vector.extract_strided_slice %999 {offsets = [0, 32], sizes = [2, 32], strides = [1, 1]} : vector<2x96xf32> to vector<2x32xf32>
    %1010 = arith.addf %1008, %1009 : vector<2x32xf32>
    %1011 = arith.negf %1010 : vector<2x32xf32>
    %1012 = math.exp %1011 : vector<2x32xf32>
    %cst_199 = arith.constant 1.000000e+00 : f32
    %1013 = vector.broadcast %cst_199 : f32 to vector<2x32xf32>
    %1014 = arith.addf %1013, %1012 : vector<2x32xf32>
    %1015 = arith.divf %1013, %1014 : vector<2x32xf32>
    %1016 = vector.extract_strided_slice %996 {offsets = [0, 64], sizes = [2, 32], strides = [1, 1]} : vector<2x96xf32> to vector<2x32xf32>
    %1017 = vector.extract_strided_slice %999 {offsets = [0, 64], sizes = [2, 32], strides = [1, 1]} : vector<2x96xf32> to vector<2x32xf32>
    %1018 = arith.mulf %1007, %1017 : vector<2x32xf32>
    %1019 = arith.addf %1016, %1018 : vector<2x32xf32>
    %1020 = math.tanh %1019 : vector<2x32xf32>
    %cst_200 = arith.constant 1.000000e+00 : f32
    %1021 = vector.broadcast %cst_200 : f32 to vector<2x32xf32>
    %1022 = arith.subf %1021, %1015 : vector<2x32xf32>
    %1023 = arith.mulf %1022, %1020 : vector<2x32xf32>
    %1024 = arith.mulf %1015, %876 : vector<2x32xf32>
    %1025 = arith.addf %1023, %1024 : vector<2x32xf32>
    %cst_201 = arith.constant dense<0.000000e+00> : vector<2x96xf32>
    %1026 = tpu.matmul %1025, %762, %cst_201 {dimension_numbers = #tpu.dot_dimension_numbers<[1], [0], [0], [1], [0, 0, 1, 1], [], []>} : vector<2x32xf32>, vector<32x96xf32>, vector<2x96xf32> -> vector<2x96xf32>
    %1027 = vector.broadcast %764 : vector<1x96xf32> to vector<2x96xf32>
    %1028 = arith.addf %1026, %1027 : vector<2x96xf32>
    %cst_202 = arith.constant dense<0.000000e+00> : vector<2x96xf32>
    %1029 = tpu.matmul %908, %763, %cst_202 {dimension_numbers = #tpu.dot_dimension_numbers<[1], [0], [0], [1], [0, 0, 1, 1], [], []>} : vector<2x32xf32>, vector<32x96xf32>, vector<2x96xf32> -> vector<2x96xf32>
    %1030 = vector.broadcast %765 : vector<1x96xf32> to vector<2x96xf32>
    %1031 = arith.addf %1029, %1030 : vector<2x96xf32>
    %1032 = vector.extract_strided_slice %1028 {offsets = [0, 0], sizes = [2, 32], strides = [1, 1]} : vector<2x96xf32> to vector<2x32xf32>
    %1033 = vector.extract_strided_slice %1031 {offsets = [0, 0], sizes = [2, 32], strides = [1, 1]} : vector<2x96xf32> to vector<2x32xf32>
    %1034 = arith.addf %1032, %1033 : vector<2x32xf32>
    %1035 = arith.negf %1034 : vector<2x32xf32>
    %1036 = math.exp %1035 : vector<2x32xf32>
    %cst_203 = arith.constant 1.000000e+00 : f32
    %1037 = vector.broadcast %cst_203 : f32 to vector<2x32xf32>
    %1038 = arith.addf %1037, %1036 : vector<2x32xf32>
    %1039 = arith.divf %1037, %1038 : vector<2x32xf32>
    %1040 = vector.extract_strided_slice %1028 {offsets = [0, 32], sizes = [2, 32], strides = [1, 1]} : vector<2x96xf32> to vector<2x32xf32>
    %1041 = vector.extract_strided_slice %1031 {offsets = [0, 32], sizes = [2, 32], strides = [1, 1]} : vector<2x96xf32> to vector<2x32xf32>
    %1042 = arith.addf %1040, %1041 : vector<2x32xf32>
    %1043 = arith.negf %1042 : vector<2x32xf32>
    %1044 = math.exp %1043 : vector<2x32xf32>
    %cst_204 = arith.constant 1.000000e+00 : f32
    %1045 = vector.broadcast %cst_204 : f32 to vector<2x32xf32>
    %1046 = arith.addf %1045, %1044 : vector<2x32xf32>
    %1047 = arith.divf %1045, %1046 : vector<2x32xf32>
    %1048 = vector.extract_strided_slice %1028 {offsets = [0, 64], sizes = [2, 32], strides = [1, 1]} : vector<2x96xf32> to vector<2x32xf32>
    %1049 = vector.extract_strided_slice %1031 {offsets = [0, 64], sizes = [2, 32], strides = [1, 1]} : vector<2x96xf32> to vector<2x32xf32>
    %1050 = arith.mulf %1039, %1049 : vector<2x32xf32>
    %1051 = arith.addf %1048, %1050 : vector<2x32xf32>
    %1052 = math.tanh %1051 : vector<2x32xf32>
    %cst_205 = arith.constant 1.000000e+00 : f32
    %1053 = vector.broadcast %cst_205 : f32 to vector<2x32xf32>
    %1054 = arith.subf %1053, %1047 : vector<2x32xf32>
    %1055 = arith.mulf %1054, %1052 : vector<2x32xf32>
    %1056 = arith.mulf %1047, %908 : vector<2x32xf32>
    %1057 = arith.addf %1055, %1056 : vector<2x32xf32>
    %cst_206 = arith.constant dense<0.000000e+00> : vector<2x8xf32>
    %1058 = tpu.matmul %1057, %756, %cst_206 {dimension_numbers = #tpu.dot_dimension_numbers<[1], [0], [0], [1], [0, 0, 1, 1], [], []>} : vector<2x32xf32>, vector<32x8xf32>, vector<2x8xf32> -> vector<2x8xf32>
    %1059 = vector.broadcast %757 : vector<1x8xf32> to vector<2x8xf32>
    %1060 = arith.addf %1058, %1059 : vector<2x8xf32>
    %c1_207 = arith.constant 1 : index
    %c0_208 = arith.constant 0 : index
    %c0_209 = arith.constant 0 : index
    %1061 = vector.load %arg9[%c1_207, %c0_208, %c0_209] : memref<4x2x8xf32, #tpu.memory_space<vmem>>, vector<1x2x8xf32>
    %1062 = vector.shape_cast %1061 : vector<1x2x8xf32> to vector<2x8xf32>
    %1063 = vector.shape_cast %1060 : vector<2x8xf32> to vector<1x2x8xf32>
    tpu.vector_store %arg9[%c1_207, %c0_208, %c0_209], %1063 {strides = array<i32>} : memref<4x2x8xf32, #tpu.memory_space<vmem>>, vector<1x2x8xf32>,
    %c2_210 = arith.constant 2 : index
    %c0_211 = arith.constant 0 : index
    %c0_212 = arith.constant 0 : index
    %1064 = vector.load %arg1[%c2_210, %c0_211, %c0_212] : memref<4x2x8xf32, #tpu.memory_space<vmem>>, vector<1x2x8xf32>
    %1065 = vector.shape_cast %1064 : vector<1x2x8xf32> to vector<2x8xf32>
    %cst_213 = arith.constant dense<0.000000e+00> : vector<2x16xf32>
    %1066 = tpu.matmul %1065, %750, %cst_213 {dimension_numbers = #tpu.dot_dimension_numbers<[1], [0], [0], [1], [0, 0, 1, 1], [], []>} : vector<2x8xf32>, vector<8x16xf32>, vector<2x16xf32> -> vector<2x16xf32>
    %cst_214 = arith.constant dense<0.000000e+00> : vector<2x16xf32>
    %1067 = tpu.matmul %1057, %751, %cst_214 {dimension_numbers = #tpu.dot_dimension_numbers<[1], [0], [0], [1], [0, 0, 1, 1], [], []>} : vector<2x32xf32>, vector<32x16xf32>, vector<2x16xf32> -> vector<2x16xf32>
    %1068 = arith.addf %1066, %1067 : vector<2x16xf32>
    %1069 = vector.broadcast %752 : vector<1x16xf32> to vector<2x16xf32>
    %1070 = arith.addf %1068, %1069 : vector<2x16xf32>
    %cst_215 = arith.constant dense<0xFF800000> : vector<2xf32>
    %1071 = vector.multi_reduction <maximumf>, %1070, %cst_215 [1] : vector<2x16xf32> to vector<2xf32>
    %1072 = vector.shape_cast %1071 : vector<2xf32> to vector<2x1xf32>
    %1073 = vector.broadcast %1072 : vector<2x1xf32> to vector<2x16xf32>
    %1074 = arith.subf %1070, %1073 : vector<2x16xf32>
    %1075 = math.exp %1074 : vector<2x16xf32>
    %cst_216 = arith.constant dense<0.000000e+00> : vector<2xf32>
    %1076 = vector.multi_reduction <add>, %1075, %cst_216 [1] : vector<2x16xf32> to vector<2xf32>
    %1077 = vector.shape_cast %1076 : vector<2xf32> to vector<2x1xf32>
    %1078 = tpu.reciprocal %1077 {approx = true} : vector<2x1xf32> -> vector<2x1xf32>
    %1079 = vector.broadcast %1078 : vector<2x1xf32> to vector<2x16xf32>
    %1080 = arith.mulf %1075, %1079 : vector<2x16xf32>
    %1081 = vector.extract_strided_slice %1080 {offsets = [0, 0], sizes = [2, 12], strides = [1, 1]} : vector<2x16xf32> to vector<2x12xf32>
    %cst_217 = arith.constant dense<0.000000e+00> : vector<2xf32>
    %1082 = vector.multi_reduction <add>, %1081, %cst_217 [1] : vector<2x12xf32> to vector<2xf32>
    %1083 = vector.shape_cast %1082 : vector<2xf32> to vector<2x1xf32>
    %cst_218 = arith.constant 9.99999974E-6 : f32
    %1084 = vector.broadcast %cst_218 : f32 to vector<2x1xf32>
    %1085 = arith.addf %1083, %1084 : vector<2x1xf32>
    %1086 = tpu.reciprocal %1085 {approx = true} : vector<2x1xf32> -> vector<2x1xf32>
    %1087 = vector.broadcast %1086 : vector<2x1xf32> to vector<2x12xf32>
    %1088 = arith.mulf %1081, %1087 : vector<2x12xf32>
    %1089 = vector.extract_strided_slice %1088 {offsets = [0, 11], sizes = [2, 1], strides = [1, 1]} : vector<2x12xf32> to vector<2x1xf32>
    %1090 = vector.broadcast %1089 : vector<2x1xf32> to vector<2x32xf32>
    %1091 = arith.mulf %1090, %419 : vector<2x32xf32>
    %1092 = vector.extract_strided_slice %1088 {offsets = [0, 10], sizes = [2, 1], strides = [1, 1]} : vector<2x12xf32> to vector<2x1xf32>
    %1093 = vector.broadcast %1092 : vector<2x1xf32> to vector<2x32xf32>
    %1094 = arith.mulf %1093, %449 : vector<2x32xf32>
    %1095 = arith.addf %1091, %1094 : vector<2x32xf32>
    %1096 = vector.extract_strided_slice %1088 {offsets = [0, 9], sizes = [2, 1], strides = [1, 1]} : vector<2x12xf32> to vector<2x1xf32>
    %1097 = vector.broadcast %1096 : vector<2x1xf32> to vector<2x32xf32>
    %1098 = arith.mulf %1097, %479 : vector<2x32xf32>
    %1099 = arith.addf %1095, %1098 : vector<2x32xf32>
    %1100 = vector.extract_strided_slice %1088 {offsets = [0, 8], sizes = [2, 1], strides = [1, 1]} : vector<2x12xf32> to vector<2x1xf32>
    %1101 = vector.broadcast %1100 : vector<2x1xf32> to vector<2x32xf32>
    %1102 = arith.mulf %1101, %509 : vector<2x32xf32>
    %1103 = arith.addf %1099, %1102 : vector<2x32xf32>
    %1104 = vector.extract_strided_slice %1088 {offsets = [0, 7], sizes = [2, 1], strides = [1, 1]} : vector<2x12xf32> to vector<2x1xf32>
    %1105 = vector.broadcast %1104 : vector<2x1xf32> to vector<2x32xf32>
    %1106 = arith.mulf %1105, %539 : vector<2x32xf32>
    %1107 = arith.addf %1103, %1106 : vector<2x32xf32>
    %1108 = vector.extract_strided_slice %1088 {offsets = [0, 6], sizes = [2, 1], strides = [1, 1]} : vector<2x12xf32> to vector<2x1xf32>
    %1109 = vector.broadcast %1108 : vector<2x1xf32> to vector<2x32xf32>
    %1110 = arith.mulf %1109, %569 : vector<2x32xf32>
    %1111 = arith.addf %1107, %1110 : vector<2x32xf32>
    %1112 = vector.extract_strided_slice %1088 {offsets = [0, 5], sizes = [2, 1], strides = [1, 1]} : vector<2x12xf32> to vector<2x1xf32>
    %1113 = vector.broadcast %1112 : vector<2x1xf32> to vector<2x32xf32>
    %1114 = arith.mulf %1113, %599 : vector<2x32xf32>
    %1115 = arith.addf %1111, %1114 : vector<2x32xf32>
    %1116 = vector.extract_strided_slice %1088 {offsets = [0, 4], sizes = [2, 1], strides = [1, 1]} : vector<2x12xf32> to vector<2x1xf32>
    %1117 = vector.broadcast %1116 : vector<2x1xf32> to vector<2x32xf32>
    %1118 = arith.mulf %1117, %629 : vector<2x32xf32>
    %1119 = arith.addf %1115, %1118 : vector<2x32xf32>
    %1120 = vector.extract_strided_slice %1088 {offsets = [0, 3], sizes = [2, 1], strides = [1, 1]} : vector<2x12xf32> to vector<2x1xf32>
    %1121 = vector.broadcast %1120 : vector<2x1xf32> to vector<2x32xf32>
    %1122 = arith.mulf %1121, %659 : vector<2x32xf32>
    %1123 = arith.addf %1119, %1122 : vector<2x32xf32>
    %1124 = vector.extract_strided_slice %1088 {offsets = [0, 2], sizes = [2, 1], strides = [1, 1]} : vector<2x12xf32> to vector<2x1xf32>
    %1125 = vector.broadcast %1124 : vector<2x1xf32> to vector<2x32xf32>
    %1126 = arith.mulf %1125, %689 : vector<2x32xf32>
    %1127 = arith.addf %1123, %1126 : vector<2x32xf32>
    %1128 = vector.extract_strided_slice %1088 {offsets = [0, 1], sizes = [2, 1], strides = [1, 1]} : vector<2x12xf32> to vector<2x1xf32>
    %1129 = vector.broadcast %1128 : vector<2x1xf32> to vector<2x32xf32>
    %1130 = arith.mulf %1129, %719 : vector<2x32xf32>
    %1131 = arith.addf %1127, %1130 : vector<2x32xf32>
    %1132 = vector.extract_strided_slice %1088 {offsets = [0, 0], sizes = [2, 1], strides = [1, 1]} : vector<2x12xf32> to vector<2x1xf32>
    %1133 = vector.broadcast %1132 : vector<2x1xf32> to vector<2x32xf32>
    %1134 = arith.mulf %1133, %749 : vector<2x32xf32>
    %1135 = arith.addf %1131, %1134 : vector<2x32xf32>
    %cst_219 = arith.constant dense<0.000000e+00> : vector<2x8xf32>
    %1136 = tpu.matmul %1065, %753, %cst_219 {dimension_numbers = #tpu.dot_dimension_numbers<[1], [0], [0], [1], [0, 0, 1, 1], [], []>} : vector<2x8xf32>, vector<8x8xf32>, vector<2x8xf32> -> vector<2x8xf32>
    %cst_220 = arith.constant dense<0.000000e+00> : vector<2x8xf32>
    %1137 = tpu.matmul %1135, %754, %cst_220 {dimension_numbers = #tpu.dot_dimension_numbers<[1], [0], [0], [1], [0, 0, 1, 1], [], []>} : vector<2x32xf32>, vector<32x8xf32>, vector<2x8xf32> -> vector<2x8xf32>
    %1138 = arith.addf %1136, %1137 : vector<2x8xf32>
    %1139 = vector.broadcast %755 : vector<1x8xf32> to vector<2x8xf32>
    %1140 = arith.addf %1138, %1139 : vector<2x8xf32>
    %cst_221 = arith.constant 0.000000e+00 : f32
    %1141 = vector.broadcast %cst_221 : f32 to vector<2x8xf32>
    %1142 = arith.maximumf %1140, %1141 : vector<2x8xf32>
    %cst_222 = arith.constant dense<0.000000e+00> : vector<2x96xf32>
    %1143 = tpu.matmul %1142, %758, %cst_222 {dimension_numbers = #tpu.dot_dimension_numbers<[1], [0], [0], [1], [0, 0, 1, 1], [], []>} : vector<2x8xf32>, vector<8x96xf32>, vector<2x96xf32> -> vector<2x96xf32>
    %1144 = vector.broadcast %760 : vector<1x96xf32> to vector<2x96xf32>
    %1145 = arith.addf %1143, %1144 : vector<2x96xf32>
    %cst_223 = arith.constant dense<0.000000e+00> : vector<2x96xf32>
    %1146 = tpu.matmul %1025, %759, %cst_223 {dimension_numbers = #tpu.dot_dimension_numbers<[1], [0], [0], [1], [0, 0, 1, 1], [], []>} : vector<2x32xf32>, vector<32x96xf32>, vector<2x96xf32> -> vector<2x96xf32>
    %1147 = vector.broadcast %761 : vector<1x96xf32> to vector<2x96xf32>
    %1148 = arith.addf %1146, %1147 : vector<2x96xf32>
    %1149 = vector.extract_strided_slice %1145 {offsets = [0, 0], sizes = [2, 32], strides = [1, 1]} : vector<2x96xf32> to vector<2x32xf32>
    %1150 = vector.extract_strided_slice %1148 {offsets = [0, 0], sizes = [2, 32], strides = [1, 1]} : vector<2x96xf32> to vector<2x32xf32>
    %1151 = arith.addf %1149, %1150 : vector<2x32xf32>
    %1152 = arith.negf %1151 : vector<2x32xf32>
    %1153 = math.exp %1152 : vector<2x32xf32>
    %cst_224 = arith.constant 1.000000e+00 : f32
    %1154 = vector.broadcast %cst_224 : f32 to vector<2x32xf32>
    %1155 = arith.addf %1154, %1153 : vector<2x32xf32>
    %1156 = arith.divf %1154, %1155 : vector<2x32xf32>
    %1157 = vector.extract_strided_slice %1145 {offsets = [0, 32], sizes = [2, 32], strides = [1, 1]} : vector<2x96xf32> to vector<2x32xf32>
    %1158 = vector.extract_strided_slice %1148 {offsets = [0, 32], sizes = [2, 32], strides = [1, 1]} : vector<2x96xf32> to vector<2x32xf32>
    %1159 = arith.addf %1157, %1158 : vector<2x32xf32>
    %1160 = arith.negf %1159 : vector<2x32xf32>
    %1161 = math.exp %1160 : vector<2x32xf32>
    %cst_225 = arith.constant 1.000000e+00 : f32
    %1162 = vector.broadcast %cst_225 : f32 to vector<2x32xf32>
    %1163 = arith.addf %1162, %1161 : vector<2x32xf32>
    %1164 = arith.divf %1162, %1163 : vector<2x32xf32>
    %1165 = vector.extract_strided_slice %1145 {offsets = [0, 64], sizes = [2, 32], strides = [1, 1]} : vector<2x96xf32> to vector<2x32xf32>
    %1166 = vector.extract_strided_slice %1148 {offsets = [0, 64], sizes = [2, 32], strides = [1, 1]} : vector<2x96xf32> to vector<2x32xf32>
    %1167 = arith.mulf %1156, %1166 : vector<2x32xf32>
    %1168 = arith.addf %1165, %1167 : vector<2x32xf32>
    %1169 = math.tanh %1168 : vector<2x32xf32>
    %cst_226 = arith.constant 1.000000e+00 : f32
    %1170 = vector.broadcast %cst_226 : f32 to vector<2x32xf32>
    %1171 = arith.subf %1170, %1164 : vector<2x32xf32>
    %1172 = arith.mulf %1171, %1169 : vector<2x32xf32>
    %1173 = arith.mulf %1164, %1025 : vector<2x32xf32>
    %1174 = arith.addf %1172, %1173 : vector<2x32xf32>
    %cst_227 = arith.constant dense<0.000000e+00> : vector<2x96xf32>
    %1175 = tpu.matmul %1174, %762, %cst_227 {dimension_numbers = #tpu.dot_dimension_numbers<[1], [0], [0], [1], [0, 0, 1, 1], [], []>} : vector<2x32xf32>, vector<32x96xf32>, vector<2x96xf32> -> vector<2x96xf32>
    %1176 = vector.broadcast %764 : vector<1x96xf32> to vector<2x96xf32>
    %1177 = arith.addf %1175, %1176 : vector<2x96xf32>
    %cst_228 = arith.constant dense<0.000000e+00> : vector<2x96xf32>
    %1178 = tpu.matmul %1057, %763, %cst_228 {dimension_numbers = #tpu.dot_dimension_numbers<[1], [0], [0], [1], [0, 0, 1, 1], [], []>} : vector<2x32xf32>, vector<32x96xf32>, vector<2x96xf32> -> vector<2x96xf32>
    %1179 = vector.broadcast %765 : vector<1x96xf32> to vector<2x96xf32>
    %1180 = arith.addf %1178, %1179 : vector<2x96xf32>
    %1181 = vector.extract_strided_slice %1177 {offsets = [0, 0], sizes = [2, 32], strides = [1, 1]} : vector<2x96xf32> to vector<2x32xf32>
    %1182 = vector.extract_strided_slice %1180 {offsets = [0, 0], sizes = [2, 32], strides = [1, 1]} : vector<2x96xf32> to vector<2x32xf32>
    %1183 = arith.addf %1181, %1182 : vector<2x32xf32>
    %1184 = arith.negf %1183 : vector<2x32xf32>
    %1185 = math.exp %1184 : vector<2x32xf32>
    %cst_229 = arith.constant 1.000000e+00 : f32
    %1186 = vector.broadcast %cst_229 : f32 to vector<2x32xf32>
    %1187 = arith.addf %1186, %1185 : vector<2x32xf32>
    %1188 = arith.divf %1186, %1187 : vector<2x32xf32>
    %1189 = vector.extract_strided_slice %1177 {offsets = [0, 32], sizes = [2, 32], strides = [1, 1]} : vector<2x96xf32> to vector<2x32xf32>
    %1190 = vector.extract_strided_slice %1180 {offsets = [0, 32], sizes = [2, 32], strides = [1, 1]} : vector<2x96xf32> to vector<2x32xf32>
    %1191 = arith.addf %1189, %1190 : vector<2x32xf32>
    %1192 = arith.negf %1191 : vector<2x32xf32>
    %1193 = math.exp %1192 : vector<2x32xf32>
    %cst_230 = arith.constant 1.000000e+00 : f32
    %1194 = vector.broadcast %cst_230 : f32 to vector<2x32xf32>
    %1195 = arith.addf %1194, %1193 : vector<2x32xf32>
    %1196 = arith.divf %1194, %1195 : vector<2x32xf32>
    %1197 = vector.extract_strided_slice %1177 {offsets = [0, 64], sizes = [2, 32], strides = [1, 1]} : vector<2x96xf32> to vector<2x32xf32>
    %1198 = vector.extract_strided_slice %1180 {offsets = [0, 64], sizes = [2, 32], strides = [1, 1]} : vector<2x96xf32> to vector<2x32xf32>
    %1199 = arith.mulf %1188, %1198 : vector<2x32xf32>
    %1200 = arith.addf %1197, %1199 : vector<2x32xf32>
    %1201 = math.tanh %1200 : vector<2x32xf32>
    %cst_231 = arith.constant 1.000000e+00 : f32
    %1202 = vector.broadcast %cst_231 : f32 to vector<2x32xf32>
    %1203 = arith.subf %1202, %1196 : vector<2x32xf32>
    %1204 = arith.mulf %1203, %1201 : vector<2x32xf32>
    %1205 = arith.mulf %1196, %1057 : vector<2x32xf32>
    %1206 = arith.addf %1204, %1205 : vector<2x32xf32>
    %cst_232 = arith.constant dense<0.000000e+00> : vector<2x8xf32>
    %1207 = tpu.matmul %1206, %756, %cst_232 {dimension_numbers = #tpu.dot_dimension_numbers<[1], [0], [0], [1], [0, 0, 1, 1], [], []>} : vector<2x32xf32>, vector<32x8xf32>, vector<2x8xf32> -> vector<2x8xf32>
    %1208 = vector.broadcast %757 : vector<1x8xf32> to vector<2x8xf32>
    %1209 = arith.addf %1207, %1208 : vector<2x8xf32>
    %c2_233 = arith.constant 2 : index
    %c0_234 = arith.constant 0 : index
    %c0_235 = arith.constant 0 : index
    %1210 = vector.load %arg9[%c2_233, %c0_234, %c0_235] : memref<4x2x8xf32, #tpu.memory_space<vmem>>, vector<1x2x8xf32>
    %1211 = vector.shape_cast %1210 : vector<1x2x8xf32> to vector<2x8xf32>
    %1212 = vector.shape_cast %1209 : vector<2x8xf32> to vector<1x2x8xf32>
    tpu.vector_store %arg9[%c2_233, %c0_234, %c0_235], %1212 {strides = array<i32>} : memref<4x2x8xf32, #tpu.memory_space<vmem>>, vector<1x2x8xf32>,
    %c3_236 = arith.constant 3 : index
    %c0_237 = arith.constant 0 : index
    %c0_238 = arith.constant 0 : index
    %1213 = vector.load %arg1[%c3_236, %c0_237, %c0_238] : memref<4x2x8xf32, #tpu.memory_space<vmem>>, vector<1x2x8xf32>
    %1214 = vector.shape_cast %1213 : vector<1x2x8xf32> to vector<2x8xf32>
    %cst_239 = arith.constant dense<0.000000e+00> : vector<2x16xf32>
    %1215 = tpu.matmul %1214, %750, %cst_239 {dimension_numbers = #tpu.dot_dimension_numbers<[1], [0], [0], [1], [0, 0, 1, 1], [], []>} : vector<2x8xf32>, vector<8x16xf32>, vector<2x16xf32> -> vector<2x16xf32>
    %cst_240 = arith.constant dense<0.000000e+00> : vector<2x16xf32>
    %1216 = tpu.matmul %1206, %751, %cst_240 {dimension_numbers = #tpu.dot_dimension_numbers<[1], [0], [0], [1], [0, 0, 1, 1], [], []>} : vector<2x32xf32>, vector<32x16xf32>, vector<2x16xf32> -> vector<2x16xf32>
    %1217 = arith.addf %1215, %1216 : vector<2x16xf32>
    %1218 = vector.broadcast %752 : vector<1x16xf32> to vector<2x16xf32>
    %1219 = arith.addf %1217, %1218 : vector<2x16xf32>
    %cst_241 = arith.constant dense<0xFF800000> : vector<2xf32>
    %1220 = vector.multi_reduction <maximumf>, %1219, %cst_241 [1] : vector<2x16xf32> to vector<2xf32>
    %1221 = vector.shape_cast %1220 : vector<2xf32> to vector<2x1xf32>
    %1222 = vector.broadcast %1221 : vector<2x1xf32> to vector<2x16xf32>
    %1223 = arith.subf %1219, %1222 : vector<2x16xf32>
    %1224 = math.exp %1223 : vector<2x16xf32>
    %cst_242 = arith.constant dense<0.000000e+00> : vector<2xf32>
    %1225 = vector.multi_reduction <add>, %1224, %cst_242 [1] : vector<2x16xf32> to vector<2xf32>
    %1226 = vector.shape_cast %1225 : vector<2xf32> to vector<2x1xf32>
    %1227 = tpu.reciprocal %1226 {approx = true} : vector<2x1xf32> -> vector<2x1xf32>
    %1228 = vector.broadcast %1227 : vector<2x1xf32> to vector<2x16xf32>
    %1229 = arith.mulf %1224, %1228 : vector<2x16xf32>
    %1230 = vector.extract_strided_slice %1229 {offsets = [0, 0], sizes = [2, 12], strides = [1, 1]} : vector<2x16xf32> to vector<2x12xf32>
    %cst_243 = arith.constant dense<0.000000e+00> : vector<2xf32>
    %1231 = vector.multi_reduction <add>, %1230, %cst_243 [1] : vector<2x12xf32> to vector<2xf32>
    %1232 = vector.shape_cast %1231 : vector<2xf32> to vector<2x1xf32>
    %cst_244 = arith.constant 9.99999974E-6 : f32
    %1233 = vector.broadcast %cst_244 : f32 to vector<2x1xf32>
    %1234 = arith.addf %1232, %1233 : vector<2x1xf32>
    %1235 = tpu.reciprocal %1234 {approx = true} : vector<2x1xf32> -> vector<2x1xf32>
    %1236 = vector.broadcast %1235 : vector<2x1xf32> to vector<2x12xf32>
    %1237 = arith.mulf %1230, %1236 : vector<2x12xf32>
    %1238 = vector.extract_strided_slice %1237 {offsets = [0, 11], sizes = [2, 1], strides = [1, 1]} : vector<2x12xf32> to vector<2x1xf32>
    %1239 = vector.broadcast %1238 : vector<2x1xf32> to vector<2x32xf32>
    %1240 = arith.mulf %1239, %419 : vector<2x32xf32>
    %1241 = vector.extract_strided_slice %1237 {offsets = [0, 10], sizes = [2, 1], strides = [1, 1]} : vector<2x12xf32> to vector<2x1xf32>
    %1242 = vector.broadcast %1241 : vector<2x1xf32> to vector<2x32xf32>
    %1243 = arith.mulf %1242, %449 : vector<2x32xf32>
    %1244 = arith.addf %1240, %1243 : vector<2x32xf32>
    %1245 = vector.extract_strided_slice %1237 {offsets = [0, 9], sizes = [2, 1], strides = [1, 1]} : vector<2x12xf32> to vector<2x1xf32>
    %1246 = vector.broadcast %1245 : vector<2x1xf32> to vector<2x32xf32>
    %1247 = arith.mulf %1246, %479 : vector<2x32xf32>
    %1248 = arith.addf %1244, %1247 : vector<2x32xf32>
    %1249 = vector.extract_strided_slice %1237 {offsets = [0, 8], sizes = [2, 1], strides = [1, 1]} : vector<2x12xf32> to vector<2x1xf32>
    %1250 = vector.broadcast %1249 : vector<2x1xf32> to vector<2x32xf32>
    %1251 = arith.mulf %1250, %509 : vector<2x32xf32>
    %1252 = arith.addf %1248, %1251 : vector<2x32xf32>
    %1253 = vector.extract_strided_slice %1237 {offsets = [0, 7], sizes = [2, 1], strides = [1, 1]} : vector<2x12xf32> to vector<2x1xf32>
    %1254 = vector.broadcast %1253 : vector<2x1xf32> to vector<2x32xf32>
    %1255 = arith.mulf %1254, %539 : vector<2x32xf32>
    %1256 = arith.addf %1252, %1255 : vector<2x32xf32>
    %1257 = vector.extract_strided_slice %1237 {offsets = [0, 6], sizes = [2, 1], strides = [1, 1]} : vector<2x12xf32> to vector<2x1xf32>
    %1258 = vector.broadcast %1257 : vector<2x1xf32> to vector<2x32xf32>
    %1259 = arith.mulf %1258, %569 : vector<2x32xf32>
    %1260 = arith.addf %1256, %1259 : vector<2x32xf32>
    %1261 = vector.extract_strided_slice %1237 {offsets = [0, 5], sizes = [2, 1], strides = [1, 1]} : vector<2x12xf32> to vector<2x1xf32>
    %1262 = vector.broadcast %1261 : vector<2x1xf32> to vector<2x32xf32>
    %1263 = arith.mulf %1262, %599 : vector<2x32xf32>
    %1264 = arith.addf %1260, %1263 : vector<2x32xf32>
    %1265 = vector.extract_strided_slice %1237 {offsets = [0, 4], sizes = [2, 1], strides = [1, 1]} : vector<2x12xf32> to vector<2x1xf32>
    %1266 = vector.broadcast %1265 : vector<2x1xf32> to vector<2x32xf32>
    %1267 = arith.mulf %1266, %629 : vector<2x32xf32>
    %1268 = arith.addf %1264, %1267 : vector<2x32xf32>
    %1269 = vector.extract_strided_slice %1237 {offsets = [0, 3], sizes = [2, 1], strides = [1, 1]} : vector<2x12xf32> to vector<2x1xf32>
    %1270 = vector.broadcast %1269 : vector<2x1xf32> to vector<2x32xf32>
    %1271 = arith.mulf %1270, %659 : vector<2x32xf32>
    %1272 = arith.addf %1268, %1271 : vector<2x32xf32>
    %1273 = vector.extract_strided_slice %1237 {offsets = [0, 2], sizes = [2, 1], strides = [1, 1]} : vector<2x12xf32> to vector<2x1xf32>
    %1274 = vector.broadcast %1273 : vector<2x1xf32> to vector<2x32xf32>
    %1275 = arith.mulf %1274, %689 : vector<2x32xf32>
    %1276 = arith.addf %1272, %1275 : vector<2x32xf32>
    %1277 = vector.extract_strided_slice %1237 {offsets = [0, 1], sizes = [2, 1], strides = [1, 1]} : vector<2x12xf32> to vector<2x1xf32>
    %1278 = vector.broadcast %1277 : vector<2x1xf32> to vector<2x32xf32>
    %1279 = arith.mulf %1278, %719 : vector<2x32xf32>
    %1280 = arith.addf %1276, %1279 : vector<2x32xf32>
    %1281 = vector.extract_strided_slice %1237 {offsets = [0, 0], sizes = [2, 1], strides = [1, 1]} : vector<2x12xf32> to vector<2x1xf32>
    %1282 = vector.broadcast %1281 : vector<2x1xf32> to vector<2x32xf32>
    %1283 = arith.mulf %1282, %749 : vector<2x32xf32>
    %1284 = arith.addf %1280, %1283 : vector<2x32xf32>
    %cst_245 = arith.constant dense<0.000000e+00> : vector<2x8xf32>
    %1285 = tpu.matmul %1214, %753, %cst_245 {dimension_numbers = #tpu.dot_dimension_numbers<[1], [0], [0], [1], [0, 0, 1, 1], [], []>} : vector<2x8xf32>, vector<8x8xf32>, vector<2x8xf32> -> vector<2x8xf32>
    %cst_246 = arith.constant dense<0.000000e+00> : vector<2x8xf32>
    %1286 = tpu.matmul %1284, %754, %cst_246 {dimension_numbers = #tpu.dot_dimension_numbers<[1], [0], [0], [1], [0, 0, 1, 1], [], []>} : vector<2x32xf32>, vector<32x8xf32>, vector<2x8xf32> -> vector<2x8xf32>
    %1287 = arith.addf %1285, %1286 : vector<2x8xf32>
    %1288 = vector.broadcast %755 : vector<1x8xf32> to vector<2x8xf32>
    %1289 = arith.addf %1287, %1288 : vector<2x8xf32>
    %cst_247 = arith.constant 0.000000e+00 : f32
    %1290 = vector.broadcast %cst_247 : f32 to vector<2x8xf32>
    %1291 = arith.maximumf %1289, %1290 : vector<2x8xf32>
    %cst_248 = arith.constant dense<0.000000e+00> : vector<2x96xf32>
    %1292 = tpu.matmul %1291, %758, %cst_248 {dimension_numbers = #tpu.dot_dimension_numbers<[1], [0], [0], [1], [0, 0, 1, 1], [], []>} : vector<2x8xf32>, vector<8x96xf32>, vector<2x96xf32> -> vector<2x96xf32>
    %1293 = vector.broadcast %760 : vector<1x96xf32> to vector<2x96xf32>
    %1294 = arith.addf %1292, %1293 : vector<2x96xf32>
    %cst_249 = arith.constant dense<0.000000e+00> : vector<2x96xf32>
    %1295 = tpu.matmul %1174, %759, %cst_249 {dimension_numbers = #tpu.dot_dimension_numbers<[1], [0], [0], [1], [0, 0, 1, 1], [], []>} : vector<2x32xf32>, vector<32x96xf32>, vector<2x96xf32> -> vector<2x96xf32>
    %1296 = vector.broadcast %761 : vector<1x96xf32> to vector<2x96xf32>
    %1297 = arith.addf %1295, %1296 : vector<2x96xf32>
    %1298 = vector.extract_strided_slice %1294 {offsets = [0, 0], sizes = [2, 32], strides = [1, 1]} : vector<2x96xf32> to vector<2x32xf32>
    %1299 = vector.extract_strided_slice %1297 {offsets = [0, 0], sizes = [2, 32], strides = [1, 1]} : vector<2x96xf32> to vector<2x32xf32>
    %1300 = arith.addf %1298, %1299 : vector<2x32xf32>
    %1301 = arith.negf %1300 : vector<2x32xf32>
    %1302 = math.exp %1301 : vector<2x32xf32>
    %cst_250 = arith.constant 1.000000e+00 : f32
    %1303 = vector.broadcast %cst_250 : f32 to vector<2x32xf32>
    %1304 = arith.addf %1303, %1302 : vector<2x32xf32>
    %1305 = arith.divf %1303, %1304 : vector<2x32xf32>
    %1306 = vector.extract_strided_slice %1294 {offsets = [0, 32], sizes = [2, 32], strides = [1, 1]} : vector<2x96xf32> to vector<2x32xf32>
    %1307 = vector.extract_strided_slice %1297 {offsets = [0, 32], sizes = [2, 32], strides = [1, 1]} : vector<2x96xf32> to vector<2x32xf32>
    %1308 = arith.addf %1306, %1307 : vector<2x32xf32>
    %1309 = arith.negf %1308 : vector<2x32xf32>
    %1310 = math.exp %1309 : vector<2x32xf32>
    %cst_251 = arith.constant 1.000000e+00 : f32
    %1311 = vector.broadcast %cst_251 : f32 to vector<2x32xf32>
    %1312 = arith.addf %1311, %1310 : vector<2x32xf32>
    %1313 = arith.divf %1311, %1312 : vector<2x32xf32>
    %1314 = vector.extract_strided_slice %1294 {offsets = [0, 64], sizes = [2, 32], strides = [1, 1]} : vector<2x96xf32> to vector<2x32xf32>
    %1315 = vector.extract_strided_slice %1297 {offsets = [0, 64], sizes = [2, 32], strides = [1, 1]} : vector<2x96xf32> to vector<2x32xf32>
    %1316 = arith.mulf %1305, %1315 : vector<2x32xf32>
    %1317 = arith.addf %1314, %1316 : vector<2x32xf32>
    %1318 = math.tanh %1317 : vector<2x32xf32>
    %cst_252 = arith.constant 1.000000e+00 : f32
    %1319 = vector.broadcast %cst_252 : f32 to vector<2x32xf32>
    %1320 = arith.subf %1319, %1313 : vector<2x32xf32>
    %1321 = arith.mulf %1320, %1318 : vector<2x32xf32>
    %1322 = arith.mulf %1313, %1174 : vector<2x32xf32>
    %1323 = arith.addf %1321, %1322 : vector<2x32xf32>
    %cst_253 = arith.constant dense<0.000000e+00> : vector<2x96xf32>
    %1324 = tpu.matmul %1323, %762, %cst_253 {dimension_numbers = #tpu.dot_dimension_numbers<[1], [0], [0], [1], [0, 0, 1, 1], [], []>} : vector<2x32xf32>, vector<32x96xf32>, vector<2x96xf32> -> vector<2x96xf32>
    %1325 = vector.broadcast %764 : vector<1x96xf32> to vector<2x96xf32>
    %1326 = arith.addf %1324, %1325 : vector<2x96xf32>
    %cst_254 = arith.constant dense<0.000000e+00> : vector<2x96xf32>
    %1327 = tpu.matmul %1206, %763, %cst_254 {dimension_numbers = #tpu.dot_dimension_numbers<[1], [0], [0], [1], [0, 0, 1, 1], [], []>} : vector<2x32xf32>, vector<32x96xf32>, vector<2x96xf32> -> vector<2x96xf32>
    %1328 = vector.broadcast %765 : vector<1x96xf32> to vector<2x96xf32>
    %1329 = arith.addf %1327, %1328 : vector<2x96xf32>
    %1330 = vector.extract_strided_slice %1326 {offsets = [0, 0], sizes = [2, 32], strides = [1, 1]} : vector<2x96xf32> to vector<2x32xf32>
    %1331 = vector.extract_strided_slice %1329 {offsets = [0, 0], sizes = [2, 32], strides = [1, 1]} : vector<2x96xf32> to vector<2x32xf32>
    %1332 = arith.addf %1330, %1331 : vector<2x32xf32>
    %1333 = arith.negf %1332 : vector<2x32xf32>
    %1334 = math.exp %1333 : vector<2x32xf32>
    %cst_255 = arith.constant 1.000000e+00 : f32
    %1335 = vector.broadcast %cst_255 : f32 to vector<2x32xf32>
    %1336 = arith.addf %1335, %1334 : vector<2x32xf32>
    %1337 = arith.divf %1335, %1336 : vector<2x32xf32>
    %1338 = vector.extract_strided_slice %1326 {offsets = [0, 32], sizes = [2, 32], strides = [1, 1]} : vector<2x96xf32> to vector<2x32xf32>
    %1339 = vector.extract_strided_slice %1329 {offsets = [0, 32], sizes = [2, 32], strides = [1, 1]} : vector<2x96xf32> to vector<2x32xf32>
    %1340 = arith.addf %1338, %1339 : vector<2x32xf32>
    %1341 = arith.negf %1340 : vector<2x32xf32>
    %1342 = math.exp %1341 : vector<2x32xf32>
    %cst_256 = arith.constant 1.000000e+00 : f32
    %1343 = vector.broadcast %cst_256 : f32 to vector<2x32xf32>
    %1344 = arith.addf %1343, %1342 : vector<2x32xf32>
    %1345 = arith.divf %1343, %1344 : vector<2x32xf32>
    %1346 = vector.extract_strided_slice %1326 {offsets = [0, 64], sizes = [2, 32], strides = [1, 1]} : vector<2x96xf32> to vector<2x32xf32>
    %1347 = vector.extract_strided_slice %1329 {offsets = [0, 64], sizes = [2, 32], strides = [1, 1]} : vector<2x96xf32> to vector<2x32xf32>
    %1348 = arith.mulf %1337, %1347 : vector<2x32xf32>
    %1349 = arith.addf %1346, %1348 : vector<2x32xf32>
    %1350 = math.tanh %1349 : vector<2x32xf32>
    %cst_257 = arith.constant 1.000000e+00 : f32
    %1351 = vector.broadcast %cst_257 : f32 to vector<2x32xf32>
    %1352 = arith.subf %1351, %1345 : vector<2x32xf32>
    %1353 = arith.mulf %1352, %1350 : vector<2x32xf32>
    %1354 = arith.mulf %1345, %1206 : vector<2x32xf32>
    %1355 = arith.addf %1353, %1354 : vector<2x32xf32>
    %cst_258 = arith.constant dense<0.000000e+00> : vector<2x8xf32>
    %1356 = tpu.matmul %1355, %756, %cst_258 {dimension_numbers = #tpu.dot_dimension_numbers<[1], [0], [0], [1], [0, 0, 1, 1], [], []>} : vector<2x32xf32>, vector<32x8xf32>, vector<2x8xf32> -> vector<2x8xf32>
    %1357 = vector.broadcast %757 : vector<1x8xf32> to vector<2x8xf32>
    %1358 = arith.addf %1356, %1357 : vector<2x8xf32>
    %c3_259 = arith.constant 3 : index
    %c0_260 = arith.constant 0 : index
    %c0_261 = arith.constant 0 : index
    %1359 = vector.load %arg9[%c3_259, %c0_260, %c0_261] : memref<4x2x8xf32, #tpu.memory_space<vmem>>, vector<1x2x8xf32>
    %1360 = vector.shape_cast %1359 : vector<1x2x8xf32> to vector<2x8xf32>
    %1361 = vector.shape_cast %1358 : vector<2x8xf32> to vector<1x2x8xf32>
    tpu.vector_store %arg9[%c3_259, %c0_260, %c0_261], %1361 {strides = array<i32>} : memref<4x2x8xf32, #tpu.memory_space<vmem>>, vector<1x2x8xf32>,
    return
  }
}

</mosaic_0001>

<bundles_post_ra>
// kernel: seq2seq_attn_r_forward.1
= control target key start
LH: loop header
LB: loop body
LE: loop exit
PB: predicated region body
PF: predicated region fallthrough
CT: control target
= control target key end

     0   :  { %v9174_v0 = vmov 0.0|0.0   ;;  %v9192_v4 = vmov 0.0   ;;  %vm46_vm0 = vcmask 64512   ;;  %vm7829_vm1 = vmmov 0   ;;  %s7830_s23 = smov 64   ;;  %s7831_s30 = smov 96   ;;  %s9164_s2 = inlined_call_operand.vmem [shape: f32[104,96], index: 2, kind: input, shape index: {}]   ;;  %s9165_s0 = inlined_call_operand.vmem [shape: f32[24,8], index: 0, kind: input, shape index: {}]   ;;  %s9166_s3 = inlined_call_operand.vmem [shape: f32[4,96], index: 3, kind: input, shape index: {}]   ;;  %s9167_s6 = inlined_call_operand.vmem [shape: f32[41,16], index: 6, kind: input, shape index: {}]   ;;  %s9168_s1 = inlined_call_operand.vmem [shape: f32[4,2,8], index: 1, kind: input, shape index: {}]   ;;  %s9169_s7 = inlined_call_operand.vmem [shape: f32[41,8], index: 7, kind: input, shape index: {}]   ;;  %s9170_s4 = inlined_call_operand.vmem [shape: f32[104,96], index: 4, kind: input, shape index: {}]   ;;  %s9171_s5 = inlined_call_operand.vmem [shape: f32[4,96], index: 5, kind: input, shape index: {}]   ;;  %s9172_s8 = inlined_call_operand.vmem [shape: f32[33,8], index: 8, kind: input, shape index: {}]   ;;  %s9173_s9 = inlined_call_operand.vmem [shape: f32[4,2,8], index: 9, kind: output, shape index: {}]  }
   0x1   :  { %7240 = vmatprep.subr.bf16.mxu1 %v9174_v0  ;;  %v36_v1 = vld [vmem:[%s9164_s2 + $0x8] sm:$0xff]  ;;  %v37_v2 = vld [vmem:[%s9164_s2 + $0x10] sm:$0xff]  ;;  %v38_v3 = vld [vmem:[%s9164_s2 + $0x18] sm:$0xff]  ;;  %6624 = vmatprep.subr.mxu0 %v9192_v4  ;;  %vm244_vm2 = vcmask 254976   ;;  %vm140_vm3 = vcmask 261120   ;;  %vm352_vm4 = vcmask 257026  }
   0x2   :  { %v7906_v5 = vpack.c.bf16 %v37_v2, %v36_v1  ;;  %v39_v6 = vld [vmem:[%s9164_s2 + $0x20] sm:$0xff]  ;;  %6626 = vmatprep.mubr.msk.f32.mxu0 %vm7829_vm1, %v9192_v4  ;;  %6643 = vmatprep.mubr.msk.f32.mxu1 %vm7829_vm1, %v9192_v4  ;;  %v33_v27 = vld [vmem:[%s9165_s0 + $0x8] sm:$0xff]  ;;  %v34_v28 = vld [vmem:[%s9165_s0 + $0x10] sm:$0xff]  ;;  %vm574_vm5 = vcmask 261126   ;;  %vm463_vm6 = vcmask 259076   ;;  %vm2996_vm7 = vcmask 123904  }
   0x3   :  { %v35_v7 = vld [vmem:[%s9164_s2] sm:$0xff]  ;;  %v7922_v9 = vpack.c.bf16 %v39_v6, %v38_v3  ;;  %vm3008_vm8 = vcmask 91136   ;;  %s7844_s21 = smov 32   ;;  %vm3725_vm9 = vcmask 58368  }
   0x4   :  { %v32_v8 = vld [vmem:[%s9165_s0] sm:$0xff]  ;;  %6625 = vmatpush3.msra.mxu0 %v35_v7  ;;  %7242 = vmatpush3.bf16.msra.mxu1 %v7906_v5 }
   0x5   :  { %6627 = vmatmul.mubr.msk.f32.vlgmr.msra.gmra.mrb[0].mxu0 %vm46_vm0, %v32_v8  ;;  %7243 = vmatprep.subr.bf16.mxu1 %v9174_v0  ;;  %v7945_v12 = vld [vmem:[%s9166_s3 + $0x1] ss:$0 sm:$0xff]  ;;  %v7952_v16 = vld [vmem:[%s9166_s3] ss:$0 sm:$0xff] }
   0x6   :  { %7246 = vmatprep.subr.bf16.mxu0 %v9174_v0  ;;  %6629 = vmatprep.mubr.msk.f32.mxu0 %vm7829_vm1, %v9192_v4 }
   0x7   :  { %7248 = vmatpush3.bf16.msra.mxu0 %v7906_v5 }
   0x8   :  { %7249 = vmatprep.subr.bf16.mxu0 %v9174_v0  ;;  %7245 = vmatpush3.bf16.msra.mxu1 %v7922_v9 }
   0x9   :  { %7252 = vmatprep.subr.bf16.mxu1 %v9174_v0  ;;  %6630 = vmatmul.mubr.msk.f32.gmra.mrb[2].mxu0 %vm46_vm0, %v33_v27 }
   0xa   :  { %6632 = vmatprep.mubr.msk.f32.mxu0 %vm7829_vm1, %v9192_v4 }
   0xb   :  { %7251 = vmatpush3.bf16.msra.mxu0 %v7922_v9  ;;  %6644 = vmatmul.mubr.f32.vlgmr.msra.gmra.mrb[0].mxu1 %v9192_v4 }
   0xc   :  { %7258 = vmatprep.subr.bf16.mxu0 %v9174_v0  ;;  %7254 = vmatpush3.bf16.msra.mxu1 %v7906_v5 }
   0xd   :  { %6665 = vmatprep.mubr.msk.f32.mxu1 %vm7829_vm1, %v9192_v4  ;;  %7255 = vmatprep.subr.bf16.mxu1 %v9174_v0 }
   0xe   :  { %6633 = vmatmul.mubr.msk.f32.gmra.mrb[4].mxu0 %vm46_vm0, %v34_v28 }
   0xf   :  { %6654 = vmatprep.mubr.msk.f32.mxu0 %vm7829_vm1, %v9192_v4 }
  0x10   :  { %7257 = vmatpush3.bf16.msra.mxu1 %v7922_v9 }
  0x11   :  { %7264 = vmatprep.subr.bf16.mxu1 %v9174_v0 }
  0xd8   :  { %v122_v10 = vpop.f32.mrb[0].mxu0 }
  0xd9   :  { %v6628_v11 = vpop.f32.mrb[1].mxu0  ;;  %v7955_v17 = vadd.f32 %v7952_v16, %v122_v10 }
  0xdc   :  { %v7974_v35 = vpop.f32.mrb[2].mxu0 }
  0xdd   :  { %v6631_v36 = vpop.f32.mrb[3].mxu0 }
  0xde   :  { %v210_v13 = vpop.f32.mrb[0].mxu1 }
  0xdf   :  { %v211_v14 = vadd.f32 %v7945_v12, %v210_v13  ;;  %v6645_v15 = vpop.f32.mrb[1].mxu1 }
  0xe1   :  { %222 = vrot.lane.b32.xlu0 %v211_v14, %s7830_s23  ;;  %v214_v18 = vadd.f32 %v211_v14, %v7955_v17  ;;  %v7976_v37 = vpop.f32.mrb[4].mxu0 }
  0xe2   :  { %v6634_v38 = vpop.f32.mrb[5].mxu0 }
  0xe3   :  { %v6241_v19 = vmul.f32 -1.442695, %v214_v18 }
  0xe5   :  { %7601 = vpow2.f32 %v6241_v19 }
  0xef   :  { %v7602_v20 = vpop.eup %7601 }
  0xf0   :  { %v218_v21 = vadd.f32 1.0, %v7602_v20 }
  0xf2   :  { %7603 = vrcp.f32 %v218_v21 }
  0xfc   :  { %v7604_v22 = vpop.eup %7603 }
  0xfd   :  { %v232_v30 = vsub.f32 1.0, %v7604_v22  ;;  %v238_v32 = vmul.f32 0.0, %v7604_v22 }
 0x153   :  { %v223_v23 = vpop.permute.xlu0 %222 }
 0x154   :  { %v225_v24 = vmul.f32 %v7604_v22, %v223_v23 }
 0x156   :  { %227 = vrot.lane.b32.xlu0 %v225_v24, %s7830_s23 }
 0x1c8   :  { %v228_v25 = vpop.permute.xlu0 %227 }
 0x1c9   :  { %v230_v26 = vadd.f32 %v228_v25, %v7955_v17 }
 0x1cb   :  { %7605 = vtanh.f32 %v230_v26 }
 0x1d5   :  { %v7606_v29 = vpop.eup %7605 }
 0x1d6   :  { %234 = vrot.lane.b32.xlu1 %v7606_v29, %s7831_s30 }
 0x248   :  { %v235_v31 = vpop.permute.xlu1 %234 }
 0x249   :  { %v237_v33 = vmul.f32 %v235_v31, %v232_v30 }
 0x24b   :  { %v239_v34 = vadd.f32 %v238_v32, %v237_v33 }
 0x24d   :  { %241 = vrot.lane.b32.xlu1 %v239_v34, %s7831_s30  ;;  %v344_v54 = vrot.slane %v239_v34, 6 }
 0x2bf   :  { %v242_v39 = vpop.permute.xlu1 %241 }
 0x2c0   :  { %245 = vst.msk [vmem:[#allocation2] sm:$0x3] %vm244_vm2, %v242_v39  ;;  %6655 = vmatmul.mubr.msk.f32.vlgmr.msra.gmra.mrb[6].mxu0 %vm140_vm3, %v242_v39 }
 0x2c1   :  { %7260 = vmatpush3.bf16.msra.mxu0 %v7906_v5  ;;  %6676 = vmatprep.mubr.msk.f32.mxu0 %vm7829_vm1, %v9192_v4 }
 0x2c2   :  { %7261 = vmatprep.subr.bf16.mxu0 %v9174_v0 }
 0x2c5   :  { %7263 = vmatpush3.bf16.msra.mxu0 %v7922_v9 }
 0x2c6   :  { %7270 = vmatprep.subr.bf16.mxu0 %v9174_v0 }
 0x393   :  { %v314_v40 = vpop.f32.mrb[6].mxu0 }
 0x394   :  { %v315_v41 = vadd.f32 %v7945_v12, %v314_v40  ;;  %v6656_v42 = vpop.f32.mrb[7].mxu0 }
 0x396   :  { %v319_v43 = vrot.slane %v315_v41, 6 }
 0x398   :  { %328 = vrot.lane.b32.xlu0 %v319_v43, %s7830_s23  ;;  %v321_v44 = vadd.f32 %v319_v43, %v7955_v17 }
 0x39a   :  { %v6243_v45 = vmul.f32 -1.442695, %v321_v44 }
 0x39c   :  { %7607 = vpow2.f32 %v6243_v45 }
 0x3a6   :  { %v7608_v46 = vpop.eup %7607 }
 0x3a7   :  { %v325_v47 = vadd.f32 1.0, %v7608_v46 }
 0x3a9   :  { %7609 = vrcp.f32 %v325_v47 }
 0x3b3   :  { %v7610_v48 = vpop.eup %7609 }
 0x3b4   :  { %v338_v55 = vsub.f32 1.0, %v7610_v48  ;;  %v346_v57 = vmul.f32 %v7610_v48, %v344_v54 }
 0x40a   :  { %v329_v49 = vpop.permute.xlu0 %328 }
 0x40b   :  { %v331_v50 = vmul.f32 %v7610_v48, %v329_v49 }
 0x40d   :  { %333 = vrot.lane.b32.xlu1 %v331_v50, %s7830_s23 }
 0x47f   :  { %v334_v51 = vpop.permute.xlu1 %333 }
 0x480   :  { %v336_v52 = vadd.f32 %v334_v51, %v7955_v17 }
 0x482   :  { %7611 = vtanh.f32 %v336_v52 }
 0x48c   :  { %v7612_v53 = vpop.eup %7611 }
 0x48d   :  { %340 = vrot.lane.b32.xlu0 %v7612_v53, %s7831_s30  ;;  %v8043_v53 = vadd.f32 %v7952_v16, %v7974_v35 }
 0x4ff   :  { %v341_v56 = vpop.permute.xlu0 %340 }
 0x500   :  { %v343_v58 = vmul.f32 %v341_v56, %v338_v55 }
 0x502   :  { %v7992_v59 = vadd.f32 %v346_v57, %v343_v58 }
 0x504   :  { %v354_v60 = vrot.slane %v7992_v59, 2  ;;  %v455_v20 = vrot.slane %v7992_v59, 6 }
 0x506   :  { %355 = vrot.lane.b32.xlu1 %v354_v60, %s7831_s30 }
 0x578   :  { %v356_v61 = vpop.permute.xlu1 %355 }
 0x579   :  { %6666 = vmatmul.mubr.msk.f32.vlgmr.msra.gmra.mrb[2].mxu1 %vm140_vm3, %v356_v61 }
 0x57a   :  { %7266 = vmatpush3.bf16.msra.mxu1 %v7906_v5  ;;  %6687 = vmatprep.mubr.msk.f32.mxu1 %vm7829_vm1, %v9192_v4 }
 0x57b   :  { %7267 = vmatprep.subr.bf16.mxu1 %v9174_v0 }
 0x57e   :  { %7269 = vmatpush3.bf16.msra.mxu1 %v7922_v9 }
 0x57f   :  { %7276 = vmatprep.subr.bf16.mxu1 %v9174_v0 }
 0x64c   :  { %v425_v62 = vpop.f32.mrb[2].mxu1 }
 0x64d   :  { %v426_v63 = vadd.f32 %v7945_v12, %v425_v62  ;;  %v6667_v1 = vpop.f32.mrb[3].mxu1 }
 0x64f   :  { %v430_v2 = vrot.slane %v426_v63, 4 }
 0x651   :  { %439 = vrot.lane.b32.xlu0 %v430_v2, %s7830_s23  ;;  %v432_v3 = vadd.f32 %v430_v2, %v7955_v17 }
 0x653   :  { %v6245_v6 = vmul.f32 -1.442695, %v432_v3 }
 0x655   :  { %7613 = vpow2.f32 %v6245_v6 }
 0x65f   :  { %v7614_v7 = vpop.eup %7613 }
 0x660   :  { %v436_v8 = vadd.f32 1.0, %v7614_v7 }
 0x662   :  { %7615 = vrcp.f32 %v436_v8 }
 0x66c   :  { %v7616_v10 = vpop.eup %7615 }
 0x66d   :  { %v449_v19 = vsub.f32 1.0, %v7616_v10  ;;  %v457_v22 = vmul.f32 %v7616_v10, %v455_v20 }
 0x6c3   :  { %v440_v11 = vpop.permute.xlu0 %439 }
 0x6c4   :  { %v442_v13 = vmul.f32 %v7616_v10, %v440_v11 }
 0x6c6   :  { %444 = vrot.lane.b32.xlu1 %v442_v13, %s7830_s23 }
 0x738   :  { %v445_v14 = vpop.permute.xlu1 %444 }
 0x739   :  { %v447_v15 = vadd.f32 %v445_v14, %v7955_v17 }
 0x73b   :  { %7617 = vtanh.f32 %v447_v15 }
 0x745   :  { %v7618_v18 = vpop.eup %7617 }
 0x746   :  { %451 = vrot.lane.b32.xlu0 %v7618_v18, %s7831_s30 }
 0x7b8   :  { %v452_v21 = vpop.permute.xlu0 %451 }
 0x7b9   :  { %v454_v23 = vmul.f32 %v452_v21, %v449_v19 }
 0x7bb   :  { %v8010_v24 = vadd.f32 %v457_v22, %v454_v23 }
 0x7bd   :  { %v465_v25 = vrot.slane %v8010_v24, 4  ;;  %v566_v44 = vrot.slane %v8010_v24, 6 }
 0x7bf   :  { %466 = vrot.lane.b32.xlu1 %v465_v25, %s7831_s30 }
 0x831   :  { %v467_v26 = vpop.permute.xlu1 %466 }
 0x832   :  { %6677 = vmatmul.mubr.msk.f32.vlgmr.msra.gmra.mrb[8].mxu0 %vm140_vm3, %v467_v26 }
 0x833   :  { %7272 = vmatpush3.bf16.msra.mxu0 %v7906_v5  ;;  %6698 = vmatprep.mubr.msk.f32.mxu0 %vm7829_vm1, %v9192_v4 }
 0x834   :  { %7273 = vmatprep.subr.bf16.mxu0 %v9174_v0 }
 0x837   :  { %7275 = vmatpush3.bf16.msra.mxu0 %v7922_v9 }
 0x838   :  { %7282 = vmatprep.subr.bf16.mxu0 %v9174_v0 }
 0x905   :  { %v536_v27 = vpop.f32.mrb[8].mxu0 }
 0x906   :  { %v537_v28 = vadd.f32 %v7945_v12, %v536_v27  ;;  %v6678_v29 = vpop.f32.mrb[9].mxu0 }
 0x908   :  { %v541_v30 = vrot.slane %v537_v28, 2 }
 0x90a   :  { %550 = vrot.lane.b32.xlu0 %v541_v30, %s7830_s23  ;;  %v543_v31 = vadd.f32 %v541_v30, %v7955_v17 }
 0x90c   :  { %v6247_v32 = vmul.f32 -1.442695, %v543_v31 }
 0x90e   :  { %7619 = vpow2.f32 %v6247_v32 }
 0x918   :  { %v7620_v33 = vpop.eup %7619 }
 0x919   :  { %v547_v34 = vadd.f32 1.0, %v7620_v33 }
 0x91b   :  { %7621 = vrcp.f32 %v547_v34 }
 0x925   :  { %v7622_v36 = vpop.eup %7621 }
 0x926   :  { %v560_v43 = vsub.f32 1.0, %v7622_v36  ;;  %v568_v46 = vmul.f32 %v7622_v36, %v566_v44 }
 0x97c   :  { %v551_v38 = vpop.permute.xlu0 %550 }
 0x97d   :  { %v553_v39 = vmul.f32 %v7622_v36, %v551_v38 }
 0x97f   :  { %555 = vrot.lane.b32.xlu1 %v553_v39, %s7830_s23 }
 0x9f1   :  { %v556_v40 = vpop.permute.xlu1 %555 }
 0x9f2   :  { %v558_v41 = vadd.f32 %v556_v40, %v7955_v17 }
 0x9f4   :  { %7623 = vtanh.f32 %v558_v41 }
 0x9fe   :  { %v7624_v42 = vpop.eup %7623 }
 0x9ff   :  { %562 = vrot.lane.b32.xlu0 %v7624_v42, %s7831_s30 }
 0xa71   :  { %v563_v45 = vpop.permute.xlu0 %562 }
 0xa72   :  { %v565_v47 = vmul.f32 %v563_v45, %v560_v43 }
 0xa74   :  { %v8028_v48 = vadd.f32 %v568_v46, %v565_v47 }
 0xa76   :  { %v576_v49 = vrot.slane %v8028_v48, 6 }
 0xa78   :  { %577 = vrot.lane.b32.xlu1 %v576_v49, %s7831_s30 }
 0xaea   :  { %v578_v50 = vpop.permute.xlu1 %577 }
 0xaeb   :  { %6688 = vmatmul.mubr.msk.f32.vlgmr.msra.gmra.mrb[4].mxu1 %vm140_vm3, %v578_v50 }
 0xaec   :  { %7278 = vmatpush3.bf16.msra.mxu1 %v7906_v5  ;;  %6709 = vmatprep.mubr.msk.f32.mxu1 %vm7829_vm1, %v9192_v4 }
 0xaed   :  { %7279 = vmatprep.subr.bf16.mxu1 %v9174_v0 }
 0xaf0   :  { %7281 = vmatpush3.bf16.msra.mxu1 %v7922_v9 }
 0xaf1   :  { %7288 = vmatprep.subr.bf16.mxu1 %v9174_v0 }
 0xbbe   :  { %v647_v17 = vpop.f32.mrb[4].mxu1 }
 0xbbf   :  { %v648_v51 = vadd.f32 %v7945_v12, %v647_v17  ;;  %v6689_v52 = vpop.f32.mrb[5].mxu1 }
 0xbc1   :  { %659 = vrot.lane.b32.xlu0 %v648_v51, %s7830_s23  ;;  %v651_v54 = vadd.f32 %v648_v51, %v8043_v53 }
 0xbc3   :  { %v6249_v55 = vmul.f32 -1.442695, %v651_v54 }
 0xbc5   :  { %7625 = vpow2.f32 %v6249_v55 }
 0xbcf   :  { %v7626_v56 = vpop.eup %7625 }
 0xbd0   :  { %v655_v57 = vadd.f32 1.0, %v7626_v56 }
 0xbd2   :  { %7627 = vrcp.f32 %v655_v57 }
 0xbdc   :  { %v7628_v58 = vpop.eup %7627 }
 0xbdd   :  { %v669_v35 = vsub.f32 1.0, %v7628_v58  ;;  %v676_v3 = vmul.f32 %v7628_v58, %v576_v49 }
 0xc33   :  { %v660_v60 = vpop.permute.xlu0 %659 }
 0xc34   :  { %v662_v61 = vmul.f32 %v7628_v58, %v660_v60 }
 0xc36   :  { %664 = vrot.lane.b32.xlu1 %v662_v61, %s7830_s23 }
 0xca8   :  { %v665_v62 = vpop.permute.xlu1 %664 }
 0xca9   :  { %v667_v63 = vadd.f32 %v665_v62, %v8043_v53 }
 0xcab   :  { %7629 = vtanh.f32 %v667_v63 }
 0xcb5   :  { %v7630_v1 = vpop.eup %7629 }
 0xcb6   :  { %671 = vrot.lane.b32.xlu0 %v7630_v1, %s7831_s30 }
 0xd28   :  { %v672_v2 = vpop.permute.xlu0 %671 }
 0xd29   :  { %v674_v6 = vmul.f32 %v672_v2, %v669_v35 }
 0xd2b   :  { %v677_v7 = vadd.f32 %v676_v3, %v674_v6 }
 0xd2d   :  { %679 = vrot.lane.b32.xlu1 %v677_v7, %s7831_s30  ;;  %v781_v28 = vrot.slane %v677_v7, 6 }
 0xd9f   :  { %v680_v8 = vpop.permute.xlu1 %679 }
 0xda0   :  { %682 = vst.msk [vmem:[#allocation2 + $0x8] sm:$0x3] %vm244_vm2, %v680_v8  ;;  %6699 = vmatmul.mubr.msk.f32.vlgmr.msra.gmra.mrb[10].mxu0 %vm140_vm3, %v680_v8 }
 0xda1   :  { %7284 = vmatpush3.bf16.msra.mxu0 %v7906_v5  ;;  %6720 = vmatprep.mubr.msk.f32.mxu0 %vm7829_vm1, %v9192_v4 }
 0xda2   :  { %7285 = vmatprep.subr.bf16.mxu0 %v9174_v0 }
 0xda5   :  { %7287 = vmatpush3.bf16.msra.mxu0 %v7922_v9 }
 0xda6   :  { %7294 = vmatprep.subr.bf16.mxu0 %v9174_v0 }
 0xe73   :  { %v751_v10 = vpop.f32.mrb[10].mxu0 }
 0xe74   :  { %v752_v11 = vadd.f32 %v7945_v12, %v751_v10  ;;  %v6700_v13 = vpop.f32.mrb[11].mxu0 }
 0xe76   :  { %v756_v14 = vrot.slane %v752_v11, 6 }
 0xe78   :  { %765 = vrot.lane.b32.xlu0 %v756_v14, %s7830_s23  ;;  %v758_v15 = vadd.f32 %v756_v14, %v8043_v53 }
 0xe7a   :  { %v6251_v18 = vmul.f32 -1.442695, %v758_v15 }
 0xe7c   :  { %7631 = vpow2.f32 %v6251_v18 }
 0xe86   :  { %v7632_v19 = vpop.eup %7631 }
 0xe87   :  { %v762_v20 = vadd.f32 1.0, %v7632_v19 }
 0xe89   :  { %7633 = vrcp.f32 %v762_v20 }
 0xe93   :  { %v7634_v21 = vpop.eup %7633 }
 0xe94   :  { %v775_v29 = vsub.f32 1.0, %v7634_v21  ;;  %v783_v31 = vmul.f32 %v7634_v21, %v781_v28 }
 0xeea   :  { %v766_v22 = vpop.permute.xlu0 %765 }
 0xeeb   :  { %v768_v23 = vmul.f32 %v7634_v21, %v766_v22 }
 0xeed   :  { %770 = vrot.lane.b32.xlu1 %v768_v23, %s7830_s23 }
 0xf5f   :  { %v771_v25 = vpop.permute.xlu1 %770 }
 0xf60   :  { %v773_v26 = vadd.f32 %v771_v25, %v8043_v53 }
 0xf62   :  { %7635 = vtanh.f32 %v773_v26 }
 0xf6c   :  { %v7636_v27 = vpop.eup %7635 }
 0xf6d   :  { %777 = vrot.lane.b32.xlu0 %v7636_v27, %s7831_s30 }
 0xfdf   :  { %v778_v30 = vpop.permute.xlu0 %777 }
 0xfe0   :  { %v780_v32 = vmul.f32 %v778_v30, %v775_v29  ;;  %v8115_v29 = vadd.f32 %v7952_v16, %v7976_v37 }
 0xfe2   :  { %v8064_v33 = vadd.f32 %v783_v31, %v780_v32 }
 0xfe4   :  { %v790_v34 = vrot.slane %v8064_v33, 2  ;;  %v891_v54 = vrot.slane %v8064_v33, 6 }
 0xfe6   :  { %791 = vrot.lane.b32.xlu1 %v790_v34, %s7831_s30 }
0x1058   :  { %v792_v36 = vpop.permute.xlu1 %791 }
0x1059   :  { %6710 = vmatmul.mubr.msk.f32.vlgmr.msra.gmra.mrb[6].mxu1 %vm140_vm3, %v792_v36 }
0x105a   :  { %7290 = vmatpush3.bf16.msra.mxu1 %v7906_v5  ;;  %6731 = vmatprep.mubr.msk.f32.mxu1 %vm7829_vm1, %v9192_v4 }
0x105b   :  { %7291 = vmatprep.subr.bf16.mxu1 %v9174_v0 }
0x105e   :  { %7293 = vmatpush3.bf16.msra.mxu1 %v7922_v9 }
0x105f   :  { %7300 = vmatprep.subr.bf16.mxu1 %v9174_v0 }
0x112c   :  { %v861_v38 = vpop.f32.mrb[6].mxu1 }
0x112d   :  { %v862_v39 = vadd.f32 %v7945_v12, %v861_v38  ;;  %v6711_v40 = vpop.f32.mrb[7].mxu1 }
0x112f   :  { %v866_v41 = vrot.slane %v862_v39, 4 }
0x1131   :  { %875 = vrot.lane.b32.xlu0 %v866_v41, %s7830_s23  ;;  %v868_v42 = vadd.f32 %v866_v41, %v8043_v53 }
0x1133   :  { %v6253_v43 = vmul.f32 -1.442695, %v868_v42 }
0x1135   :  { %7637 = vpow2.f32 %v6253_v43 }
0x113f   :  { %v7638_v44 = vpop.eup %7637 }
0x1140   :  { %v872_v45 = vadd.f32 1.0, %v7638_v44 }
0x1142   :  { %7639 = vrcp.f32 %v872_v45 }
0x114c   :  { %v7640_v46 = vpop.eup %7639 }
0x114d   :  { %v885_v52 = vsub.f32 1.0, %v7640_v46  ;;  %v893_v56 = vmul.f32 %v7640_v46, %v891_v54 }
0x11a3   :  { %v876_v47 = vpop.permute.xlu0 %875 }
0x11a4   :  { %v878_v49 = vmul.f32 %v7640_v46, %v876_v47 }
0x11a6   :  { %880 = vrot.lane.b32.xlu1 %v878_v49, %s7830_s23 }
0x1218   :  { %v881_v50 = vpop.permute.xlu1 %880 }
0x1219   :  { %v883_v17 = vadd.f32 %v881_v50, %v8043_v53 }
0x121b   :  { %7641 = vtanh.f32 %v883_v17 }
0x1225   :  { %v7642_v51 = vpop.eup %7641 }
0x1226   :  { %887 = vrot.lane.b32.xlu0 %v7642_v51, %s7831_s30 }
0x1298   :  { %v888_v55 = vpop.permute.xlu0 %887 }
0x1299   :  { %v890_v57 = vmul.f32 %v888_v55, %v885_v52 }
0x129b   :  { %v8082_v58 = vadd.f32 %v893_v56, %v890_v57 }
0x129d   :  { %v900_v60 = vrot.slane %v8082_v58, 4  ;;  %v1001_v19 = vrot.slane %v8082_v58, 6 }
0x129f   :  { %901 = vrot.lane.b32.xlu1 %v900_v60, %s7831_s30 }
0x1311   :  { %v902_v61 = vpop.permute.xlu1 %901 }
0x1312   :  { %6721 = vmatmul.mubr.msk.f32.vlgmr.msra.gmra.mrb[12].mxu0 %vm140_vm3, %v902_v61 }
0x1313   :  { %7296 = vmatpush3.bf16.msra.mxu0 %v7906_v5  ;;  %6742 = vmatprep.mubr.msk.f32.mxu0 %vm7829_vm1, %v9192_v4 }
0x1314   :  { %7297 = vmatprep.subr.bf16.mxu0 %v9174_v0 }
0x1317   :  { %7299 = vmatpush3.bf16.msra.mxu0 %v7922_v9 }
0x1318   :  { %7306 = vmatprep.subr.bf16.mxu0 %v9174_v0 }
0x13e5   :  { %v971_v62 = vpop.f32.mrb[12].mxu0 }
0x13e6   :  { %v972_v63 = vadd.f32 %v7945_v12, %v971_v62  ;;  %v6722_v1 = vpop.f32.mrb[13].mxu0 }
0x13e8   :  { %v976_v35 = vrot.slane %v972_v63, 2 }
0x13ea   :  { %985 = vrot.lane.b32.xlu0 %v976_v35, %s7830_s23  ;;  %v978_v2 = vadd.f32 %v976_v35, %v8043_v53 }
0x13ec   :  { %v6255_v3 = vmul.f32 -1.442695, %v978_v2 }
0x13ee   :  { %7643 = vpow2.f32 %v6255_v3 }
0x13f8   :  { %v7644_v6 = vpop.eup %7643 }
0x13f9   :  { %v982_v7 = vadd.f32 1.0, %v7644_v6 }
0x13fb   :  { %7645 = vrcp.f32 %v982_v7 }
0x1405   :  { %v7646_v8 = vpop.eup %7645 }
0x1406   :  { %v995_v18 = vsub.f32 1.0, %v7646_v8  ;;  %v1003_v21 = vmul.f32 %v7646_v8, %v1001_v19 }
0x145c   :  { %v986_v10 = vpop.permute.xlu0 %985 }
0x145d   :  { %v988_v11 = vmul.f32 %v7646_v8, %v986_v10 }
0x145f   :  { %990 = vrot.lane.b32.xlu1 %v988_v11, %s7830_s23 }
0x14d1   :  { %v991_v13 = vpop.permute.xlu1 %990 }
0x14d2   :  { %v993_v14 = vadd.f32 %v991_v13, %v8043_v53 }
0x14d4   :  { %7647 = vtanh.f32 %v993_v14 }
0x14de   :  { %v7648_v15 = vpop.eup %7647 }
0x14df   :  { %997 = vrot.lane.b32.xlu0 %v7648_v15, %s7831_s30 }
0x1551   :  { %v998_v20 = vpop.permute.xlu0 %997 }
0x1552   :  { %v1000_v22 = vmul.f32 %v998_v20, %v995_v18 }
0x1554   :  { %v8100_v23 = vadd.f32 %v1003_v21, %v1000_v22 }
0x1556   :  { %v1010_v25 = vrot.slane %v8100_v23, 6 }
0x1558   :  { %1011 = vrot.lane.b32.xlu1 %v1010_v25, %s7831_s30 }
0x15ca   :  { %v1012_v26 = vpop.permute.xlu1 %1011 }
0x15cb   :  { %6732 = vmatmul.mubr.msk.f32.vlgmr.msra.gmra.mrb[8].mxu1 %vm140_vm3, %v1012_v26 }
0x15cc   :  { %7302 = vmatpush3.bf16.msra.mxu1 %v7906_v5  ;;  %6753 = vmatprep.mubr.msk.f32.mxu1 %vm7829_vm1, %v9192_v4 }
0x15cd   :  { %7303 = vmatprep.subr.bf16.mxu1 %v9174_v0 }
0x15d0   :  { %7305 = vmatpush3.bf16.msra.mxu1 %v7922_v9 }
0x15d1   :  { %7312 = vmatprep.subr.bf16.mxu1 %v9174_v0 }
0x169e   :  { %v1081_v53 = vpop.f32.mrb[8].mxu1 }
0x169f   :  { %v1082_v27 = vadd.f32 %v7945_v12, %v1081_v53  ;;  %v6733_v28 = vpop.f32.mrb[9].mxu1 }
0x16a0   :  { %v1448_v28 = vld [vmem:[%s9164_s2 + $0x30] sm:$0xff] }
0x16a1   :  { %1093 = vrot.lane.b32.xlu0 %v1082_v27, %s7830_s23  ;;  %v1085_v30 = vadd.f32 %v1082_v27, %v8115_v29  ;;  %v1447_v27 = vld [vmem:[%s9164_s2 + $0x28] sm:$0xff] }
0x16a3   :  { %v6257_v31 = vmul.f32 -1.442695, %v1085_v30  ;;  %v7313_v30 = vpack.c.bf16 %v1448_v28, %v1447_v27 }
0x16a5   :  { %7649 = vpow2.f32 %v6257_v31 }
0x16af   :  { %v7650_v32 = vpop.eup %7649 }
0x16b0   :  { %v1089_v34 = vadd.f32 1.0, %v7650_v32 }
0x16b2   :  { %7651 = vrcp.f32 %v1089_v34 }
0x16bc   :  { %v7652_v36 = vpop.eup %7651 }
0x16bd   :  { %v1103_v16 = vsub.f32 1.0, %v7652_v36  ;;  %v1110_v43 = vmul.f32 %v7652_v36, %v1010_v25 }
0x1713   :  { %v1094_v38 = vpop.permute.xlu0 %1093 }
0x1714   :  { %v1096_v39 = vmul.f32 %v7652_v36, %v1094_v38 }
0x1716   :  { %1098 = vrot.lane.b32.xlu1 %v1096_v39, %s7830_s23 }
0x1788   :  { %v1099_v40 = vpop.permute.xlu1 %1098 }
0x1789   :  { %v1101_v41 = vadd.f32 %v1099_v40, %v8115_v29 }
0x178b   :  { %7653 = vtanh.f32 %v1101_v41 }
0x1795   :  { %v7654_v42 = vpop.eup %7653 }
0x1796   :  { %1105 = vrot.lane.b32.xlu0 %v7654_v42, %s7831_s30 }
0x1808   :  { %v1106_v37 = vpop.permute.xlu0 %1105 }
0x1809   :  { %v1108_v44 = vmul.f32 %v1106_v37, %v1103_v16  ;;  %v1451_v37 = vld [vmem:[%s9164_s2 + $0x48] sm:$0xff] }
0x180b   :  { %v1111_v45 = vadd.f32 %v1110_v43, %v1108_v44  ;;  %v1452_v43 = vld [vmem:[%s9164_s2 + $0x50] sm:$0xff] }
0x180c   :  { %v8182_v44 = vpack.c.bf16 %v1452_v43, %v1451_v37 }
0x180d   :  { %1113 = vrot.lane.b32.xlu1 %v1111_v45, %s7831_s30  ;;  %v1215_v62 = vrot.slane %v1111_v45, 6  ;;  %v1453_v45 = vld [vmem:[%s9164_s2 + $0x58] sm:$0xff] }
0x187f   :  { %v1114_v46 = vpop.permute.xlu1 %1113 }
0x1880   :  { %1116 = vst.msk [vmem:[#allocation2 + $0x10] sm:$0x3] %vm244_vm2, %v1114_v46  ;;  %6743 = vmatmul.mubr.msk.f32.vlgmr.msra.gmra.mrb[14].mxu0 %vm140_vm3, %v1114_v46  ;;  %v1454_v46 = vld [vmem:[%s9164_s2 + $0x60] sm:$0xff] }
0x1881   :  { %7308 = vmatpush3.bf16.msra.mxu0 %v7906_v5  ;;  %6764 = vmatprep.mubr.msk.f32.mxu0 %vm7829_vm1, %v9192_v4 }
0x1882   :  { %7309 = vmatprep.subr.bf16.mxu0 %v9174_v0 }
0x1885   :  { %7311 = vmatpush3.bf16.msra.mxu0 %v7922_v9 }
0x1886   :  { %7318 = vmatprep.subr.bf16.mxu0 %v9174_v0 }
0x1953   :  { %v1185_v47 = vpop.f32.mrb[14].mxu0 }
0x1954   :  { %v1186_v49 = vadd.f32 %v7945_v12, %v1185_v47  ;;  %v6744_v50 = vpop.f32.mrb[15].mxu0 }
0x1956   :  { %v1190_v17 = vrot.slane %v1186_v49, 6 }
0x1958   :  { %1199 = vrot.lane.b32.xlu0 %v1190_v17, %s7830_s23  ;;  %v1192_v51 = vadd.f32 %v1190_v17, %v8115_v29 }
0x195a   :  { %v6259_v52 = vmul.f32 -1.442695, %v1192_v51 }
0x195c   :  { %7655 = vpow2.f32 %v6259_v52 }
0x1966   :  { %v7656_v5 = vpop.eup %7655 }
0x1967   :  { %v1196_v54 = vadd.f32 1.0, %v7656_v5 }
0x1969   :  { %7657 = vrcp.f32 %v1196_v54  ;;  %v8219_v54 = vld [vmem:[%s9166_s3 + $0x3] ss:$0 sm:$0xff] }
0x1973   :  { %v7658_v55 = vpop.eup %7657 }
0x1974   :  { %v1209_v63 = vsub.f32 1.0, %v7658_v55  ;;  %v1217_v35 = vmul.f32 %v7658_v55, %v1215_v62 }
0x19ca   :  { %v1200_v56 = vpop.permute.xlu0 %1199 }
0x19cb   :  { %v1202_v57 = vmul.f32 %v7658_v55, %v1200_v56 }
0x19cd   :  { %1204 = vrot.lane.b32.xlu1 %v1202_v57, %s7830_s23 }
0x1a3f   :  { %v1205_v9 = vpop.permute.xlu1 %1204 }
0x1a40   :  { %v1207_v60 = vadd.f32 %v1205_v9, %v8115_v29 }
0x1a42   :  { %7659 = vtanh.f32 %v1207_v60 }
0x1a4c   :  { %v7660_v61 = vpop.eup %7659 }
0x1a4d   :  { %1211 = vrot.lane.b32.xlu0 %v7660_v61, %s7831_s30 }
0x1abf   :  { %v1212_v1 = vpop.permute.xlu0 %1211 }
0x1ac0   :  { %v1214_v2 = vmul.f32 %v1212_v1, %v1209_v63 }
0x1ac2   :  { %v8136_v3 = vadd.f32 %v1217_v35, %v1214_v2 }
0x1ac4   :  { %v1224_v6 = vrot.slane %v8136_v3, 2  ;;  %v1325_v32 = vrot.slane %v8136_v3, 6 }
0x1ac6   :  { %1225 = vrot.lane.b32.xlu1 %v1224_v6, %s7831_s30 }
0x1b38   :  { %v1226_v7 = vpop.permute.xlu1 %1225 }
0x1b39   :  { %6754 = vmatmul.mubr.msk.f32.vlgmr.msra.gmra.mrb[10].mxu1 %vm140_vm3, %v1226_v7 }
0x1b3a   :  { %6775 = vmatprep.mubr.msk.f32.mxu1 %vm7829_vm1, %v9192_v4  ;;  %7314 = vmatpush3.bf16.msra.mxu1 %v7313_v30 }
0x1b3b   :  { %7315 = vmatprep.subr.bf16.mxu1 %v9174_v0 }
0x1c0c   :  { %v1295_v8 = vpop.f32.mrb[10].mxu1 }
0x1c0d   :  { %v1296_v10 = vadd.f32 %v7945_v12, %v1295_v8  ;;  %v6755_v11 = vpop.f32.mrb[11].mxu1 }
0x1c0f   :  { %v1300_v13 = vrot.slane %v1296_v10, 4 }
0x1c11   :  { %1309 = vrot.lane.b32.xlu0 %v1300_v13, %s7830_s23  ;;  %v1302_v14 = vadd.f32 %v1300_v13, %v8115_v29 }
0x1c13   :  { %v6261_v15 = vmul.f32 -1.442695, %v1302_v14 }
0x1c15   :  { %7661 = vpow2.f32 %v6261_v15 }
0x1c1f   :  { %v7662_v18 = vpop.eup %7661 }
0x1c20   :  { %v1306_v19 = vadd.f32 1.0, %v7662_v18 }
0x1c22   :  { %7663 = vrcp.f32 %v1306_v19 }
0x1c2c   :  { %v7664_v20 = vpop.eup %7663 }
0x1c2d   :  { %v1319_v31 = vsub.f32 1.0, %v7664_v20  ;;  %v1327_v36 = vmul.f32 %v7664_v20, %v1325_v32 }
0x1c83   :  { %v1310_v21 = vpop.permute.xlu0 %1309 }
0x1c84   :  { %v1312_v22 = vmul.f32 %v7664_v20, %v1310_v21 }
0x1c86   :  { %1314 = vrot.lane.b32.xlu1 %v1312_v22, %s7830_s23 }
0x1cf8   :  { %v1315_v25 = vpop.permute.xlu1 %1314 }
0x1cf9   :  { %v1317_v26 = vadd.f32 %v1315_v25, %v8115_v29 }
0x1cfb   :  { %7665 = vtanh.f32 %v1317_v26 }
0x1d05   :  { %v7666_v53 = vpop.eup %7665 }
0x1d06   :  { %1321 = vrot.lane.b32.xlu0 %v7666_v53, %s7831_s30 }
0x1d0a   :  { %349 = vrot.lane.b32.xlu0 %v7992_v59, %s7831_s30  ;;  %v1449_v59 = vld [vmem:[%s9164_s2 + $0x38] sm:$0xff] }
0x1d0e   :  { %571 = vrot.lane.b32.xlu0 %v8028_v48, %s7831_s30  ;;  %v1450_v48 = vld [vmem:[%s9164_s2 + $0x40] sm:$0xff] }
0x1d0f   :  { %v7316_v39 = vpack.c.bf16 %v1450_v48, %v1449_v59 }
0x1d11   :  { %7317 = vmatpush3.bf16.msra.mxu1 %v7316_v39 }
0x1d12   :  { %7324 = vmatprep.subr.bf16.mxu1 %v9174_v0 }
0x1d78   :  { %v1322_v34 = vpop.permute.xlu0 %1321 }
0x1d79   :  { %v1324_v38 = vmul.f32 %v1322_v34, %v1319_v31 }
0x1d7b   :  { %v8167_v40 = vadd.f32 %v1327_v36, %v1324_v38 }
0x1d7c   :  { %v350_v41 = vpop.permute.xlu0 %349 }
0x1d7d   :  { %353 = vst.msk [vmem:[#allocation2] sm:$0xc] %vm352_vm4, %v350_v41  ;;  %v1334_v42 = vrot.slane %v8167_v40, 4  ;;  %v1435_v53 = vrot.slane %v8167_v40, 6 }
0x1d7f   :  { %1335 = vrot.lane.b32.xlu1 %v1334_v42, %s7831_s30 }
0x1d80   :  { %v572_v16 = vpop.permute.xlu0 %571 }
0x1d81   :  { %575 = vst.msk [vmem:[#allocation2] sm:$0xc0] %vm574_vm5, %v572_v16 }
0x1d83   :  { %460 = vrot.lane.b32.xlu1 %v8010_v24, %s7831_s30  ;;  %v8192_v24 = vpack.c.bf16 %v1454_v46, %v1453_v45 }
0x1df1   :  { %v1336_v47 = vpop.permute.xlu1 %1335 }
0x1df2   :  { %6765 = vmatmul.mubr.msk.f32.vlgmr.msra.gmra.mrb[16].mxu0 %vm140_vm3, %v1336_v47 }
0x1df3   :  { %7320 = vmatpush3.bf16.msra.mxu0 %v8182_v44  ;;  %6792 = vmatprep.mubr.msk.f32.mxu0 %vm7829_vm1, %v9192_v4 }
0x1df4   :  { %7321 = vmatprep.subr.bf16.mxu0 %v9174_v0 }
0x1df5   :  { %v461_v49 = vpop.permute.xlu1 %460 }
0x1df6   :  { %464 = vst.msk [vmem:[#allocation2] sm:$0x30] %vm463_vm6, %v461_v49 }
0x1df7   :  { %7323 = vmatpush3.bf16.msra.mxu0 %v8192_v24 }
0x1df8   :  { %7330 = vmatprep.subr.bf16.mxu0 %v9174_v0 }
0x1dfa   :  { %6793 = vmatmul.mubr.f32.vlgmr.msra.gmra.mrb[18].mxu0 %v9192_v4 }
0x1dfb   :  { %7332 = vmatpush3.bf16.msra.mxu0 %v8182_v44  ;;  %6814 = vmatprep.mubr.msk.f32.mxu0 %vm7829_vm1, %v9192_v4 }
0x1dfc   :  { %7333 = vmatprep.subr.bf16.mxu0 %v9174_v0 }
0x1dfd   :  { %v1444_v50 = vld [vmem:[#allocation2] sm:$0xff] }
0x1dfe   :  { %6776 = vmatmul.mubr.msk.f32.vlgmr.msra.gmra.mrb[12].mxu1 %vm140_vm3, %v1444_v50 }
0x1dff   :  { %6778 = vmatprep.mubr.msk.f32.mxu1 %vm7829_vm1, %v9192_v4  ;;  %7326 = vmatpush3.bf16.msra.mxu1 %v8182_v44 }
0x1e00   :  { %7327 = vmatprep.subr.bf16.mxu1 %v9174_v0  ;;  %7335 = vmatpush3.bf16.msra.mxu0 %v8192_v24 }
0x1e01   :  { %7342 = vmatprep.subr.bf16.mxu0 %v9174_v0 }
0x1e03   :  { %7329 = vmatpush3.bf16.msra.mxu1 %v8192_v24 }
0x1e04   :  { %7336 = vmatprep.subr.bf16.mxu1 %v9174_v0 }
0x1ec5   :  { %v1405_v17 = vpop.f32.mrb[16].mxu0 }
0x1ec6   :  { %v1406_v51 = vadd.f32 %v7945_v12, %v1405_v17  ;;  %v6766_v52 = vpop.f32.mrb[17].mxu0  ;;  %v8226_v12 = vld [vmem:[%s9166_s3 + $0x2] ss:$0 sm:$0xff] }
0x1ec8   :  { %v1410_v5 = vrot.slane %v1406_v51, 2 }
0x1eca   :  { %1419 = vrot.lane.b32.xlu1 %v1410_v5, %s7830_s23  ;;  %v1412_v61 = vadd.f32 %v1410_v5, %v8115_v29 }
0x1ecc   :  { %v6263_v63 = vmul.f32 -1.442695, %v1412_v61 }
0x1ecd   :  { %v1620_v55 = vpop.f32.mrb[18].mxu0 }
0x1ece   :  { %v1621_v56 = vadd.f32 %v8219_v54, %v1620_v55  ;;  %v6794_v57 = vpop.f32.mrb[19].mxu0  ;;  %7667 = vpow2.f32 %v6263_v63 }
0x1ed0   :  { %1632 = vrot.lane.b32.xlu0 %v1621_v56, %s7830_s23 }
0x1ed1   :  { %v1536_v9 = vpop.f32.mrb[12].mxu1 }
0x1ed2   :  { %v6777_v60 = vpop.f32.mrb[13].mxu1  ;;  %v8230_v62 = vadd.f32 %v8226_v12, %v1536_v9 }
0x1ed4   :  { %v1624_v1 = vadd.f32 %v1621_v56, %v8230_v62 }
0x1ed6   :  { %v6269_v35 = vmul.f32 -1.442695, %v1624_v1 }
0x1ed8   :  { %7669 = vpow2.f32 %v6269_v35  ;;  %v7668_v2 = vpop.eup %7667 }
0x1ed9   :  { %v1416_v6 = vadd.f32 1.0, %v7668_v2 }
0x1edb   :  { %7671 = vrcp.f32 %v1416_v6 }
0x1ee2   :  { %v7670_v7 = vpop.eup %7669 }
0x1ee3   :  { %v1628_v8 = vadd.f32 1.0, %v7670_v7 }
0x1ee5   :  { %7673 = vrcp.f32 %v1628_v8  ;;  %v7672_v10 = vpop.eup %7671 }
0x1eef   :  { %v7674_v14 = vpop.eup %7673 }
0x1ef0   :  { %v1648_v32 = vmul.f32 0.0, %v7674_v14 }
0x1f3c   :  { %v1420_v11 = vpop.permute.xlu1 %1419 }
0x1f3d   :  { %v1422_v13 = vmul.f32 %v7672_v10, %v1420_v11 }
0x1f3f   :  { %1424 = vrot.lane.b32.xlu1 %v1422_v13, %s7830_s23 }
0x1f42   :  { %v1633_v15 = vpop.permute.xlu0 %1632 }
0x1f43   :  { %v1635_v18 = vmul.f32 %v7674_v14, %v1633_v15 }
0x1f45   :  { %1637 = vrot.lane.b32.xlu0 %v1635_v18, %s7830_s23 }
0x1fb1   :  { %v1425_v19 = vpop.permute.xlu1 %1424 }
0x1fb2   :  { %v1427_v20 = vadd.f32 %v1425_v19, %v8115_v29  ;;  %v1429_v29 = vsub.f32 1.0, %v7672_v10 }
0x1fb4   :  { %7675 = vtanh.f32 %v1427_v20 }
0x1fb7   :  { %v1638_v21 = vpop.permute.xlu0 %1637 }
0x1fb8   :  { %v1640_v22 = vadd.f32 %v1638_v21, %v8230_v62 }
0x1fba   :  { %7677 = vtanh.f32 %v1640_v22 }
0x1fbe   :  { %v7676_v25 = vpop.eup %7675 }
0x1fbf   :  { %1431 = vrot.lane.b32.xlu1 %v7676_v25, %s7831_s30 }
0x1fc3   :  { %786 = vrot.lane.b32.xlu1 %v8064_v33, %s7831_s30  ;;  %v1437_v33 = vmul.f32 %v7672_v10, %v1435_v53 }
0x1fc4   :  { %v7678_v26 = vpop.eup %7677 }
0x1fc5   :  { %1644 = vrot.lane.b32.xlu0 %v7678_v26, %s7831_s30 }
0x1fc7   :  { %1006 = vrot.lane.b32.xlu1 %v8100_v23, %s7831_s30 }
0x1fc9   :  { %896 = vrot.lane.b32.xlu0 %v8082_v58, %s7831_s30  ;;  %v1642_v58 = vsub.f32 1.0, %v7674_v14 }
0x1fcb   :  { %1330 = vrot.lane.b32.xlu1 %v8167_v40, %s7831_s30 }
0x1fcd   :  { %1220 = vrot.lane.b32.xlu0 %v8136_v3, %s7831_s30 }
0x2031   :  { %v1432_v27 = vpop.permute.xlu1 %1431 }
0x2032   :  { %v1434_v28 = vmul.f32 %v1432_v27, %v1429_v29 }
0x2034   :  { %v8250_v30 = vadd.f32 %v1437_v33, %v1434_v28 }
0x2035   :  { %v787_v31 = vpop.permute.xlu1 %786 }
0x2036   :  { %789 = vst.msk [vmem:[#allocation2 + $0x8] sm:$0xc] %vm352_vm4, %v787_v31  ;;  %1440 = vrot.lane.b32.xlu0 %v8250_v30, %s7831_s30 }
0x2037   :  { %v1645_v23 = vpop.permute.xlu0 %1644 }
0x2038   :  { %v1647_v34 = vmul.f32 %v1645_v23, %v1642_v58 }
0x2039   :  { %v1007_v36 = vpop.permute.xlu1 %1006 }
0x203a   :  { %v8255_v3 = vadd.f32 %v1648_v32, %v1647_v34  ;;  %1009 = vst.msk [vmem:[#allocation2 + $0x8] sm:$0xc0] %vm574_vm5, %v1007_v36 }
0x203b   :  { %v897_v38 = vpop.permute.xlu0 %896 }
0x203c   :  { %899 = vst.msk [vmem:[#allocation2 + $0x8] sm:$0x30] %vm463_vm6, %v897_v38  ;;  %1651 = vrot.lane.b32.xlu1 %v8255_v3, %s7831_s30  ;;  %v1751_v1 = vrot.slane %v8255_v3, 6 }
0x203d   :  { %v1331_v59 = vpop.permute.xlu1 %1330 }
0x203e   :  { %1333 = vst.msk [vmem:[#allocation2 + $0x10] sm:$0x30] %vm463_vm6, %v1331_v59 }
0x203f   :  { %v1221_v48 = vpop.permute.xlu0 %1220 }
0x2040   :  { %1223 = vst.msk [vmem:[#allocation2 + $0x10] sm:$0xc] %vm352_vm4, %v1221_v48 }
0x2043   :  { %v1445_v39 = vld [vmem:[#allocation2 + $0x8] sm:$0xff] }
0x2044   :  { %6779 = vmatmul.mubr.msk.f32.gmra.mrb[14].mxu1 %vm140_vm3, %v1445_v39 }
0x2045   :  { %6781 = vmatprep.mubr.msk.f32.mxu1 %vm7829_vm1, %v9192_v4 }
0x20a8   :  { %v1441_v40 = vpop.permute.xlu0 %1440 }
0x20a9   :  { %1443 = vst.msk [vmem:[#allocation2 + $0x10] sm:$0xc0] %vm574_vm5, %v1441_v40 }
0x20ae   :  { %v1652_v42 = vpop.permute.xlu1 %1651 }
0x20b0   :  { %v1446_v41 = vld [vmem:[#allocation2 + $0x10] sm:$0xff] }
0x20b1   :  { %6782 = vmatmul.mubr.msk.f32.gmra.mrb[16].mxu1 %vm140_vm3, %v1446_v41 }
0x20b2   :  { %6803 = vmatprep.mubr.msk.f32.mxu1 %vm7829_vm1, %v9192_v4 }
0x20b5   :  { %6804 = vmatmul.mubr.msk.f32.vlgmr.msra.gmra.mrb[18].mxu1 %vm140_vm3, %v1652_v42 }
0x20b6   :  { %7338 = vmatpush3.bf16.msra.mxu1 %v8182_v44  ;;  %6825 = vmatprep.mubr.msk.f32.mxu1 %vm7829_vm1, %v9192_v4 }
0x20b7   :  { %7339 = vmatprep.subr.bf16.mxu1 %v9174_v0 }
0x20ba   :  { %7341 = vmatpush3.bf16.msra.mxu1 %v8192_v24 }
0x20bb   :  { %7348 = vmatprep.subr.bf16.mxu1 %v9174_v0 }
0x2117   :  { %v8277_v16 = vpop.f32.mrb[14].mxu1 }
0x2118   :  { %v6780_v37 = vpop.f32.mrb[15].mxu1 }
0x2184   :  { %v8279_v43 = vpop.f32.mrb[16].mxu1 }
0x2185   :  { %v6783_v45 = vpop.f32.mrb[17].mxu1 }
0x2188   :  { %v1721_v46 = vpop.f32.mrb[18].mxu1 }
0x2189   :  { %v1722_v47 = vadd.f32 %v8219_v54, %v1721_v46  ;;  %v6805_v49 = vpop.f32.mrb[19].mxu1 }
0x218b   :  { %v1726_v50 = vrot.slane %v1722_v47, 6 }
0x218d   :  { %1735 = vrot.lane.b32.xlu0 %v1726_v50, %s7830_s23  ;;  %v1728_v17 = vadd.f32 %v1726_v50, %v8230_v62 }
0x218f   :  { %v6271_v51 = vmul.f32 -1.442695, %v1728_v17 }
0x2191   :  { %7679 = vpow2.f32 %v6271_v51 }
0x219b   :  { %v7680_v52 = vpop.eup %7679 }
0x219c   :  { %v1732_v5 = vadd.f32 1.0, %v7680_v52 }
0x219e   :  { %7681 = vrcp.f32 %v1732_v5 }
0x21a8   :  { %v7682_v55 = vpop.eup %7681 }
0x21a9   :  { %v1745_v63 = vsub.f32 1.0, %v7682_v55  ;;  %v1753_v2 = vmul.f32 %v7682_v55, %v1751_v1  ;;  %v8337_v1 = vadd.f32 %v8226_v12, %v8277_v16 }
0x21ff   :  { %v1736_v56 = vpop.permute.xlu0 %1735 }
0x2200   :  { %v1738_v57 = vmul.f32 %v7682_v55, %v1736_v56 }
0x2202   :  { %1740 = vrot.lane.b32.xlu1 %v1738_v57, %s7830_s23 }
0x2274   :  { %v1741_v9 = vpop.permute.xlu1 %1740 }
0x2275   :  { %v1743_v60 = vadd.f32 %v1741_v9, %v8230_v62 }
0x2277   :  { %7683 = vtanh.f32 %v1743_v60 }
0x2281   :  { %v7684_v61 = vpop.eup %7683 }
0x2282   :  { %1747 = vrot.lane.b32.xlu0 %v7684_v61, %s7831_s30 }
0x22f4   :  { %v1748_v35 = vpop.permute.xlu0 %1747 }
0x22f5   :  { %v1750_v6 = vmul.f32 %v1748_v35, %v1745_v63 }
0x22f7   :  { %v1754_v7 = vadd.f32 %v1753_v2, %v1750_v6 }
0x22f9   :  { %v1756_v8 = vrot.slane %v1754_v7, 2  ;;  %v1857_v33 = vrot.slane %v1754_v7, 6 }
0x22fb   :  { %1757 = vrot.lane.b32.xlu1 %v1756_v8, %s7831_s30 }
0x236d   :  { %v8289_v10 = vpop.permute.xlu1 %1757 }
0x236e   :  { %6815 = vmatmul.mubr.msk.f32.vlgmr.msra.gmra.mrb[20].mxu0 %vm140_vm3, %v8289_v10 }
0x236f   :  { %7344 = vmatpush3.bf16.msra.mxu0 %v8182_v44  ;;  %6836 = vmatprep.mubr.msk.f32.mxu0 %vm7829_vm1, %v9192_v4 }
0x2370   :  { %7345 = vmatprep.subr.bf16.mxu0 %v9174_v0 }
0x2373   :  { %7347 = vmatpush3.bf16.msra.mxu0 %v8192_v24 }
0x2374   :  { %7354 = vmatprep.subr.bf16.mxu0 %v9174_v0 }
0x2441   :  { %v1827_v11 = vpop.f32.mrb[20].mxu0 }
0x2442   :  { %v1828_v13 = vadd.f32 %v8219_v54, %v1827_v11  ;;  %v6816_v14 = vpop.f32.mrb[21].mxu0 }
0x2444   :  { %v1832_v15 = vrot.slane %v1828_v13, 4 }
0x2446   :  { %1841 = vrot.lane.b32.xlu0 %v1832_v15, %s7830_s23  ;;  %v1834_v18 = vadd.f32 %v1832_v15, %v8230_v62 }
0x2448   :  { %v6273_v19 = vmul.f32 -1.442695, %v1834_v18 }
0x244a   :  { %7685 = vpow2.f32 %v6273_v19 }
0x2454   :  { %v7686_v20 = vpop.eup %7685 }
0x2455   :  { %v1838_v21 = vadd.f32 1.0, %v7686_v20 }
0x2457   :  { %7687 = vrcp.f32 %v1838_v21 }
0x2461   :  { %v7688_v22 = vpop.eup %7687 }
0x2462   :  { %v1851_v28 = vsub.f32 1.0, %v7688_v22  ;;  %v1859_v58 = vmul.f32 %v7688_v22, %v1857_v33 }
0x24b8   :  { %v1842_v25 = vpop.permute.xlu0 %1841 }
0x24b9   :  { %v1844_v26 = vmul.f32 %v7688_v22, %v1842_v25 }
0x24bb   :  { %1846 = vrot.lane.b32.xlu1 %v1844_v26, %s7830_s23 }
0x252d   :  { %v1847_v29 = vpop.permute.xlu1 %1846 }
0x252e   :  { %v1849_v53 = vadd.f32 %v1847_v29, %v8230_v62 }
0x2530   :  { %7689 = vtanh.f32 %v1849_v53 }
0x253a   :  { %v7690_v27 = vpop.eup %7689 }
0x253b   :  { %1853 = vrot.lane.b32.xlu0 %v7690_v27, %s7831_s30 }
0x25ad   :  { %v1854_v31 = vpop.permute.xlu0 %1853 }
0x25ae   :  { %v1856_v23 = vmul.f32 %v1854_v31, %v1851_v28 }
0x25b0   :  { %v1860_v32 = vadd.f32 %v1859_v58, %v1856_v23 }
0x25b2   :  { %v1862_v34 = vrot.slane %v1860_v32, 4  ;;  %v1963_v51 = vrot.slane %v1860_v32, 6 }
0x25b4   :  { %1863 = vrot.lane.b32.xlu1 %v1862_v34, %s7831_s30 }
0x2626   :  { %v8306_v36 = vpop.permute.xlu1 %1863 }
0x2627   :  { %6826 = vmatmul.mubr.msk.f32.vlgmr.msra.gmra.mrb[20].mxu1 %vm140_vm3, %v8306_v36 }
0x2628   :  { %7350 = vmatpush3.bf16.msra.mxu1 %v8182_v44  ;;  %6847 = vmatprep.mubr.msk.f32.mxu1 %vm7829_vm1, %v9192_v4 }
0x2629   :  { %7351 = vmatprep.subr.bf16.mxu1 %v9174_v0 }
0x262c   :  { %7353 = vmatpush3.bf16.msra.mxu1 %v8192_v24 }
0x262d   :  { %7360 = vmatprep.subr.bf16.mxu1 %v9174_v0 }
0x26fa   :  { %v1933_v38 = vpop.f32.mrb[20].mxu1 }
0x26fb   :  { %v1934_v59 = vadd.f32 %v8219_v54, %v1933_v38  ;;  %v6827_v48 = vpop.f32.mrb[21].mxu1 }
0x26fd   :  { %v1938_v39 = vrot.slane %v1934_v59, 2 }
0x26ff   :  { %1947 = vrot.lane.b32.xlu0 %v1938_v39, %s7830_s23  ;;  %v1940_v40 = vadd.f32 %v1938_v39, %v8230_v62 }
0x2701   :  { %v6275_v41 = vmul.f32 -1.442695, %v1940_v40 }
0x2703   :  { %7691 = vpow2.f32 %v6275_v41 }
0x270d   :  { %v7692_v42 = vpop.eup %7691 }
0x270e   :  { %v1944_v37 = vadd.f32 1.0, %v7692_v42 }
0x2710   :  { %7693 = vrcp.f32 %v1944_v37 }
0x271a   :  { %v7694_v45 = vpop.eup %7693 }
0x271b   :  { %v1957_v52 = vsub.f32 1.0, %v7694_v45  ;;  %v1965_v55 = vmul.f32 %v7694_v45, %v1963_v51 }
0x2771   :  { %v1948_v46 = vpop.permute.xlu0 %1947 }
0x2772   :  { %v1950_v47 = vmul.f32 %v7694_v45, %v1948_v46 }
0x2774   :  { %1952 = vrot.lane.b32.xlu1 %v1950_v47, %s7830_s23 }
0x27e6   :  { %v1953_v49 = vpop.permute.xlu1 %1952 }
0x27e7   :  { %v1955_v50 = vadd.f32 %v1953_v49, %v8230_v62 }
0x27e9   :  { %7695 = vtanh.f32 %v1955_v50 }
0x27f3   :  { %v7696_v17 = vpop.eup %7695 }
0x27f4   :  { %1959 = vrot.lane.b32.xlu0 %v7696_v17, %s7831_s30 }
0x2866   :  { %v1960_v5 = vpop.permute.xlu0 %1959 }
0x2867   :  { %v1962_v56 = vmul.f32 %v1960_v5, %v1957_v52 }
0x2869   :  { %v1966_v57 = vadd.f32 %v1965_v55, %v1962_v56 }
0x286b   :  { %v1968_v9 = vrot.slane %v1966_v57, 6 }
0x286d   :  { %1969 = vrot.lane.b32.xlu1 %v1968_v9, %s7831_s30 }
0x28df   :  { %v8323_v60 = vpop.permute.xlu1 %1969 }
0x28e0   :  { %6837 = vmatmul.mubr.msk.f32.vlgmr.msra.gmra.mrb[22].mxu0 %vm140_vm3, %v8323_v60 }
0x28e1   :  { %7356 = vmatpush3.bf16.msra.mxu0 %v8182_v44  ;;  %6858 = vmatprep.mubr.msk.f32.mxu0 %vm7829_vm1, %v9192_v4 }
0x28e2   :  { %7357 = vmatprep.subr.bf16.mxu0 %v9174_v0 }
0x28e5   :  { %7359 = vmatpush3.bf16.msra.mxu0 %v8192_v24 }
0x28e6   :  { %7366 = vmatprep.subr.bf16.mxu0 %v9174_v0 }
0x29b3   :  { %v2039_v62 = vpop.f32.mrb[22].mxu0 }
0x29b4   :  { %v2040_v61 = vadd.f32 %v8219_v54, %v2039_v62  ;;  %v6838_v63 = vpop.f32.mrb[23].mxu0 }
0x29b6   :  { %2051 = vrot.lane.b32.xlu0 %v2040_v61, %s7830_s23  ;;  %v2043_v35 = vadd.f32 %v2040_v61, %v8337_v1 }
0x29b8   :  { %v6277_v2 = vmul.f32 -1.442695, %v2043_v35 }
0x29ba   :  { %7697 = vpow2.f32 %v6277_v2 }
0x29c4   :  { %v7698_v6 = vpop.eup %7697 }
0x29c5   :  { %v2047_v7 = vadd.f32 1.0, %v7698_v6 }
0x29c7   :  { %7699 = vrcp.f32 %v2047_v7 }
0x29d1   :  { %v7700_v8 = vpop.eup %7699 }
0x29d2   :  { %v2061_v16 = vsub.f32 1.0, %v7700_v8  ;;  %v2068_v20 = vmul.f32 %v7700_v8, %v1968_v9 }
0x2a28   :  { %v2052_v11 = vpop.permute.xlu0 %2051 }
0x2a29   :  { %v2054_v13 = vmul.f32 %v7700_v8, %v2052_v11 }
0x2a2b   :  { %2056 = vrot.lane.b32.xlu1 %v2054_v13, %s7830_s23 }
0x2a9d   :  { %v2057_v14 = vpop.permute.xlu1 %2056 }
0x2a9e   :  { %v2059_v15 = vadd.f32 %v2057_v14, %v8337_v1 }
0x2aa0   :  { %7701 = vtanh.f32 %v2059_v15 }
0x2aaa   :  { %v7702_v18 = vpop.eup %7701 }
0x2aab   :  { %2063 = vrot.lane.b32.xlu0 %v7702_v18, %s7831_s30 }
0x2b1d   :  { %v2064_v19 = vpop.permute.xlu0 %2063 }
0x2b1e   :  { %v2066_v21 = vmul.f32 %v2064_v19, %v2061_v16 }
0x2b20   :  { %v8343_v22 = vadd.f32 %v2068_v20, %v2066_v21 }
0x2b22   :  { %2071 = vrot.lane.b32.xlu1 %v8343_v22, %s7831_s30  ;;  %v2171_v40 = vrot.slane %v8343_v22, 6 }
0x2b94   :  { %v2072_v25 = vpop.permute.xlu1 %2071 }
0x2b95   :  { %6848 = vmatmul.mubr.msk.f32.vlgmr.msra.gmra.mrb[22].mxu1 %vm140_vm3, %v2072_v25 }
0x2b96   :  { %7362 = vmatpush3.bf16.msra.mxu1 %v8182_v44  ;;  %6869 = vmatprep.mubr.msk.f32.mxu1 %vm7829_vm1, %v9192_v4 }
0x2b97   :  { %7363 = vmatprep.subr.bf16.mxu1 %v9174_v0 }
0x2b9a   :  { %7365 = vmatpush3.bf16.msra.mxu1 %v8192_v24 }
0x2b9b   :  { %7372 = vmatprep.subr.bf16.mxu1 %v9174_v0 }
0x2c68   :  { %v2141_v26 = vpop.f32.mrb[22].mxu1 }
0x2c69   :  { %v2142_v29 = vadd.f32 %v8219_v54, %v2141_v26  ;;  %v6849_v53 = vpop.f32.mrb[23].mxu1 }
0x2c6b   :  { %v2146_v27 = vrot.slane %v2142_v29, 6 }
0x2c6d   :  { %2155 = vrot.lane.b32.xlu0 %v2146_v27, %s7830_s23  ;;  %v2148_v33 = vadd.f32 %v2146_v27, %v8337_v1 }
0x2c6f   :  { %v6279_v28 = vmul.f32 -1.442695, %v2148_v33 }
0x2c71   :  { %7703 = vpow2.f32 %v6279_v28 }
0x2c7b   :  { %v7704_v31 = vpop.eup %7703 }
0x2c7c   :  { %v2152_v58 = vadd.f32 1.0, %v7704_v31 }
0x2c7e   :  { %7705 = vrcp.f32 %v2152_v58 }
0x2c88   :  { %v7706_v23 = vpop.eup %7705 }
0x2c89   :  { %v2165_v39 = vsub.f32 1.0, %v7706_v23  ;;  %v2173_v37 = vmul.f32 %v7706_v23, %v2171_v40 }
0x2cdf   :  { %v2156_v32 = vpop.permute.xlu0 %2155 }
0x2ce0   :  { %v2158_v34 = vmul.f32 %v7706_v23, %v2156_v32 }
0x2ce2   :  { %2160 = vrot.lane.b32.xlu1 %v2158_v34, %s7830_s23 }
0x2d54   :  { %v2161_v38 = vpop.permute.xlu1 %2160 }
0x2d55   :  { %v2163_v59 = vadd.f32 %v2161_v38, %v8337_v1 }
0x2d57   :  { %7707 = vtanh.f32 %v2163_v59 }
0x2d61   :  { %v7708_v48 = vpop.eup %7707 }
0x2d62   :  { %2167 = vrot.lane.b32.xlu0 %v7708_v48, %s7831_s30 }
0x2dd4   :  { %v2168_v41 = vpop.permute.xlu0 %2167 }
0x2dd5   :  { %v2170_v42 = vmul.f32 %v2168_v41, %v2165_v39 }
0x2dd7   :  { %v2174_v45 = vadd.f32 %v2173_v37, %v2170_v42  ;;  %v8410_v37 = vadd.f32 %v8226_v12, %v8279_v43 }
0x2dd9   :  { %v2176_v46 = vrot.slane %v2174_v45, 2  ;;  %v2277_v2 = vrot.slane %v2174_v45, 6 }
0x2ddb   :  { %2177 = vrot.lane.b32.xlu1 %v2176_v46, %s7831_s30 }
0x2e4d   :  { %v8362_v47 = vpop.permute.xlu1 %2177 }
0x2e4e   :  { %6859 = vmatmul.mubr.msk.f32.vlgmr.msra.gmra.mrb[24].mxu0 %vm140_vm3, %v8362_v47 }
0x2e4f   :  { %7368 = vmatpush3.bf16.msra.mxu0 %v8182_v44  ;;  %6880 = vmatprep.mubr.msk.f32.mxu0 %vm7829_vm1, %v9192_v4 }
0x2e50   :  { %7369 = vmatprep.subr.bf16.mxu0 %v9174_v0 }
0x2e53   :  { %7371 = vmatpush3.bf16.msra.mxu0 %v8192_v24 }
0x2e54   :  { %7378 = vmatprep.subr.bf16.mxu0 %v9174_v0 }
0x2f21   :  { %v2247_v49 = vpop.f32.mrb[24].mxu0 }
0x2f22   :  { %v2248_v50 = vadd.f32 %v8219_v54, %v2247_v49  ;;  %v6860_v17 = vpop.f32.mrb[25].mxu0 }
0x2f24   :  { %v2252_v51 = vrot.slane %v2248_v50, 4 }
0x2f26   :  { %2261 = vrot.lane.b32.xlu0 %v2252_v51, %s7830_s23  ;;  %v2254_v52 = vadd.f32 %v2252_v51, %v8337_v1 }
0x2f28   :  { %v6281_v5 = vmul.f32 -1.442695, %v2254_v52 }
0x2f2a   :  { %7709 = vpow2.f32 %v6281_v5 }
0x2f34   :  { %v7710_v55 = vpop.eup %7709 }
0x2f35   :  { %v2258_v56 = vadd.f32 1.0, %v7710_v55 }
0x2f37   :  { %7711 = vrcp.f32 %v2258_v56 }
0x2f41   :  { %v7712_v57 = vpop.eup %7711 }
0x2f42   :  { %v2271_v6 = vsub.f32 1.0, %v7712_v57  ;;  %v2279_v8 = vmul.f32 %v7712_v57, %v2277_v2 }
0x2f98   :  { %v2262_v9 = vpop.permute.xlu0 %2261 }
0x2f99   :  { %v2264_v62 = vmul.f32 %v7712_v57, %v2262_v9 }
0x2f9b   :  { %2266 = vrot.lane.b32.xlu1 %v2264_v62, %s7830_s23 }
0x300d   :  { %v2267_v61 = vpop.permute.xlu1 %2266 }
0x300e   :  { %v2269_v63 = vadd.f32 %v2267_v61, %v8337_v1 }
0x3010   :  { %7713 = vtanh.f32 %v2269_v63 }
0x301a   :  { %v7714_v35 = vpop.eup %7713 }
0x301b   :  { %2273 = vrot.lane.b32.xlu0 %v7714_v35, %s7831_s30 }
0x308d   :  { %v2274_v7 = vpop.permute.xlu0 %2273 }
0x308e   :  { %v2276_v11 = vmul.f32 %v2274_v7, %v2271_v6 }
0x3090   :  { %v2280_v13 = vadd.f32 %v2279_v8, %v2276_v11 }
0x3092   :  { %v2282_v14 = vrot.slane %v2280_v13, 4  ;;  %v2383_v23 = vrot.slane %v2280_v13, 6 }
0x3094   :  { %2283 = vrot.lane.b32.xlu1 %v2282_v14, %s7831_s30 }
0x3106   :  { %v8379_v15 = vpop.permute.xlu1 %2283 }
0x3107   :  { %6870 = vmatmul.mubr.msk.f32.vlgmr.msra.gmra.mrb[24].mxu1 %vm140_vm3, %v8379_v15 }
0x3108   :  { %7374 = vmatpush3.bf16.msra.mxu1 %v8182_v44  ;;  %6891 = vmatprep.mubr.msk.f32.mxu1 %vm7829_vm1, %v9192_v4 }
0x3109   :  { %7375 = vmatprep.subr.bf16.mxu1 %v9174_v0 }
0x310c   :  { %7377 = vmatpush3.bf16.msra.mxu1 %v8192_v24 }
0x310d   :  { %7384 = vmatprep.subr.bf16.mxu1 %v9174_v0 }
0x31da   :  { %v2353_v18 = vpop.f32.mrb[24].mxu1 }
0x31db   :  { %v2354_v16 = vadd.f32 %v8219_v54, %v2353_v18  ;;  %v6871_v19 = vpop.f32.mrb[25].mxu1 }
0x31dd   :  { %v2358_v20 = vrot.slane %v2354_v16, 2 }
0x31df   :  { %2367 = vrot.lane.b32.xlu0 %v2358_v20, %s7830_s23  ;;  %v2360_v21 = vadd.f32 %v2358_v20, %v8337_v1 }
0x31e1   :  { %v6283_v25 = vmul.f32 -1.442695, %v2360_v21 }
0x31e3   :  { %7715 = vpow2.f32 %v6283_v25 }
0x31ed   :  { %v7716_v26 = vpop.eup %7715 }
0x31ee   :  { %v2364_v29 = vadd.f32 1.0, %v7716_v26 }
0x31f0   :  { %7717 = vrcp.f32 %v2364_v29 }
0x31fa   :  { %v7718_v53 = vpop.eup %7717 }
0x31fb   :  { %v2377_v32 = vsub.f32 1.0, %v7718_v53  ;;  %v2385_v38 = vmul.f32 %v7718_v53, %v2383_v23 }
0x3251   :  { %v2368_v27 = vpop.permute.xlu0 %2367 }
0x3252   :  { %v2370_v33 = vmul.f32 %v7718_v53, %v2368_v27 }
0x3254   :  { %2372 = vrot.lane.b32.xlu1 %v2370_v33, %s7830_s23 }
0x32c6   :  { %v2373_v28 = vpop.permute.xlu1 %2372 }
0x32c7   :  { %v2375_v31 = vadd.f32 %v2373_v28, %v8337_v1 }
0x32c9   :  { %7719 = vtanh.f32 %v2375_v31 }
0x32d3   :  { %v7720_v58 = vpop.eup %7719 }
0x32d4   :  { %2379 = vrot.lane.b32.xlu0 %v7720_v58, %s7831_s30 }
0x3346   :  { %v2380_v34 = vpop.permute.xlu0 %2379 }
0x3347   :  { %v2382_v59 = vmul.f32 %v2380_v34, %v2377_v32 }
0x3349   :  { %v2386_v48 = vadd.f32 %v2385_v38, %v2382_v59 }
0x334b   :  { %v2388_v39 = vrot.slane %v2386_v48, 6 }
0x334d   :  { %2389 = vrot.lane.b32.xlu1 %v2388_v39, %s7831_s30 }
0x33bf   :  { %v8396_v40 = vpop.permute.xlu1 %2389 }
0x33c0   :  { %6881 = vmatmul.mubr.msk.f32.vlgmr.msra.gmra.mrb[26].mxu0 %vm140_vm3, %v8396_v40 }
0x33c1   :  { %7380 = vmatpush3.bf16.msra.mxu0 %v8182_v44  ;;  %6902 = vmatprep.mubr.msk.f32.mxu0 %vm7829_vm1, %v9192_v4 }
0x33c2   :  { %7381 = vmatprep.subr.bf16.mxu0 %v9174_v0 }
0x33c5   :  { %7383 = vmatpush3.bf16.msra.mxu0 %v8192_v24 }
0x33c6   :  { %7390 = vmatprep.subr.bf16.mxu0 %v9174_v0 }
0x3493   :  { %v2459_v1 = vpop.f32.mrb[26].mxu0 }
0x3494   :  { %v2460_v41 = vadd.f32 %v8219_v54, %v2459_v1  ;;  %v6882_v42 = vpop.f32.mrb[27].mxu0 }
0x3496   :  { %2471 = vrot.lane.b32.xlu0 %v2460_v41, %s7830_s23  ;;  %v2463_v45 = vadd.f32 %v2460_v41, %v8410_v37 }
0x3498   :  { %v6285_v46 = vmul.f32 -1.442695, %v2463_v45 }
0x349a   :  { %7721 = vpow2.f32 %v6285_v46 }
0x34a4   :  { %v7722_v49 = vpop.eup %7721 }
0x34a5   :  { %v2467_v50 = vadd.f32 1.0, %v7722_v49 }
0x34a7   :  { %7723 = vrcp.f32 %v2467_v50 }
0x34b1   :  { %v7724_v17 = vpop.eup %7723 }
0x34b2   :  { %v2481_v12 = vsub.f32 1.0, %v7724_v17  ;;  %v2488_v57 = vmul.f32 %v7724_v17, %v2388_v39 }
0x3508   :  { %v2472_v51 = vpop.permute.xlu0 %2471 }
0x3509   :  { %v2474_v52 = vmul.f32 %v7724_v17, %v2472_v51 }
0x350b   :  { %2476 = vrot.lane.b32.xlu1 %v2474_v52, %s7830_s23 }
0x357d   :  { %v2477_v5 = vpop.permute.xlu1 %2476 }
0x357e   :  { %v2479_v55 = vadd.f32 %v2477_v5, %v8410_v37 }
0x3580   :  { %7725 = vtanh.f32 %v2479_v55 }
0x358a   :  { %v7726_v56 = vpop.eup %7725 }
0x358b   :  { %2483 = vrot.lane.b32.xlu0 %v7726_v56, %s7831_s30 }
0x35fd   :  { %v2484_v43 = vpop.permute.xlu0 %2483 }
0x35fe   :  { %v2486_v9 = vmul.f32 %v2484_v43, %v2481_v12 }
0x3600   :  { %v8416_v62 = vadd.f32 %v2488_v57, %v2486_v9 }
0x3602   :  { %2491 = vrot.lane.b32.xlu1 %v8416_v62, %s7831_s30  ;;  %v2591_v21 = vrot.slane %v8416_v62, 6 }
0x3674   :  { %v2492_v61 = vpop.permute.xlu1 %2491 }
0x3675   :  { %6892 = vmatmul.mubr.msk.f32.vlgmr.msra.gmra.mrb[26].mxu1 %vm140_vm3, %v2492_v61 }
0x3676   :  { %7386 = vmatpush3.bf16.msra.mxu1 %v8182_v44  ;;  %6913 = vmatprep.mubr.msk.f32.mxu1 %vm7829_vm1, %v9192_v4 }
0x3677   :  { %7387 = vmatprep.subr.bf16.mxu1 %v9174_v0 }
0x367a   :  { %7389 = vmatpush3.bf16.msra.mxu1 %v8192_v24 }
0x367b   :  { %6927 = vmatprep.subr.mxu1 %v9192_v4 }
0x3748   :  { %v2561_v63 = vpop.f32.mrb[26].mxu1 }
0x3749   :  { %v2562_v35 = vadd.f32 %v8219_v54, %v2561_v63  ;;  %v6893_v2 = vpop.f32.mrb[27].mxu1 }
0x374b   :  { %v2566_v6 = vrot.slane %v2562_v35, 6 }
0x374d   :  { %2575 = vrot.lane.b32.xlu0 %v2566_v6, %s7830_s23  ;;  %v2568_v7 = vadd.f32 %v2566_v6, %v8410_v37 }
0x374f   :  { %v6287_v8 = vmul.f32 -1.442695, %v2568_v7 }
0x3751   :  { %7727 = vpow2.f32 %v6287_v8 }
0x375b   :  { %v7728_v44 = vpop.eup %7727 }
0x375c   :  { %v2572_v11 = vadd.f32 1.0, %v7728_v44 }
0x375e   :  { %7729 = vrcp.f32 %v2572_v11  ;;  %v2809_v11 = vld [vmem:[%s9167_s6 + $0x10] sm:$0xff] }
0x3768   :  { %v7730_v13 = vpop.eup %7729 }
0x3769   :  { %v2585_v20 = vsub.f32 1.0, %v7730_v13  ;;  %v2593_v29 = vmul.f32 %v7730_v13, %v2591_v21 }
0x37bf   :  { %v2576_v14 = vpop.permute.xlu0 %2575 }
0x37c0   :  { %v2578_v18 = vmul.f32 %v7730_v13, %v2576_v14  ;;  %v8468_v13 = vld [vmem:[%s9167_s6] sm:$0xff] }
0x37c2   :  { %2580 = vrot.lane.b32.xlu1 %v2578_v18, %s7830_s23  ;;  %v2811_v18 = vld [vmem:[%s9167_s6 + $0x20] sm:$0xff] }
0x3834   :  { %v2581_v24 = vpop.permute.xlu1 %2580 }
0x3835   :  { %v2583_v16 = vadd.f32 %v2581_v24, %v8410_v37  ;;  %v8482_v24 = vld [vmem:[%s9168_s1] sm:$0x3] }
0x3837   :  { %7731 = vtanh.f32 %v2583_v16 }
0x3841   :  { %v7732_v19 = vpop.eup %7731 }
0x3842   :  { %2587 = vrot.lane.b32.xlu0 %v7732_v19, %s7831_s30 }
0x38b4   :  { %v2588_v25 = vpop.permute.xlu0 %2587 }
0x38b5   :  { %v2590_v26 = vmul.f32 %v2588_v25, %v2585_v20 }
0x38b7   :  { %v2594_v53 = vadd.f32 %v2593_v29, %v2590_v26 }
0x38b9   :  { %v2596_v27 = vrot.slane %v2594_v53, 2  ;;  %v2697_v46 = vrot.slane %v2594_v53, 6 }
0x38bb   :  { %2597 = vrot.lane.b32.xlu1 %v2596_v27, %s7831_s30 }
0x392d   :  { %v8435_v33 = vpop.permute.xlu1 %2597 }
0x392e   :  { %6903 = vmatmul.mubr.msk.f32.vlgmr.msra.gmra.mrb[28].mxu0 %vm140_vm3, %v8435_v33 }
0x392f   :  { %6924 = vmatprep.mubr.msk.f32.mxu0 %vm7829_vm1, %v9192_v4 }
0x3a01   :  { %v2667_v28 = vpop.f32.mrb[28].mxu0 }
0x3a02   :  { %v2668_v31 = vadd.f32 %v8219_v54, %v2667_v28  ;;  %v6904_v58 = vpop.f32.mrb[29].mxu0 }
0x3a04   :  { %v2672_v23 = vrot.slane %v2668_v31, 4 }
0x3a06   :  { %2681 = vrot.lane.b32.xlu0 %v2672_v23, %s7830_s23  ;;  %v2674_v32 = vadd.f32 %v2672_v23, %v8410_v37  ;;  %v8511_v23 = vld [vmem:[%s9167_s6 + $0x28] ss:$0 sm:$0xff] }
0x3a08   :  { %v6289_v34 = vmul.f32 -1.442695, %v2674_v32 }
0x3a0a   :  { %7733 = vpow2.f32 %v6289_v34 }
0x3a14   :  { %v7734_v38 = vpop.eup %7733 }
0x3a15   :  { %v2678_v59 = vadd.f32 1.0, %v7734_v38 }
0x3a17   :  { %7735 = vrcp.f32 %v2678_v59 }
0x3a21   :  { %v7736_v48 = vpop.eup %7735 }
0x3a22   :  { %v2691_v49 = vsub.f32 1.0, %v7736_v48  ;;  %v2699_v17 = vmul.f32 %v7736_v48, %v2697_v46 }
0x3a78   :  { %v2682_v39 = vpop.permute.xlu0 %2681 }
0x3a79   :  { %v2684_v1 = vmul.f32 %v7736_v48, %v2682_v39 }
0x3a7b   :  { %2686 = vrot.lane.b32.xlu1 %v2684_v1, %s7830_s23 }
0x3aed   :  { %v2687_v41 = vpop.permute.xlu1 %2686 }
0x3aee   :  { %v2689_v42 = vadd.f32 %v2687_v41, %v8410_v37 }
0x3af0   :  { %7737 = vtanh.f32 %v2689_v42 }
0x3afa   :  { %v7738_v45 = vpop.eup %7737 }
0x3afb   :  { %2693 = vrot.lane.b32.xlu0 %v7738_v45, %s7831_s30 }
0x3b6d   :  { %v2694_v50 = vpop.permute.xlu0 %2693 }
0x3b6e   :  { %v2696_v51 = vmul.f32 %v2694_v50, %v2691_v49 }
0x3b70   :  { %v2700_v52 = vadd.f32 %v2699_v17, %v2696_v51  ;;  %v7832_v51 = vmov 9  }
0x3b71   :  { %7553 = vset.pattern.permute.xlu1 %v7832_v51 }
0x3b72   :  { %v2702_v5 = vrot.slane %v2700_v52, 4  ;;  %v2803_v20 = vrot.slane %v2700_v52, 6  ;;  %v9176_v52 = vmov 10  }
0x3b73   :  { %7552 = vset.pattern.permute.xlu0 %v9176_v52 }
0x3b74   :  { %2703 = vrot.lane.b32.xlu1 %v2702_v5, %s7831_s30 }
0x3be6   :  { %v8448_v55 = vpop.permute.xlu1 %2703 }
0x3be7   :  { %6914 = vmatmul.mubr.msk.f32.vlgmr.msra.gmra.mrb[28].mxu1 %vm140_vm3, %v8448_v55 }
0x3be8   :  { %6929 = vmatprep.mubr.msk.f32.mxu1 %vm7829_vm1, %v9192_v4  ;;  %6928 = vmatpush3.msra.mxu1 %v8468_v13 }
0x3be9   :  { %6943 = vmatprep.subr.mxu1 %v9192_v4 }
0x3beb   :  { %6930 = vmatmul.mubr.msk.f32.vlgmr.msra.gmra.mrb[30].mxu1 %vm46_vm0, %v8482_v24 }
0x3bec   :  { %6945 = vmatprep.mubr.msk.f32.mxu1 %vm7829_vm1, %v9192_v4 }
0x3cba   :  { %v2773_v56 = vpop.f32.mrb[28].mxu1 }
0x3cbb   :  { %v2774_v12 = vadd.f32 %v8219_v54, %v2773_v56  ;;  %v6915_v43 = vpop.f32.mrb[29].mxu1  ;;  %v2808_v54 = vld [vmem:[%s9167_s6 + $0x8] sm:$0xff] }
0x3cbc   :  { %v8470_v14 = vpack.c.bf16 %v2809_v11, %v2808_v54 }
0x3cbd   :  { %v2778_v57 = vrot.slane %v2774_v12, 2 }
0x3cbe   :  { %7392 = vmatpush3.bf16.msra.mxu0 %v8470_v14  ;;  %v2987_v28 = vpop.f32.mrb[30].mxu1 }
0x3cbf   :  { %2787 = vrot.lane.b32.xlu0 %v2778_v57, %s7830_s23  ;;  %v2780_v9 = vadd.f32 %v2778_v57, %v8410_v37  ;;  %7393 = vmatprep.subr.bf16.mxu0 %v9174_v0  ;;  %v6931_v31 = vpop.f32.mrb[31].mxu1  ;;  %v9191_v57 = vmov 8  }
0x3cc1   :  { %v6291_v61 = vmul.f32 -1.442695, %v2780_v9  ;;  %v9179_v9 = vmov 11  }
0x3cc3   :  { %7739 = vpow2.f32 %v6291_v61  ;;  %v9190_v61 = vmov 6  }
0x3ccd   :  { %v7740_v63 = vpop.eup %7739 }
0x3cce   :  { %v2784_v35 = vadd.f32 1.0, %v7740_v63  ;;  %v9177_v63 = vmov 3  }
0x3cd0   :  { %7741 = vrcp.f32 %v2784_v35  ;;  %v9189_v35 = vmov 5  }
0x3cda   :  { %v7742_v2 = vpop.eup %7741 }
0x3cdb   :  { %v2797_v21 = vsub.f32 1.0, %v7742_v2  ;;  %v2805_v26 = vmul.f32 %v7742_v2, %v2803_v20 }
0x3d31   :  { %v2788_v6 = vpop.permute.xlu0 %2787 }
0x3d32   :  { %v2790_v7 = vmul.f32 %v7742_v2, %v2788_v6  ;;  %v9188_v2 = vmov 4   ;;  %v9185_v6 = vmov 2  }
0x3d34   :  { %2792 = vrot.lane.b32.xlu1 %v2790_v7, %s7830_s23  ;;  %v9183_v7 = vmov 1  }
0x3da6   :  { %v2793_v8 = vpop.permute.xlu1 %2792 }
0x3da7   :  { %v2795_v44 = vadd.f32 %v2793_v8, %v8410_v37  ;;  %v2810_v37 = vld [vmem:[%s9167_s6 + $0x18] sm:$0xff]  ;;  %v9181_v8 = vmov 0  }
0x3da8   :  { %v8488_v16 = vpack.c.bf16 %v2811_v18, %v2810_v37 }
0x3da9   :  { %7743 = vtanh.f32 %v2795_v44  ;;  %v9187_v44 = vmov 7  }
0x3daa   :  { %7395 = vmatpush3.bf16.msra.mxu0 %v8488_v16 }
0x3dab   :  { %7396 = vmatprep.subr.bf16.mxu0 %v9174_v0 }
0x3db3   :  { %v7744_v19 = vpop.eup %7743 }
0x3db4   :  { %2799 = vrot.lane.b32.xlu0 %v7744_v19, %s7831_s30 }
0x3e26   :  { %v2800_v25 = vpop.permute.xlu0 %2799 }
0x3e27   :  { %v2802_v29 = vmul.f32 %v2800_v25, %v2797_v21 }
0x3e29   :  { %v8496_v53 = vadd.f32 %v2805_v26, %v2802_v29 }
0x3e2b   :  { %v2843_v27 = vrot.slane %v8496_v53, 6  ;;  %v6310_v53 = vld [vmem:[%s9168_s1 + $0x2] sm:$0x3] }
0x3e2d   :  { %2844 = vrot.lane.b32.xlu1 %v2843_v27, %s7831_s30 }
0x3e9f   :  { %v8502_v58 = vpop.permute.xlu1 %2844 }
0x3ea0   :  { %6925 = vmatmul.mubr.msk.f32.vlgmr.msra.gmra.mrb[30].mxu0 %vm140_vm3, %v8502_v58 }
0x3ea1   :  { %6940 = vmatprep.mubr.msk.f32.mxu0 %vm7829_vm1, %v9192_v4 }
0x3f73   :  { %v2914_v32 = vpop.f32.mrb[30].mxu0 }
0x3f74   :  { %v2988_v34 = vadd.f32 %v2987_v28, %v2914_v32  ;;  %v6926_v38 = vpop.f32.mrb[31].mxu0 }
0x3f75   :  { %v2814_v38 = vld [vmem:[%s9169_s7 + $0x8] sm:$0xff] }
0x3f76   :  { %v2995_v59 = vadd.f32 %v8511_v23, %v2988_v34 }
0x3f78   :  { %v2997_v48 = vsel %vm2996_vm7, %v2995_v59, -inf }
0x3f79   :  { %2998 = vmax.xlane.f32.xlu0 %v2997_v48  ;;  %v2816_v48 = vld [vmem:[%s9169_s7 + $0x18] sm:$0xff] }
0x4006   :  { %v2999_v39 = vpop.xlane.xlu0 %2998 }
0x4007   :  { %v3000_v1 = vsub.f32 %v2995_v59, %v2999_v39  ;;  %v2815_v59 = vld [vmem:[%s9169_s7 + $0x10] sm:$0xff] }
0x4009   :  { %v3001_v41 = vmul.f32 1.442695, %v3000_v1  ;;  %v8554_v1 = vpack.c.bf16 %v2815_v59, %v2814_v38 }
0x400b   :  { %7745 = vpow2.f32 %v3001_v41  ;;  %v2817_v41 = vld [vmem:[%s9169_s7 + $0x20] sm:$0xff]  ;;  %7398 = vmatpush3.bf16.msra.mxu0 %v8554_v1 }
0x400c   :  { %7399 = vmatprep.subr.bf16.mxu0 %v9174_v0 }
0x4015   :  { %v7746_v42 = vpop.eup %7745 }
0x4016   :  { %v3003_v45 = vsel %vm2996_vm7, %v7746_v42, 0.0 }
0x4017   :  { %3004 = vadd.xlane.f32.xlu1 %v3003_v45 }
0x40a4   :  { %v3005_v46 = vpop.xlane.xlu1 %3004 }
0x40a5   :  { %7747 = vrcp.f32 %v3005_v46  ;;  %v8567_v46 = vpack.c.bf16 %v2817_v41, %v2816_v48 }
0x40a7   :  { %7401 = vmatpush3.bf16.msra.mxu0 %v8567_v46 }
0x40a8   :  { %7402 = vmatprep.subr.bf16.mxu0 %v9174_v0 }
0x40af   :  { %v7748_v49 = vpop.eup %7747 }
0x40b0   :  { %v3007_v50 = vmul.f32 %v7748_v49, %v7746_v42  ;;  %v8562_v42 = vld [vmem:[%s9169_s7] sm:$0xff] }
0x40b1   :  { %6944 = vmatpush3.msra.mxu1 %v8562_v42 }
0x40b2   :  { %v3009_v17 = vsel %vm3008_vm8, %v3007_v50, 0.0  ;;  %6946 = vmatmul.mubr.msk.f32.vlgmr.msra.gmra.mrb[32].mxu1 %vm46_vm0, %v8482_v24  ;;  %6948 = vmatprep.subr.mxu1 %v9192_v4  ;;  %v3364_v24 = vrot.slane %v8250_v30, 6 }
0x40b3   :  { %3010 = vadd.xlane.f32.xlu0 %v3009_v17  ;;  %6950 = vmatprep.mubr.msk.f32.mxu1 %vm7829_vm1, %v9192_v4 }
0x4140   :  { %v3011_v5 = vpop.xlane.xlu0 %3010 }
0x4141   :  { %v3012_v56 = vadd.f32 1e-05, %v3011_v5 }
0x4143   :  { %7749 = vrcp.f32 %v3012_v56 }
0x414d   :  { %v7750_v12 = vpop.eup %7749 }
0x414e   :  { %v3014_v43 = vmul.f32 %v7750_v12, %v3007_v50 }
0x4150   :  { %3033 = vperm.xlu1 %7553, %v3014_v43   ;;  %3022 = vperm.xlu0 %7552, %v3014_v43  }
0x4154   :  { %7554 = vset.pattern.permute.xlu1 %v9191_v57  ;;  %7561 = vset.pattern.permute.xlu0 %v9179_v9 }
0x4155   :  { %3044 = vperm.xlu1 %7554, %v3014_v43   ;;  %3017 = vperm.xlu0 %7561, %v3014_v43  }
0x4159   :  { %7555 = vset.pattern.permute.xlu1 %v9190_v61  ;;  %7563 = vset.pattern.permute.xlu0 %v9177_v63 }
0x415a   :  { %3061 = vperm.xlu1 %7555, %v3014_v43  }
0x415e   :  { %7556 = vset.pattern.permute.xlu1 %v9189_v35 }
0x415f   :  { %3072 = vperm.xlu1 %7556, %v3014_v43  }
0x4163   :  { %7557 = vset.pattern.permute.xlu1 %v9188_v2 }
0x4164   :  { %3083 = vperm.xlu1 %7557, %v3014_v43  }
0x4168   :  { %7558 = vset.pattern.permute.xlu1 %v9185_v6 }
0x4169   :  { %3100 = vperm.xlu1 %7558, %v3014_v43  }
0x416d   :  { %7559 = vset.pattern.permute.xlu1 %v9183_v7 }
0x416e   :  { %3111 = vperm.xlu1 %7559, %v3014_v43  }
0x4172   :  { %7560 = vset.pattern.permute.xlu1 %v9181_v8 }
0x4173   :  { %3122 = vperm.xlu1 %7560, %v3014_v43  }
0x4177   :  { %7562 = vset.pattern.permute.xlu1 %v9187_v44 }
0x4178   :  { %3055 = vperm.xlu1 %7562, %v3014_v43  }
0x417c   :  { %7565 = vset.pattern.permute.xlu1 %v7832_v51 }
0x41cf   :  { %v3034_v54 = vpop.permute.xlu1 %3033  ;;  %v3023_v11 = vpop.permute.xlu0 %3022 }
0x41d0   :  { %v3037_v37 = vmul.f32 %v3034_v54, %v8306_v36  ;;  %v3026_v18 = vmul.f32 %v3023_v11, %v8289_v10 }
0x41d2   :  { %3039 = vrot.lane.b32.xlu0 %v3037_v37, %s7844_s21  ;;  %3028 = vrot.lane.b32.xlu1 %v3026_v18, %s7844_s21 }
0x41d4   :  { %v3045_v19 = vpop.permute.xlu1 %3044  ;;  %v3018_v5 = vpop.permute.xlu0 %3017 }
0x41d5   :  { %v3048_v20 = vmul.f32 %v3045_v19, %v8323_v60  ;;  %v3020_v12 = vmul.f32 %v3018_v5, %v8255_v3  ;;  %v2825_v5 = vld [vmem:[%s9170_s4 + $0x8] sm:$0xff] }
0x41d6   :  { %3094 = vperm.xlu0 %7563, %v3014_v43  }
0x41d7   :  { %3050 = vrot.lane.b32.xlu1 %v3048_v20, %s7844_s21 }
0x41d9   :  { %v3062_v21 = vpop.permute.xlu1 %3061 }
0x41da   :  { %v3065_v25 = vmul.f32 %v3062_v21, %v8362_v47  ;;  %7564 = vset.pattern.permute.xlu0 %v9176_v52 }
0x41dc   :  { %3067 = vrot.lane.b32.xlu1 %v3065_v25, %s7844_s21 }
0x41de   :  { %v3073_v26 = vpop.permute.xlu1 %3072 }
0x41df   :  { %v3076_v29 = vmul.f32 %v3073_v26, %v8379_v15 }
0x41e1   :  { %3078 = vrot.lane.b32.xlu1 %v3076_v29, %s7844_s21 }
0x41e3   :  { %v3084_v28 = vpop.permute.xlu1 %3083 }
0x41e4   :  { %v3087_v31 = vmul.f32 %v3084_v28, %v8396_v40 }
0x41e6   :  { %3089 = vrot.lane.b32.xlu0 %v3087_v31, %s7844_s21 }
0x41e8   :  { %v3101_v32 = vpop.permute.xlu1 %3100 }
0x41e9   :  { %v3104_v34 = vmul.f32 %v3101_v32, %v8435_v33 }
0x41eb   :  { %3106 = vrot.lane.b32.xlu1 %v3104_v34, %s7844_s21 }
0x41ed   :  { %v3112_v39 = vpop.permute.xlu1 %3111 }
0x41ee   :  { %v3115_v45 = vmul.f32 %v3112_v39, %v8448_v55 }
0x41f0   :  { %3117 = vrot.lane.b32.xlu0 %v3115_v45, %s7844_s21 }
0x41f2   :  { %v3123_v49 = vpop.permute.xlu1 %3122 }
0x41f3   :  { %v3126_v50 = vmul.f32 %v3123_v49, %v8502_v58 }
0x41f5   :  { %3128 = vrot.lane.b32.xlu1 %v3126_v50, %s7844_s21  ;;  %v3273_v50 = vpop.f32.mrb[32].mxu1 }
0x41f7   :  { %v3056_v17 = vpop.permute.xlu1 %3055 }
0x41f8   :  { %v3058_v20 = vmul.f32 %v3056_v17, %v8343_v22  ;;  %v6947_v17 = vpop.f32.mrb[33].mxu1 }
0x41f9   :  { %3365 = vrot.lane.b32.xlu1 %v3364_v24, %s7831_s30 }
0x4244   :  { %v3029_v56 = vpop.permute.xlu1 %3028  ;;  %v3040_v54 = vpop.permute.xlu0 %3039 }
0x4245   :  { %v3031_v43 = vadd.f32 %v3029_v56, %v3020_v12  ;;  %v2826_v56 = vld [vmem:[%s9170_s4 + $0x10] sm:$0xff] }
0x4246   :  { %v8594_v12 = vpack.c.bf16 %v2826_v56, %v2825_v5  ;;  %v8668_v5 = vld [vmem:[%s9171_s5] ss:$0 sm:$0xff] }
0x4247   :  { %v3042_v37 = vadd.f32 %v3040_v54, %v3031_v43  ;;  %v2827_v43 = vld [vmem:[%s9170_s4 + $0x18] sm:$0xff]  ;;  %v2828_v54 = vld [vmem:[%s9170_s4 + $0x20] sm:$0xff] }
0x4249   :  { %v3051_v11 = vpop.permute.xlu1 %3050 }
0x424a   :  { %v3053_v18 = vadd.f32 %v3051_v11, %v3042_v37  ;;  %v8604_v37 = vpack.c.bf16 %v2828_v54, %v2827_v43 }
0x424c   :  { %v3059_v21 = vadd.f32 %v3058_v20, %v3053_v18  ;;  %v2835_v18 = vld [vmem:[%s9170_s4 + $0x48] sm:$0xff] }
0x424e   :  { %v3068_v19 = vpop.permute.xlu1 %3067 }
0x424f   :  { %v3070_v29 = vadd.f32 %v3068_v19, %v3059_v21  ;;  %v2836_v19 = vld [vmem:[%s9170_s4 + $0x50] sm:$0xff]  ;;  %v2837_v21 = vld [vmem:[%s9170_s4 + $0x58] sm:$0xff] }
0x4250   :  { %v8616_v20 = vpack.c.bf16 %v2836_v19, %v2835_v18 }
0x4253   :  { %v3079_v26 = vpop.permute.xlu1 %3078 }
0x4254   :  { %v3081_v31 = vadd.f32 %v3079_v26, %v3070_v29 }
0x4255   :  { %v3095_v25 = vpop.permute.xlu0 %3094 }
0x4256   :  { %v3097_v34 = vmul.f32 %v3095_v25, %v8416_v62  ;;  %v2838_v25 = vld [vmem:[%s9170_s4 + $0x60] sm:$0xff] }
0x4257   :  { %v8627_v29 = vpack.c.bf16 %v2838_v25, %v2837_v21 }
0x4259   :  { %v3090_v28 = vpop.permute.xlu0 %3089 }
0x425a   :  { %v3092_v32 = vadd.f32 %v3090_v28, %v3081_v31  ;;  %v8645_v28 = vld [vmem:[%s9170_s4] sm:$0xff]  ;;  %v8652_v31 = vld [vmem:[%s9169_s7 + $0x28] ss:$0 sm:$0xff] }
0x425b   :  { %6949 = vmatpush3.msra.mxu1 %v8645_v28 }
0x425c   :  { %v3098_v38 = vadd.f32 %v3097_v34, %v3092_v32  ;;  %7408 = vmatprep.subr.bf16.mxu1 %v9174_v0 }
0x425d   :  { %v3107_v59 = vpop.permute.xlu1 %3106 }
0x425e   :  { %v3109_v39 = vadd.f32 %v3107_v59, %v3098_v38 }
0x4262   :  { %v3118_v48 = vpop.permute.xlu0 %3117 }
0x4263   :  { %v3120_v41 = vadd.f32 %v3118_v48, %v3109_v39  ;;  %v8658_v39 = vld [vmem:[%s9171_s5 + $0x1] ss:$0 sm:$0xff] }
0x4267   :  { %v3129_v45 = vpop.permute.xlu1 %3128 }
0x4268   :  { %v3131_v49 = vadd.f32 %v3129_v45, %v3120_v41 }
0x426a   :  { %3133 = vrot.lane.b32.xlu0 %v3131_v49, %s7831_s30 }
0x426b   :  { %v3366_v26 = vpop.permute.xlu1 %3365 }
0x42dc   :  { %v3134_v11 = vpop.permute.xlu0 %3133 }
0x42dd   :  { %6941 = vmatmul.mubr.msk.f32.vlgmr.msra.gmra.mrb[32].mxu0 %vm140_vm3, %v3134_v11 }
0x42de   :  { %7404 = vmatpush3.bf16.msra.mxu0 %v8594_v12  ;;  %6961 = vmatprep.mubr.msk.f32.mxu0 %vm7829_vm1, %v9192_v4 }
0x42df   :  { %7405 = vmatprep.subr.bf16.mxu0 %v9174_v0 }
0x42e2   :  { %7407 = vmatpush3.bf16.msra.mxu0 %v8604_v37 }
0x42e3   :  { %7414 = vmatprep.subr.bf16.mxu0 %v9174_v0 }
0x42e5   :  { %6962 = vmatmul.mubr.msk.f32.vlgmr.msra.gmra.mrb[34].mxu0 %vm140_vm3, %v3366_v26 }
0x42e6   :  { %7416 = vmatpush3.bf16.msra.mxu0 %v8616_v20  ;;  %6983 = vmatprep.mubr.msk.f32.mxu0 %vm7829_vm1, %v9192_v4 }
0x42e7   :  { %7417 = vmatprep.subr.bf16.mxu0 %v9174_v0 }
0x42ea   :  { %7419 = vmatpush3.bf16.msra.mxu0 %v8627_v29 }
0x42eb   :  { %7426 = vmatprep.subr.bf16.mxu0 %v9174_v0 }
0x42ed   :  { %6984 = vmatmul.mubr.msk.f32.vlgmr.msra.gmra.mrb[36].mxu0 %vm140_vm3, %v8502_v58 }
0x42ee   :  { %7428 = vmatpush3.bf16.msra.mxu0 %v8470_v14  ;;  %7005 = vmatprep.mubr.msk.f32.mxu0 %vm7829_vm1, %v9192_v4 }
0x42ef   :  { %7429 = vmatprep.subr.bf16.mxu0 %v9174_v0 }
0x42f2   :  { %7431 = vmatpush3.bf16.msra.mxu0 %v8488_v16 }
0x42f3   :  { %7024 = vmatprep.subr.mxu0 %v9192_v4 }
0x43b0   :  { %v3203_v32 = vpop.f32.mrb[32].mxu0 }
0x43b1   :  { %v3274_v34 = vadd.f32 %v3273_v50, %v3203_v32  ;;  %v6942_v38 = vpop.f32.mrb[33].mxu0 }
0x43b3   :  { %v3281_v59 = vadd.f32 %v8652_v31, %v3274_v34 }
0x43b5   :  { %v3282_v48 = vmax.f32 %v3281_v59, 0.0  ;;  %v2831_v59 = vld [vmem:[%s9170_s4 + $0x28] sm:$0xff] }
0x43b7   :  { %6951 = vmatmul.mubr.msk.f32.vlgmr.msra.gmra.mrb[34].mxu1 %vm46_vm0, %v3282_v48  ;;  %v2832_v48 = vld [vmem:[%s9170_s4 + $0x30] sm:$0xff] }
0x43b8   :  { %v3435_v41 = vpop.f32.mrb[34].mxu0  ;;  %6972 = vmatprep.mubr.msk.f32.mxu1 %vm7829_vm1, %v9192_v4 }
0x43b9   :  { %v3436_v45 = vadd.f32 %v8658_v39, %v3435_v41  ;;  %v6963_v49 = vpop.f32.mrb[35].mxu0  ;;  %v2833_v41 = vld [vmem:[%s9170_s4 + $0x38] sm:$0xff] }
0x43ba   :  { %v2834_v49 = vld [vmem:[%s9170_s4 + $0x40] sm:$0xff] }
0x43bb   :  { %3447 = vrot.lane.b32.xlu0 %v3436_v45, %s7830_s23 }
0x43c0   :  { %v3615_v50 = vpop.f32.mrb[36].mxu0 }
0x43c1   :  { %v6985_v17 = vpop.f32.mrb[37].mxu0 }
0x43c2   :  { %v8687_v17 = vpack.c.bf16 %v2834_v49, %v2833_v41 }
0x442d   :  { %v3448_v26 = vpop.permute.xlu0 %3447 }
0x448a   :  { %v3356_v56 = vpop.f32.mrb[34].mxu1 }
0x448b   :  { %v3357_v43 = vadd.f32 %v8668_v5, %v3356_v56  ;;  %v6952_v54 = vpop.f32.mrb[35].mxu1 }
0x448d   :  { %v3439_v11 = vadd.f32 %v3436_v45, %v3357_v43  ;;  %v8681_v45 = vpack.c.bf16 %v2832_v48, %v2831_v59 }
0x448f   :  { %v6302_v18 = vmul.f32 -1.442695, %v3439_v11  ;;  %7410 = vmatpush3.bf16.msra.mxu1 %v8681_v45 }
0x4490   :  { %7411 = vmatprep.subr.bf16.mxu1 %v9174_v0 }
0x4491   :  { %7751 = vpow2.f32 %v6302_v18 }
0x4493   :  { %7413 = vmatpush3.bf16.msra.mxu1 %v8687_v17 }
0x4494   :  { %7420 = vmatprep.subr.bf16.mxu1 %v9174_v0 }
0x449b   :  { %v7752_v19 = vpop.eup %7751 }
0x449c   :  { %v3443_v21 = vadd.f32 1.0, %v7752_v19 }
0x449e   :  { %7753 = vrcp.f32 %v3443_v21 }
0x44a8   :  { %v7754_v25 = vpop.eup %7753 }
0x44a9   :  { %v3450_v32 = vmul.f32 %v7754_v25, %v3448_v26  ;;  %v3457_v11 = vsub.f32 1.0, %v7754_v25  ;;  %v3464_v19 = vmul.f32 %v7754_v25, %v3364_v24 }
0x44ab   :  { %3452 = vrot.lane.b32.xlu1 %v3450_v32, %s7830_s23 }
0x451d   :  { %v3453_v34 = vpop.permute.xlu1 %3452 }
0x451e   :  { %v3455_v38 = vadd.f32 %v3453_v34, %v3357_v43  ;;  %v8694_v43 = vld [vmem:[%s9171_s5 + $0x3] ss:$0 sm:$0xff] }
0x451f   :  { %v3616_v54 = vadd.f32 %v8694_v43, %v3615_v50  ;;  %v8715_v50 = vld [vmem:[%s9171_s5 + $0x2] ss:$0 sm:$0xff] }
0x4520   :  { %7755 = vtanh.f32 %v3455_v38 }
0x452a   :  { %v7756_v56 = vpop.eup %7755 }
0x452b   :  { %3459 = vrot.lane.b32.xlu0 %v7756_v56, %s7831_s30 }
0x452f   :  { %3627 = vrot.lane.b32.xlu0 %v3616_v54, %s7830_s23 }
0x459d   :  { %v3460_v18 = vpop.permute.xlu0 %3459 }
0x459e   :  { %v3462_v21 = vmul.f32 %v3460_v18, %v3457_v11 }
0x45a0   :  { %v8702_v26 = vadd.f32 %v3464_v19, %v3462_v21  ;;  %v2819_v19 = vld [vmem:[%s9172_s8] sm:$0xff]  ;;  %v2821_v21 = vld [vmem:[%s9172_s8 + $0x10] sm:$0xff] }
0x45a1   :  { %v3628_v49 = vpop.permute.xlu0 %3627 }
0x45a2   :  { %3471 = vrot.lane.b32.xlu1 %v8702_v26, %s7831_s30 }
0x4614   :  { %v8706_v32 = vpop.permute.xlu1 %3471 }
0x4615   :  { %6973 = vmatmul.mubr.msk.f32.vlgmr.msra.gmra.mrb[36].mxu1 %vm140_vm3, %v8706_v32 }
0x4616   :  { %6994 = vmatprep.mubr.msk.f32.mxu1 %vm7829_vm1, %v9192_v4 }
0x46e8   :  { %v3541_v30 = vpop.f32.mrb[36].mxu1 }
0x46e9   :  { %v3542_v24 = vadd.f32 %v8715_v50, %v3541_v30  ;;  %v6974_v25 = vpop.f32.mrb[37].mxu1 }
0x46ea   :  { %v2822_v25 = vld [vmem:[%s9172_s8 + $0x18] sm:$0xff] }
0x46eb   :  { %v3619_v34 = vadd.f32 %v3616_v54, %v3542_v24  ;;  %v2820_v54 = vld [vmem:[%s9172_s8 + $0x8] sm:$0xff] }
0x46ec   :  { %v8728_v30 = vpack.c.bf16 %v2820_v54, %v2819_v19 }
0x46ed   :  { %v6307_v38 = vmul.f32 -1.442695, %v3619_v34 }
0x46ee   :  { %7422 = vmatpush3.bf16.msra.mxu1 %v8728_v30 }
0x46ef   :  { %7757 = vpow2.f32 %v6307_v38  ;;  %7423 = vmatprep.subr.bf16.mxu1 %v9174_v0 }
0x46f9   :  { %v7758_v59 = vpop.eup %7757 }
0x46fa   :  { %v3623_v48 = vadd.f32 1.0, %v7758_v59 }
0x46fc   :  { %7759 = vrcp.f32 %v3623_v48 }
0x4706   :  { %v7760_v41 = vpop.eup %7759 }
0x4707   :  { %v3630_v56 = vmul.f32 %v7760_v41, %v3628_v49  ;;  %v3637_v38 = vsub.f32 1.0, %v7760_v41  ;;  %v3644_v48 = vmul.f32 %v7760_v41, %v2843_v27 }
0x4709   :  { %3632 = vrot.lane.b32.xlu1 %v3630_v56, %s7830_s23 }
0x477b   :  { %v3633_v11 = vpop.permute.xlu1 %3632 }
0x477c   :  { %v3635_v18 = vadd.f32 %v3633_v11, %v3542_v24  ;;  %v8734_v24 = vpack.c.bf16 %v2822_v25, %v2821_v21 }
0x477e   :  { %7761 = vtanh.f32 %v3635_v18  ;;  %7425 = vmatpush3.bf16.msra.mxu1 %v8734_v24 }
0x477f   :  { %7008 = vmatprep.subr.mxu1 %v9192_v4 }
0x4788   :  { %v7762_v34 = vpop.eup %7761 }
0x4789   :  { %3639 = vrot.lane.b32.xlu0 %v7762_v34, %s7831_s30 }
0x47fb   :  { %v3640_v59 = vpop.permute.xlu0 %3639 }
0x47fc   :  { %v3642_v49 = vmul.f32 %v3640_v59, %v3637_v38 }
0x47fe   :  { %v8742_v56 = vadd.f32 %v3644_v48, %v3642_v49 }
0x4800   :  { %3651 = vrot.lane.b32.xlu1 %v8742_v56, %s7831_s30 }
0x4872   :  { %v8746_v11 = vpop.permute.xlu1 %3651 }
0x4873   :  { %6995 = vmatmul.mubr.msk.f32.vlgmr.msra.gmra.mrb[38].mxu1 %vm140_vm3, %v8746_v11  ;;  %7006 = vmatmul.mubr.msk.f32.vlgmr.msra.gmra.mrb[38].mxu0 %vm140_vm3, %v8746_v11 }
0x4874   :  { %7009 = vmatpush3.msra.mxu1 %v8468_v13  ;;  %7010 = vmatprep.mubr.msk.f32.mxu1 %vm7829_vm1, %v9192_v4  ;;  %v8778_v13 = vld [vmem:[%s9172_s8 + $0x20] ss:$0 sm:$0xff] }
0x4875   :  { %7432 = vmatprep.subr.bf16.mxu1 %v9174_v0  ;;  %7025 = vmatpush3.msra.mxu0 %v8562_v42 }
0x4876   :  { %7026 = vmatprep.mubr.msk.f32.mxu0 %vm7829_vm1, %v9192_v4  ;;  %7029 = vmatprep.subr.mxu0 %v9192_v4 }
0x4877   :  { %7011 = vmatmul.mubr.msk.f32.vlgmr.msra.gmra.mrb[40].mxu1 %vm46_vm0, %v6310_v53  ;;  %7027 = vmatmul.mubr.msk.f32.vlgmr.msra.gmra.mrb[40].mxu0 %vm46_vm0, %v6310_v53 }
0x4878   :  { %7434 = vmatpush3.bf16.msra.mxu1 %v8554_v1  ;;  %7021 = vmatprep.mubr.msk.f32.mxu1 %vm7829_vm1, %v9192_v4 }
0x4879   :  { %7435 = vmatprep.subr.bf16.mxu1 %v9174_v0  ;;  %7030 = vmatpush3.msra.mxu0 %v8645_v28 }
0x487a   :  { %7031 = vmatprep.mubr.msk.f32.mxu0 %vm7829_vm1, %v9192_v4  ;;  %7444 = vmatprep.subr.bf16.mxu0 %v9174_v0 }
0x487c   :  { %7437 = vmatpush3.bf16.msra.mxu1 %v8567_v46 }
0x487d   :  { %7438 = vmatprep.subr.bf16.mxu1 %v9174_v0 }
0x4946   :  { %v3721_v27 = vpop.f32.mrb[38].mxu1  ;;  %v3795_v41 = vpop.f32.mrb[38].mxu0 }
0x4947   :  { %v3722_v18 = vadd.f32 %v8778_v13, %v3721_v27  ;;  %v6996_v19 = vpop.f32.mrb[39].mxu1  ;;  %v7007_v54 = vpop.f32.mrb[39].mxu0 }
0x4949   :  { %3726 = vst.msk [vmem:[%s9173_s9] sm:$0x3] %vm3725_vm9, %v3722_v18 }
0x494a   :  { %v3868_v21 = vpop.f32.mrb[40].mxu1 }
0x494b   :  { %v3869_v25 = vadd.f32 %v3868_v21, %v3795_v41  ;;  %v7012_v34 = vpop.f32.mrb[41].mxu1 }
0x494d   :  { %v3872_v38 = vadd.f32 %v8511_v23, %v3869_v25 }
0x494f   :  { %v3873_v59 = vsel %vm2996_vm7, %v3872_v38, -inf }
0x4950   :  { %3874 = vmax.xlane.f32.xlu0 %v3873_v59 }
0x49dd   :  { %v3875_v48 = vpop.xlane.xlu0 %3874 }
0x49de   :  { %v3876_v49 = vsub.f32 %v3872_v38, %v3875_v48 }
0x49e0   :  { %v3877_v53 = vmul.f32 1.442695, %v3876_v49 }
0x49e2   :  { %7763 = vpow2.f32 %v3877_v53 }
0x49ec   :  { %v7764_v27 = vpop.eup %7763 }
0x49ed   :  { %v3879_v19 = vsel %vm2996_vm7, %v7764_v27, 0.0 }
0x49ee   :  { %3880 = vadd.xlane.f32.xlu1 %v3879_v19 }
0x4a7b   :  { %v3881_v54 = vpop.xlane.xlu1 %3880 }
0x4a7c   :  { %7765 = vrcp.f32 %v3881_v54 }
0x4a86   :  { %v7766_v0 = vpop.eup %7765 }
0x4a87   :  { %v3883_v18 = vmul.f32 %v7766_v0, %v7764_v27 }
0x4a89   :  { %v3884_v41 = vsel %vm3008_vm8, %v3883_v18, 0.0 }
0x4a8a   :  { %3885 = vadd.xlane.f32.xlu0 %v3884_v41 }
0x4b17   :  { %v3886_v21 = vpop.xlane.xlu0 %3885 }
0x4b18   :  { %v3887_v23 = vadd.f32 1e-05, %v3886_v21 }
0x4b1a   :  { %7767 = vrcp.f32 %v3887_v23 }
0x4b24   :  { %v7768_v25 = vpop.eup %7767 }
0x4b25   :  { %v3889_v34 = vmul.f32 %v7768_v25, %v3883_v18 }
0x4b27   :  { %3907 = vperm.xlu1 %7565, %v3889_v34   ;;  %3897 = vperm.xlu0 %7564, %v3889_v34  }
0x4b2b   :  { %7566 = vset.pattern.permute.xlu1 %v9191_v57  ;;  %7572 = vset.pattern.permute.xlu0 %v9181_v8 }
0x4b2c   :  { %3917 = vperm.xlu1 %7566, %v3889_v34   ;;  %3989 = vperm.xlu0 %7572, %v3889_v34  }
0x4b30   :  { %7567 = vset.pattern.permute.xlu1 %v9190_v61  ;;  %7577 = vset.pattern.permute.xlu0 %v7832_v51 }
0x4b31   :  { %3933 = vperm.xlu1 %7567, %v3889_v34  }
0x4b35   :  { %7568 = vset.pattern.permute.xlu1 %v9189_v35 }
0x4b36   :  { %3943 = vperm.xlu1 %7568, %v3889_v34  }
0x4b3a   :  { %7569 = vset.pattern.permute.xlu1 %v9188_v2 }
0x4b3b   :  { %3953 = vperm.xlu1 %7569, %v3889_v34  }
0x4b3f   :  { %7570 = vset.pattern.permute.xlu1 %v9185_v6 }
0x4b40   :  { %3969 = vperm.xlu1 %7570, %v3889_v34  }
0x4b44   :  { %7571 = vset.pattern.permute.xlu1 %v9183_v7 }
0x4b45   :  { %3979 = vperm.xlu1 %7571, %v3889_v34  }
0x4b49   :  { %7573 = vset.pattern.permute.xlu1 %v9179_v9 }
0x4b4a   :  { %3892 = vperm.xlu1 %7573, %v3889_v34  }
0x4b4e   :  { %7574 = vset.pattern.permute.xlu1 %v9187_v44 }
0x4b4f   :  { %3927 = vperm.xlu1 %7574, %v3889_v34  }
0x4b53   :  { %7575 = vset.pattern.permute.xlu1 %v9177_v63 }
0x4ba6   :  { %v3908_v0 = vpop.permute.xlu1 %3907  ;;  %v3898_v38 = vpop.permute.xlu0 %3897 }
0x4ba7   :  { %v3910_v59 = vmul.f32 %v3908_v0, %v8306_v36  ;;  %v3900_v48 = vmul.f32 %v3898_v38, %v8289_v10 }
0x4ba9   :  { %3912 = vrot.lane.b32.xlu1 %v3910_v59, %s7844_s21  ;;  %3902 = vrot.lane.b32.xlu0 %v3900_v48, %s7844_s21 }
0x4bab   :  { %v3918_v49 = vpop.permute.xlu1 %3917 }
0x4bac   :  { %v3920_v53 = vmul.f32 %v3918_v49, %v8323_v60 }
0x4bad   :  { %3963 = vperm.xlu1 %7575, %v3889_v34   ;;  %v3990_v34 = vpop.permute.xlu0 %3989 }
0x4bae   :  { %3922 = vrot.lane.b32.xlu0 %v3920_v53, %s7844_s21  ;;  %v3992_v0 = vmul.f32 %v3990_v34, %v8502_v58 }
0x4bb0   :  { %v3934_v27 = vpop.permute.xlu1 %3933 }
0x4bb1   :  { %v3936_v19 = vmul.f32 %v3934_v27, %v8362_v47  ;;  %7576 = vset.pattern.permute.xlu1 %v9176_v52 }
0x4bb3   :  { %3938 = vrot.lane.b32.xlu0 %v3936_v19, %s7844_s21 }
0x4bb5   :  { %v3944_v54 = vpop.permute.xlu1 %3943 }
0x4bb6   :  { %v3946_v18 = vmul.f32 %v3944_v54, %v8379_v15 }
0x4bb8   :  { %3948 = vrot.lane.b32.xlu1 %v3946_v18, %s7844_s21 }
0x4bba   :  { %v3954_v41 = vpop.permute.xlu1 %3953 }
0x4bbb   :  { %v3956_v21 = vmul.f32 %v3954_v41, %v8396_v40 }
0x4bbd   :  { %3958 = vrot.lane.b32.xlu0 %v3956_v21, %s7844_s21 }
0x4bbf   :  { %v3970_v23 = vpop.permute.xlu1 %3969 }
0x4bc0   :  { %v3972_v25 = vmul.f32 %v3970_v23, %v8435_v33 }
0x4bc2   :  { %3974 = vrot.lane.b32.xlu1 %v3972_v25, %s7844_s21 }
0x4bc4   :  { %v3980_v38 = vpop.permute.xlu1 %3979 }
0x4bc5   :  { %v3982_v59 = vmul.f32 %v3980_v38, %v8448_v55 }
0x4bc6   :  { %3994 = vrot.lane.b32.xlu1 %v3992_v0, %s7844_s21 }
0x4bc7   :  { %3984 = vrot.lane.b32.xlu0 %v3982_v59, %s7844_s21 }
0x4bc9   :  { %v3893_v48 = vpop.permute.xlu1 %3892 }
0x4bca   :  { %v3895_v53 = vmul.f32 %v3893_v48, %v8255_v3 }
0x4bce   :  { %v3928_v27 = vpop.permute.xlu1 %3927 }
0x4bcf   :  { %v3930_v23 = vmul.f32 %v3928_v27, %v8343_v22  ;;  %v4139_v27 = vpop.f32.mrb[40].mxu0 }
0x4c1b   :  { %v3903_v49 = vpop.permute.xlu0 %3902  ;;  %v3913_v54 = vpop.permute.xlu1 %3912 }
0x4c1c   :  { %v3905_v19 = vadd.f32 %v3903_v49, %v3895_v53 }
0x4c1e   :  { %v3915_v18 = vadd.f32 %v3913_v54, %v3905_v19 }
0x4c20   :  { %v3923_v41 = vpop.permute.xlu0 %3922 }
0x4c21   :  { %v3925_v21 = vadd.f32 %v3923_v41, %v3915_v18  ;;  %v7028_v18 = vpop.f32.mrb[41].mxu0 }
0x4c23   :  { %v3931_v25 = vadd.f32 %v3930_v23, %v3925_v21 }
0x4c25   :  { %v3939_v34 = vpop.permute.xlu0 %3938 }
0x4c26   :  { %v3941_v38 = vadd.f32 %v3939_v34, %v3931_v25 }
0x4c2c   :  { %v3964_v52 = vpop.permute.xlu1 %3963 }
0x4c2d   :  { %v3966_v59 = vmul.f32 %v3964_v52, %v8416_v62  ;;  %v9194_v52 = vmov 0.0|0.0  }
0x4c2f   :  { %v3959_v9 = vpop.permute.xlu0 %3958 }
0x4c30   :  { %v3949_v63 = vpop.permute.xlu1 %3948 }
0x4c31   :  { %v3951_v0 = vadd.f32 %v3949_v63, %v3941_v38 }
0x4c33   :  { %v3961_v8 = vadd.f32 %v3959_v9, %v3951_v0 }
0x4c34   :  { %v3975_v7 = vpop.permute.xlu1 %3974 }
0x4c35   :  { %v3967_v48 = vadd.f32 %v3966_v59, %v3961_v8 }
0x4c37   :  { %v3977_v6 = vadd.f32 %v3975_v7, %v3967_v48 }
0x4c38   :  { %v3995_v19 = vpop.permute.xlu1 %3994 }
0x4c39   :  { %v3985_v49 = vpop.permute.xlu0 %3984 }
0x4c3a   :  { %v3987_v53 = vadd.f32 %v3985_v49, %v3977_v6 }
0x4c3c   :  { %v3997_v54 = vadd.f32 %v3995_v19, %v3987_v53 }
0x4c3e   :  { %3999 = vrot.lane.b32.xlu0 %v3997_v54, %s7831_s30 }
0x4cb0   :  { %v4000_v41 = vpop.permute.xlu0 %3999 }
0x4cb1   :  { %7022 = vmatmul.mubr.msk.f32.vlgmr.msra.gmra.mrb[42].mxu1 %vm140_vm3, %v4000_v41 }
0x4cb2   :  { %7440 = vmatpush3.bf16.msra.mxu1 %v8594_v12  ;;  %7042 = vmatprep.mubr.msk.f32.mxu1 %vm7829_vm1, %v9192_v4 }
0x4cb3   :  { %7441 = vmatprep.subr.bf16.mxu1 %v9194_v52 }
0x4cb6   :  { %7443 = vmatpush3.bf16.msra.mxu1 %v8604_v37 }
0x4cb7   :  { %7450 = vmatprep.subr.bf16.mxu1 %v9194_v52 }
0x4cb9   :  { %7043 = vmatmul.mubr.msk.f32.vlgmr.msra.gmra.mrb[44].mxu1 %vm140_vm3, %v8706_v32 }
0x4cba   :  { %7452 = vmatpush3.bf16.msra.mxu1 %v8616_v20  ;;  %7064 = vmatprep.mubr.msk.f32.mxu1 %vm7829_vm1, %v9192_v4 }
0x4cbb   :  { %7453 = vmatprep.subr.bf16.mxu1 %v9194_v52 }
0x4cbe   :  { %7455 = vmatpush3.bf16.msra.mxu1 %v8627_v29 }
0x4cbf   :  { %7462 = vmatprep.subr.bf16.mxu1 %v9194_v52 }
0x4cc1   :  { %7065 = vmatmul.mubr.msk.f32.vlgmr.msra.gmra.mrb[46].mxu1 %vm140_vm3, %v8746_v11 }
0x4cc2   :  { %7464 = vmatpush3.bf16.msra.mxu1 %v8470_v14  ;;  %7086 = vmatprep.mubr.msk.f32.mxu1 %vm7829_vm1, %v9192_v4 }
0x4cc3   :  { %7465 = vmatprep.subr.bf16.mxu1 %v9194_v52 }
0x4cc6   :  { %7467 = vmatpush3.bf16.msra.mxu1 %v8488_v16 }
0x4cc7   :  { %7105 = vmatprep.subr.mxu1 %v9192_v4 }
0x4d84   :  { %v4069_v9 = vpop.f32.mrb[42].mxu1 }
0x4d85   :  { %v4140_v63 = vadd.f32 %v4139_v27, %v4069_v9  ;;  %v7023_v6 = vpop.f32.mrb[43].mxu1 }
0x4d87   :  { %v4143_v7 = vadd.f32 %v8652_v31, %v4140_v63 }
0x4d89   :  { %v4144_v8 = vmax.f32 %v4143_v7, 0.0 }
0x4d8b   :  { %7032 = vmatmul.mubr.msk.f32.vlgmr.msra.gmra.mrb[42].mxu0 %vm46_vm0, %v4144_v8 }
0x4d8c   :  { %v4284_v32 = vpop.f32.mrb[44].mxu1  ;;  %7446 = vmatpush3.bf16.msra.mxu0 %v8681_v45  ;;  %7053 = vmatprep.mubr.msk.f32.mxu0 %vm7829_vm1, %v9192_v4 }
0x4d8d   :  { %v4285_v11 = vadd.f32 %v8658_v39, %v4284_v32  ;;  %v7044_v21 = vpop.f32.mrb[45].mxu1  ;;  %7447 = vmatprep.subr.bf16.mxu0 %v9194_v52 }
0x4d8f   :  { %4296 = vrot.lane.b32.xlu1 %v4285_v11, %s7830_s23 }
0x4d90   :  { %7449 = vmatpush3.bf16.msra.mxu0 %v8687_v17 }
0x4d91   :  { %7456 = vmatprep.subr.bf16.mxu0 %v9194_v52 }
0x4d94   :  { %v4455_v23 = vpop.f32.mrb[46].mxu1 }
0x4d95   :  { %v7066_v25 = vpop.f32.mrb[47].mxu1  ;;  %v4456_v63 = vadd.f32 %v8694_v43, %v4455_v23 }
0x4e01   :  { %v4297_v54 = vpop.permute.xlu1 %4296 }
0x4e5e   :  { %v4214_v34 = vpop.f32.mrb[42].mxu0 }
0x4e5f   :  { %v4215_v38 = vadd.f32 %v8668_v5, %v4214_v34  ;;  %v7033_v0 = vpop.f32.mrb[43].mxu0 }
0x4e61   :  { %v4288_v59 = vadd.f32 %v4285_v11, %v4215_v38 }
0x4e63   :  { %v6317_v48 = vmul.f32 -1.442695, %v4288_v59 }
0x4e65   :  { %7769 = vpow2.f32 %v6317_v48 }
0x4e6f   :  { %v7770_v49 = vpop.eup %7769 }
0x4e70   :  { %v4292_v53 = vadd.f32 1.0, %v7770_v49 }
0x4e72   :  { %7771 = vrcp.f32 %v4292_v53 }
0x4e7c   :  { %v7772_v19 = vpop.eup %7771 }
0x4e7d   :  { %v4299_v27 = vmul.f32 %v7772_v19, %v4297_v54  ;;  %v4306_v6 = vsub.f32 1.0, %v7772_v19  ;;  %v4312_v8 = vmul.f32 %v7772_v19, %v8702_v26 }
0x4e7f   :  { %4301 = vrot.lane.b32.xlu0 %v4299_v27, %s7830_s23 }
0x4ef1   :  { %v4302_v18 = vpop.permute.xlu0 %4301 }
0x4ef2   :  { %v4304_v41 = vadd.f32 %v4302_v18, %v4215_v38 }
0x4ef4   :  { %7773 = vtanh.f32 %v4304_v41 }
0x4efe   :  { %v7774_v9 = vpop.eup %7773 }
0x4eff   :  { %4308 = vrot.lane.b32.xlu1 %v7774_v9, %s7831_s30 }
0x4f03   :  { %4467 = vrot.lane.b32.xlu1 %v4456_v63, %s7830_s23 }
0x4f71   :  { %v4309_v7 = vpop.permute.xlu1 %4308 }
0x4f72   :  { %v4311_v32 = vmul.f32 %v4309_v7, %v4306_v6 }
0x4f74   :  { %v8862_v11 = vadd.f32 %v4312_v8, %v4311_v32  ;;  %v8893_v8 = vld [vmem:[%s9167_s6] sm:$0xff] }
0x4f75   :  { %v4468_v49 = vpop.permute.xlu1 %4467 }
0x4f76   :  { %4315 = vrot.lane.b32.xlu0 %v8862_v11, %s7831_s30 }
0x4fe8   :  { %v8866_v21 = vpop.permute.xlu0 %4315 }
0x4fe9   :  { %7054 = vmatmul.mubr.msk.f32.vlgmr.msra.gmra.mrb[44].mxu0 %vm140_vm3, %v8866_v21 }
0x4fea   :  { %7458 = vmatpush3.bf16.msra.mxu0 %v8728_v30  ;;  %7075 = vmatprep.mubr.msk.f32.mxu0 %vm7829_vm1, %v9192_v4 }
0x4feb   :  { %7459 = vmatprep.subr.bf16.mxu0 %v9194_v52 }
0x4fee   :  { %7461 = vmatpush3.bf16.msra.mxu0 %v8734_v24 }
0x4fef   :  { %7089 = vmatprep.subr.mxu0 %v9192_v4 }
0x50bc   :  { %v4385_v26 = vpop.f32.mrb[44].mxu0 }
0x50bd   :  { %v4386_v23 = vadd.f32 %v8715_v50, %v4385_v26  ;;  %v7055_v25 = vpop.f32.mrb[45].mxu0 }
0x50bf   :  { %v4459_v34 = vadd.f32 %v4456_v63, %v4386_v23 }
0x50c1   :  { %v6320_v38 = vmul.f32 -1.442695, %v4459_v34 }
0x50c3   :  { %7775 = vpow2.f32 %v6320_v38 }
0x50cd   :  { %v7776_v0 = vpop.eup %7775 }
0x50ce   :  { %v4463_v59 = vadd.f32 1.0, %v7776_v0  ;;  %v8926_v0 = vld [vmem:[%s9167_s6 + $0x28] ss:$0 sm:$0xff] }
0x50d0   :  { %7777 = vrcp.f32 %v4463_v59 }
0x50da   :  { %v7778_v48 = vpop.eup %7777 }
0x50db   :  { %v4470_v53 = vmul.f32 %v7778_v48, %v4468_v49  ;;  %v4477_v18 = vsub.f32 1.0, %v7778_v48  ;;  %v4483_v9 = vmul.f32 %v7778_v48, %v8742_v56  ;;  %v6323_v56 = vld [vmem:[%s9168_s1 + $0x4] sm:$0x3] }
0x50dd   :  { %4472 = vrot.lane.b32.xlu0 %v4470_v53, %s7830_s23 }
0x514f   :  { %v4473_v19 = vpop.permute.xlu0 %4472 }
0x5150   :  { %v4475_v54 = vadd.f32 %v4473_v19, %v4386_v23 }
0x5152   :  { %7779 = vtanh.f32 %v4475_v54 }
0x515c   :  { %v7780_v27 = vpop.eup %7779 }
0x515d   :  { %4479 = vrot.lane.b32.xlu1 %v7780_v27, %s7831_s30 }
0x51cf   :  { %v4480_v41 = vpop.permute.xlu1 %4479 }
0x51d0   :  { %v4482_v63 = vmul.f32 %v4480_v41, %v4477_v18 }
0x51d2   :  { %v8880_v6 = vadd.f32 %v4483_v9, %v4482_v63 }
0x51d4   :  { %4486 = vrot.lane.b32.xlu0 %v8880_v6, %s7831_s30 }
0x5246   :  { %v8884_v7 = vpop.permute.xlu0 %4486 }
0x5247   :  { %7076 = vmatmul.mubr.msk.f32.vlgmr.msra.gmra.mrb[46].mxu0 %vm140_vm3, %v8884_v7  ;;  %7087 = vmatmul.mubr.msk.f32.vlgmr.msra.gmra.mrb[48].mxu1 %vm140_vm3, %v8884_v7 }
0x5248   :  { %7090 = vmatpush3.msra.mxu0 %v8893_v8  ;;  %7091 = vmatprep.mubr.msk.f32.mxu0 %vm7829_vm1, %v9192_v4 }
0x5249   :  { %7468 = vmatprep.subr.bf16.mxu0 %v9194_v52  ;;  %7106 = vmatpush3.msra.mxu1 %v8562_v42 }
0x524a   :  { %7107 = vmatprep.mubr.msk.f32.mxu1 %vm7829_vm1, %v9192_v4  ;;  %7110 = vmatprep.subr.mxu1 %v9192_v4 }
0x524b   :  { %7092 = vmatmul.mubr.msk.f32.vlgmr.msra.gmra.mrb[48].mxu0 %vm46_vm0, %v6323_v56  ;;  %7108 = vmatmul.mubr.msk.f32.vlgmr.msra.gmra.mrb[50].mxu1 %vm46_vm0, %v6323_v56 }
0x524c   :  { %7470 = vmatpush3.bf16.msra.mxu0 %v8554_v1  ;;  %7102 = vmatprep.mubr.msk.f32.mxu0 %vm7829_vm1, %v9192_v4 }
0x524d   :  { %7471 = vmatprep.subr.bf16.mxu0 %v9194_v52  ;;  %7111 = vmatpush3.msra.mxu1 %v8645_v28 }
0x524e   :  { %7112 = vmatprep.mubr.msk.f32.mxu1 %vm7829_vm1, %v9192_v4  ;;  %7480 = vmatprep.subr.bf16.mxu1 %v9194_v52 }
0x5250   :  { %7473 = vmatpush3.bf16.msra.mxu0 %v8567_v46 }
0x5251   :  { %7474 = vmatprep.subr.bf16.mxu0 %v9194_v52 }
0x531a   :  { %v4556_v42 = vpop.f32.mrb[46].mxu0  ;;  %v4630_v32 = vpop.f32.mrb[48].mxu1 }
0x531b   :  { %v4557_v26 = vadd.f32 %v8778_v13, %v4556_v42  ;;  %v7077_v23 = vpop.f32.mrb[47].mxu0  ;;  %v7088_v25 = vpop.f32.mrb[49].mxu1 }
0x531c   :  { %v9195_v23 = vmov 2   ;;  %v9196_v25 = vmov 1  }
0x531d   :  { %6322 = vst.msk [vmem:[%s9173_s9 + $0x2] sm:$0x3] %vm3725_vm9, %v4557_v26 }
0x531e   :  { %v4703_v28 = vpop.f32.mrb[48].mxu0 }
0x531f   :  { %v4704_v34 = vadd.f32 %v4703_v28, %v4630_v32  ;;  %v7093_v38 = vpop.f32.mrb[49].mxu0  ;;  %v9197_v28 = vmov 0  }
0x5321   :  { %v4707_v59 = vadd.f32 %v8926_v0, %v4704_v34  ;;  %v9198_v34 = vmov 11  }
0x5323   :  { %v4708_v48 = vsel %vm2996_vm7, %v4707_v59, -inf }
0x5324   :  { %4709 = vmax.xlane.f32.xlu1 %v4708_v48 }
0x53b1   :  { %v4710_v49 = vpop.xlane.xlu1 %4709 }
0x53b2   :  { %v4711_v53 = vsub.f32 %v4707_v59, %v4710_v49 }
0x53b4   :  { %v4712_v19 = vmul.f32 1.442695, %v4711_v53 }
0x53b6   :  { %7781 = vpow2.f32 %v4712_v19 }
0x53c0   :  { %v7782_v54 = vpop.eup %7781 }
0x53c1   :  { %v4714_v27 = vsel %vm2996_vm7, %v7782_v54, 0.0 }
0x53c2   :  { %4715 = vadd.xlane.f32.xlu0 %v4714_v27 }
0x544f   :  { %v4716_v18 = vpop.xlane.xlu0 %4715 }
0x5450   :  { %7783 = vrcp.f32 %v4716_v18 }
0x545a   :  { %v7784_v41 = vpop.eup %7783 }
0x545b   :  { %v4718_v9 = vmul.f32 %v7784_v41, %v7782_v54  ;;  %v9200_v41 = vmov 10  }
0x545d   :  { %v4719_v63 = vsel %vm3008_vm8, %v4718_v9, 0.0 }
0x545e   :  { %4720 = vadd.xlane.f32.xlu0 %v4719_v63 }
0x54eb   :  { %v4721_v56 = vpop.xlane.xlu0 %4720 }
0x54ec   :  { %v4722_v42 = vadd.f32 1e-05, %v4721_v56 }
0x54ee   :  { %7785 = vrcp.f32 %v4722_v42 }
0x54f8   :  { %v7786_v32 = vpop.eup %7785 }
0x54f9   :  { %v4724_v26 = vmul.f32 %v7786_v32, %v4718_v9 }
0x54fb   :  { %4742 = vperm.xlu0 %7577, %v4724_v26   ;;  %4732 = vperm.xlu1 %7576, %v4724_v26  }
0x54ff   :  { %7586 = vset.pattern.permute.xlu0 %v9187_v44  ;;  %7578 = vset.pattern.permute.xlu1 %v9191_v57 }
0x5500   :  { %4762 = vperm.xlu0 %7586, %v4724_v26   ;;  %4752 = vperm.xlu1 %7578, %v4724_v26  }
0x5504   :  { %7579 = vset.pattern.permute.xlu1 %v9190_v61  ;;  %7589 = vset.pattern.permute.xlu0 %v7832_v51  ;;  %v9199_v51 = vmov 3  }
0x5505   :  { %4768 = vperm.xlu1 %7579, %v4724_v26  }
0x5509   :  { %7580 = vset.pattern.permute.xlu1 %v9189_v35 }
0x550a   :  { %4778 = vperm.xlu1 %7580, %v4724_v26  }
0x550e   :  { %7581 = vset.pattern.permute.xlu1 %v9188_v2 }
0x550f   :  { %4788 = vperm.xlu1 %7581, %v4724_v26  }
0x5513   :  { %7582 = vset.pattern.permute.xlu1 %v9195_v23 }
0x5514   :  { %4804 = vperm.xlu1 %7582, %v4724_v26  }
0x5518   :  { %7583 = vset.pattern.permute.xlu1 %v9196_v25 }
0x5519   :  { %4814 = vperm.xlu1 %7583, %v4724_v26  }
0x551d   :  { %7584 = vset.pattern.permute.xlu1 %v9197_v28 }
0x551e   :  { %4824 = vperm.xlu1 %7584, %v4724_v26  }
0x5522   :  { %7585 = vset.pattern.permute.xlu1 %v9198_v34 }
0x5523   :  { %4727 = vperm.xlu1 %7585, %v4724_v26  }
0x5527   :  { %7587 = vset.pattern.permute.xlu1 %v9199_v51 }
0x557a   :  { %v4733_v38 = vpop.permute.xlu1 %4732  ;;  %v4743_v48 = vpop.permute.xlu0 %4742 }
0x557b   :  { %v4735_v59 = vmul.f32 %v4733_v38, %v8289_v10  ;;  %v4745_v49 = vmul.f32 %v4743_v48, %v8306_v36 }
0x557d   :  { %4737 = vrot.lane.b32.xlu1 %v4735_v59, %s7844_s21 }
0x557f   :  { %v4753_v53 = vpop.permute.xlu1 %4752 }
0x5580   :  { %v4755_v19 = vmul.f32 %v4753_v53, %v8323_v60 }
0x5581   :  { %4747 = vrot.lane.b32.xlu1 %v4745_v49, %s7844_s21 }
0x5582   :  { %4757 = vrot.lane.b32.xlu0 %v4755_v19, %s7844_s21 }
0x5584   :  { %v4769_v54 = vpop.permute.xlu1 %4768 }
0x5585   :  { %v4771_v27 = vmul.f32 %v4769_v54, %v8362_v47  ;;  %4798 = vperm.xlu1 %7587, %v4724_v26   ;;  %v4763_v54 = vpop.permute.xlu0 %4762 }
0x5587   :  { %4773 = vrot.lane.b32.xlu0 %v4771_v27, %s7844_s21 }
0x5589   :  { %v4779_v18 = vpop.permute.xlu1 %4778  ;;  %7588 = vset.pattern.permute.xlu1 %v9200_v41 }
0x558a   :  { %v4781_v9 = vmul.f32 %v4779_v18, %v8379_v15 }
0x558c   :  { %4783 = vrot.lane.b32.xlu1 %v4781_v9, %s7844_s21 }
0x558e   :  { %v4789_v63 = vpop.permute.xlu1 %4788 }
0x558f   :  { %v4791_v56 = vmul.f32 %v4789_v63, %v8396_v40 }
0x5591   :  { %4793 = vrot.lane.b32.xlu0 %v4791_v56, %s7844_s21  ;;  %v4765_v56 = vmul.f32 %v4763_v54, %v8343_v22  ;;  %v4974_v54 = vpop.f32.mrb[50].mxu1 }
0x5593   :  { %v4805_v42 = vpop.permute.xlu1 %4804 }
0x5594   :  { %v4807_v32 = vmul.f32 %v4805_v42, %v8435_v33 }
0x5596   :  { %4809 = vrot.lane.b32.xlu1 %v4807_v32, %s7844_s21 }
0x5598   :  { %v4815_v26 = vpop.permute.xlu1 %4814 }
0x5599   :  { %v4817_v38 = vmul.f32 %v4815_v26, %v8448_v55 }
0x559b   :  { %4819 = vrot.lane.b32.xlu0 %v4817_v38, %s7844_s21 }
0x559d   :  { %v4825_v59 = vpop.permute.xlu1 %4824 }
0x559e   :  { %v4827_v48 = vmul.f32 %v4825_v59, %v8502_v58 }
0x55a0   :  { %4829 = vrot.lane.b32.xlu1 %v4827_v48, %s7844_s21 }
0x55a2   :  { %v4728_v49 = vpop.permute.xlu1 %4727 }
0x55a3   :  { %v4730_v19 = vmul.f32 %v4728_v49, %v8255_v3 }
0x55ef   :  { %v4738_v53 = vpop.permute.xlu1 %4737 }
0x55f0   :  { %v4740_v18 = vadd.f32 %v4738_v53, %v4730_v19 }
0x55f3   :  { %v4748_v27 = vpop.permute.xlu1 %4747 }
0x55f4   :  { %v4750_v41 = vadd.f32 %v4748_v27, %v4740_v18  ;;  %v4758_v9 = vpop.permute.xlu0 %4757  ;;  %v7109_v18 = vpop.f32.mrb[51].mxu1 }
0x55f6   :  { %v4760_v63 = vadd.f32 %v4758_v9, %v4750_v41 }
0x55f8   :  { %v4766_v42 = vadd.f32 %v4765_v56, %v4760_v63 }
0x55f9   :  { %v4774_v32 = vpop.permute.xlu0 %4773 }
0x55fa   :  { %v4776_v38 = vadd.f32 %v4774_v32, %v4766_v42 }
0x5603   :  { %v4794_v2 = vpop.permute.xlu0 %4793 }
0x5604   :  { %v4799_v26 = vpop.permute.xlu1 %4798 }
0x5605   :  { %v4801_v48 = vmul.f32 %v4799_v26, %v8416_v62 }
0x5608   :  { %v4784_v44 = vpop.permute.xlu1 %4783 }
0x5609   :  { %v4786_v59 = vadd.f32 %v4784_v44, %v4776_v38  ;;  %v9201_v44 = vmov 0.0  }
0x560b   :  { %v4796_v35 = vadd.f32 %v4794_v2, %v4786_v59 }
0x560c   :  { %v4810_v49 = vpop.permute.xlu1 %4809 }
0x560d   :  { %v4802_v61 = vadd.f32 %v4801_v48, %v4796_v35  ;;  %v4820_v4 = vpop.permute.xlu0 %4819 }
0x560f   :  { %v4812_v57 = vadd.f32 %v4810_v49, %v4802_v61 }
0x5611   :  { %v4822_v53 = vadd.f32 %v4820_v4, %v4812_v57 }
0x5612   :  { %v4830_v19 = vpop.permute.xlu1 %4829 }
0x5613   :  { %v4832_v27 = vadd.f32 %v4830_v19, %v4822_v53 }
0x5615   :  { %4834 = vrot.lane.b32.xlu0 %v4832_v27, %s7831_s30 }
0x5687   :  { %v4835_v41 = vpop.permute.xlu0 %4834 }
0x5688   :  { %7103 = vmatmul.mubr.msk.f32.vlgmr.msra.gmra.mrb[50].mxu0 %vm140_vm3, %v4835_v41 }
0x5689   :  { %7476 = vmatpush3.bf16.msra.mxu0 %v8594_v12  ;;  %7123 = vmatprep.mubr.msk.f32.mxu0 %vm7829_vm1, %v9201_v44 }
0x568a   :  { %7477 = vmatprep.subr.bf16.mxu0 %v9194_v52 }
0x568d   :  { %7479 = vmatpush3.bf16.msra.mxu0 %v8604_v37 }
0x568e   :  { %7486 = vmatprep.subr.bf16.mxu0 %v9194_v52 }
0x5690   :  { %7124 = vmatmul.mubr.msk.f32.vlgmr.msra.gmra.mrb[52].mxu0 %vm140_vm3, %v8866_v21 }
0x5691   :  { %7488 = vmatpush3.bf16.msra.mxu0 %v8616_v20  ;;  %7145 = vmatprep.mubr.msk.f32.mxu0 %vm7829_vm1, %v9201_v44 }
0x5692   :  { %7489 = vmatprep.subr.bf16.mxu0 %v9194_v52 }
0x5695   :  { %7491 = vmatpush3.bf16.msra.mxu0 %v8627_v29 }
0x5696   :  { %7498 = vmatprep.subr.bf16.mxu0 %v9194_v52 }
0x5698   :  { %7146 = vmatmul.mubr.msk.f32.vlgmr.msra.gmra.mrb[54].mxu0 %vm140_vm3, %v8884_v7 }
0x5699   :  { %7500 = vmatpush3.bf16.msra.mxu0 %v8470_v14  ;;  %7167 = vmatprep.mubr.msk.f32.mxu0 %vm7829_vm1, %v9201_v44 }
0x569a   :  { %7501 = vmatprep.subr.bf16.mxu0 %v9194_v52 }
0x569d   :  { %7503 = vmatpush3.bf16.msra.mxu0 %v8488_v16 }
0x569e   :  { %7186 = vmatprep.subr.mxu0 %v9201_v44 }
0x575b   :  { %v4904_v4 = vpop.f32.mrb[50].mxu0 }
0x575c   :  { %v4975_v57 = vadd.f32 %v4974_v54, %v4904_v4  ;;  %v7104_v61 = vpop.f32.mrb[51].mxu0 }
0x575e   :  { %v4978_v35 = vadd.f32 %v8652_v31, %v4975_v57 }
0x5760   :  { %v4979_v2 = vmax.f32 %v4978_v35, 0.0 }
0x5762   :  { %7113 = vmatmul.mubr.msk.f32.vlgmr.msra.gmra.mrb[52].mxu1 %vm46_vm0, %v4979_v2 }
0x5763   :  { %v5119_v21 = vpop.f32.mrb[52].mxu0  ;;  %7482 = vmatpush3.bf16.msra.mxu1 %v8681_v45  ;;  %7134 = vmatprep.mubr.msk.f32.mxu1 %vm7829_vm1, %v9201_v44 }
0x5764   :  { %v5120_v14 = vadd.f32 %v8658_v39, %v5119_v21  ;;  %v7125_v7 = vpop.f32.mrb[53].mxu0  ;;  %7483 = vmatprep.subr.bf16.mxu1 %v9194_v52 }
0x5766   :  { %5131 = vrot.lane.b32.xlu1 %v5120_v14, %s7830_s23 }
0x5767   :  { %7485 = vmatpush3.bf16.msra.mxu1 %v8687_v17 }
0x5768   :  { %7492 = vmatprep.subr.bf16.mxu1 %v9194_v52 }
0x576b   :  { %v5290_v16 = vpop.f32.mrb[54].mxu0 }
0x576c   :  { %v7147_v31 = vpop.f32.mrb[55].mxu0 }
0x57d8   :  { %v5132_v59 = vpop.permute.xlu1 %5131 }
0x5835   :  { %v5049_v9 = vpop.f32.mrb[52].mxu1 }
0x5836   :  { %v5050_v63 = vadd.f32 %v8668_v5, %v5049_v9  ;;  %v7114_v56 = vpop.f32.mrb[53].mxu1  ;;  %v5291_v5 = vadd.f32 %v8694_v43, %v5290_v16 }
0x5838   :  { %v5123_v42 = vadd.f32 %v5120_v14, %v5050_v63 }
0x583a   :  { %v6330_v32 = vmul.f32 -1.442695, %v5123_v42 }
0x583c   :  { %7787 = vpow2.f32 %v6330_v32 }
0x5846   :  { %v7788_v26 = vpop.eup %7787 }
0x5847   :  { %v5127_v39 = vadd.f32 1.0, %v7788_v26 }
0x5849   :  { %7789 = vrcp.f32 %v5127_v39 }
0x5853   :  { %v7790_v38 = vpop.eup %7789 }
0x5854   :  { %v5134_v48 = vmul.f32 %v7790_v38, %v5132_v59  ;;  %v5141_v27 = vsub.f32 1.0, %v7790_v38  ;;  %v5147_v18 = vmul.f32 %v7790_v38, %v8862_v11  ;;  %v7819_v59 = vld [vmem:[%s9169_s7] sm:$0xff] }
0x5856   :  { %5136 = vrot.lane.b32.xlu0 %v5134_v48, %s7830_s23 }
0x58c8   :  { %v5137_v49 = vpop.permute.xlu0 %5136 }
0x58c9   :  { %v5139_v53 = vadd.f32 %v5137_v49, %v5050_v63 }
0x58cb   :  { %7791 = vtanh.f32 %v5139_v53 }
0x58d5   :  { %v7792_v19 = vpop.eup %7791 }
0x58d6   :  { %5143 = vrot.lane.b32.xlu1 %v7792_v19, %s7831_s30 }
0x58da   :  { %5302 = vrot.lane.b32.xlu1 %v5291_v5, %s7830_s23 }
0x5948   :  { %v5144_v54 = vpop.permute.xlu1 %5143 }
0x5949   :  { %v5146_v41 = vmul.f32 %v5144_v54, %v5141_v27 }
0x594b   :  { %v9005_v4 = vadd.f32 %v5147_v18, %v5146_v41 }
0x594c   :  { %v5303_v16 = vpop.permute.xlu1 %5302 }
0x594d   :  { %5150 = vrot.lane.b32.xlu0 %v9005_v4, %s7831_s30 }
0x59bf   :  { %v9009_v57 = vpop.permute.xlu0 %5150 }
0x59c0   :  { %7135 = vmatmul.mubr.msk.f32.vlgmr.msra.gmra.mrb[54].mxu1 %vm140_vm3, %v9009_v57 }
0x59c1   :  { %7494 = vmatpush3.bf16.msra.mxu1 %v8728_v30  ;;  %7156 = vmatprep.mubr.msk.f32.mxu1 %vm7829_vm1, %v9201_v44 }
0x59c2   :  { %7495 = vmatprep.subr.bf16.mxu1 %v9194_v52 }
0x59c5   :  { %7497 = vmatpush3.bf16.msra.mxu1 %v8734_v24 }
0x59c6   :  { %7170 = vmatprep.subr.mxu1 %v9201_v44 }
0x5a93   :  { %v5220_v43 = vpop.f32.mrb[54].mxu1 }
0x5a94   :  { %v5221_v11 = vadd.f32 %v8715_v50, %v5220_v43  ;;  %v7136_v61 = vpop.f32.mrb[55].mxu1 }
0x5a96   :  { %v5294_v35 = vadd.f32 %v5291_v5, %v5221_v11 }
0x5a98   :  { %v6333_v2 = vmul.f32 -1.442695, %v5294_v35 }
0x5a9a   :  { %7793 = vpow2.f32 %v6333_v2 }
0x5aa4   :  { %v7794_v21 = vpop.eup %7793 }
0x5aa5   :  { %v5298_v14 = vadd.f32 1.0, %v7794_v21 }
0x5aa7   :  { %7795 = vrcp.f32 %v5298_v14 }
0x5ab1   :  { %v7796_v7 = vpop.eup %7795 }
0x5ab2   :  { %v5305_v31 = vmul.f32 %v7796_v7, %v5303_v16  ;;  %v5312_v42 = vsub.f32 1.0, %v7796_v7  ;;  %v5318_v32 = vmul.f32 %v7796_v7, %v8880_v6  ;;  %v6336_v6 = vld [vmem:[%s9168_s1 + $0x6] sm:$0x3] }
0x5ab4   :  { %5307 = vrot.lane.b32.xlu0 %v5305_v31, %s7830_s23 }
0x5b26   :  { %v5308_v9 = vpop.permute.xlu0 %5307 }
0x5b27   :  { %v5310_v63 = vadd.f32 %v5308_v9, %v5221_v11  ;;  %v9202_v9 = vmov 8  }
0x5b29   :  { %7797 = vtanh.f32 %v5310_v63  ;;  %v9203_v63 = vmov 6  }
0x5b33   :  { %v7798_v56 = vpop.eup %7797 }
0x5b34   :  { %5314 = vrot.lane.b32.xlu1 %v7798_v56, %s7831_s30  ;;  %v9204_v56 = vmov 5  }
0x5ba6   :  { %v5315_v50 = vpop.permute.xlu1 %5314 }
0x5ba7   :  { %v5317_v26 = vmul.f32 %v5315_v50, %v5312_v42  ;;  %v9205_v42 = vmov 4  }
0x5ba9   :  { %v9023_v39 = vadd.f32 %v5318_v32, %v5317_v26 }
0x5bab   :  { %5321 = vrot.lane.b32.xlu0 %v9023_v39, %s7831_s30 }
0x5c1d   :  { %v9027_v38 = vpop.permute.xlu0 %5321 }
0x5c1e   :  { %7157 = vmatmul.mubr.msk.f32.vlgmr.msra.gmra.mrb[56].mxu1 %vm140_vm3, %v9027_v38  ;;  %7168 = vmatmul.mubr.msk.f32.vlgmr.msra.gmra.mrb[56].mxu0 %vm140_vm3, %v9027_v38 }
0x5c1f   :  { %7171 = vmatpush3.msra.mxu1 %v8893_v8  ;;  %7172 = vmatprep.mubr.msk.f32.mxu1 %vm7829_vm1, %v9201_v44  ;;  %v7820_v8 = vld [vmem:[%s9170_s4] sm:$0xff] }
0x5c20   :  { %7504 = vmatprep.subr.bf16.mxu1 %v9194_v52  ;;  %7187 = vmatpush3.msra.mxu0 %v7819_v59 }
0x5c21   :  { %7188 = vmatprep.mubr.msk.f32.mxu0 %vm7829_vm1, %v9201_v44  ;;  %7191 = vmatprep.subr.mxu0 %v9201_v44 }
0x5c22   :  { %7173 = vmatmul.mubr.msk.f32.vlgmr.msra.gmra.mrb[58].mxu1 %vm46_vm0, %v6336_v6  ;;  %7189 = vmatmul.mubr.msk.f32.vlgmr.msra.gmra.mrb[58].mxu0 %vm46_vm0, %v6336_v6 }
0x5c23   :  { %7506 = vmatpush3.bf16.msra.mxu1 %v8554_v1  ;;  %7183 = vmatprep.mubr.msk.f32.mxu1 %vm7829_vm1, %v9201_v44 }
0x5c24   :  { %7507 = vmatprep.subr.bf16.mxu1 %v9194_v52  ;;  %7192 = vmatpush3.msra.mxu0 %v7820_v8 }
0x5c25   :  { %7193 = vmatprep.mubr.msk.f32.mxu0 %vm7829_vm1, %v9201_v44  ;;  %7516 = vmatprep.subr.bf16.mxu0 %v9194_v52 }
0x5c27   :  { %7509 = vmatpush3.bf16.msra.mxu1 %v8567_v46 }
0x5c28   :  { %7510 = vmatprep.subr.bf16.mxu1 %v9194_v52 }
0x5cf1   :  { %v5391_v1 = vpop.f32.mrb[56].mxu1  ;;  %v5465_v48 = vpop.f32.mrb[56].mxu0 }
0x5cf2   :  { %v5392_v49 = vadd.f32 %v8778_v13, %v5391_v1  ;;  %v7158_v53 = vpop.f32.mrb[57].mxu1  ;;  %v7169_v19 = vpop.f32.mrb[57].mxu0 }
0x5cf4   :  { %6335 = vst.msk [vmem:[%s9173_s9 + $0x4] sm:$0x3] %vm3725_vm9, %v5392_v49 }
0x5cf5   :  { %v5538_v5 = vpop.f32.mrb[58].mxu1 }
0x5cf6   :  { %v5539_v27 = vadd.f32 %v5538_v5, %v5465_v48  ;;  %v7174_v54 = vpop.f32.mrb[59].mxu1 }
0x5cf8   :  { %v5542_v18 = vadd.f32 %v8926_v0, %v5539_v27 }
0x5cfa   :  { %v5543_v46 = vsel %vm2996_vm7, %v5542_v18, -inf }
0x5cfb   :  { %5544 = vmax.xlane.f32.xlu1 %v5543_v46 }
0x5d88   :  { %v5545_v41 = vpop.xlane.xlu1 %5544 }
0x5d89   :  { %v5546_v43 = vsub.f32 %v5542_v18, %v5545_v41 }
0x5d8b   :  { %v5547_v11 = vmul.f32 1.442695, %v5546_v43 }
0x5d8d   :  { %7799 = vpow2.f32 %v5547_v11 }
0x5d97   :  { %v7800_v13 = vpop.eup %7799 }
0x5d98   :  { %v5549_v61 = vsel %vm2996_vm7, %v7800_v13, 0.0 }
0x5d99   :  { %5550 = vadd.xlane.f32.xlu0 %v5549_v61 }
0x5e26   :  { %v5551_v35 = vpop.xlane.xlu0 %5550 }
0x5e27   :  { %7801 = vrcp.f32 %v5551_v35 }
0x5e31   :  { %v7802_v2 = vpop.eup %7801 }
0x5e32   :  { %v5553_v21 = vmul.f32 %v7802_v2, %v7800_v13 }
0x5e34   :  { %v5554_v14 = vsel %vm3008_vm8, %v5553_v21, 0.0 }
0x5e35   :  { %5555 = vadd.xlane.f32.xlu0 %v5554_v14 }
0x5ec2   :  { %v5556_v7 = vpop.xlane.xlu0 %5555 }
0x5ec3   :  { %v5557_v0 = vadd.f32 1e-05, %v5556_v7 }
0x5ec5   :  { %7803 = vrcp.f32 %v5557_v0 }
0x5ecf   :  { %v7804_v16 = vpop.eup %7803 }
0x5ed0   :  { %v5559_v31 = vmul.f32 %v7804_v16, %v5553_v21 }
0x5ed2   :  { %5577 = vperm.xlu0 %7589, %v5559_v31   ;;  %5567 = vperm.xlu1 %7588, %v5559_v31  }
0x5ed6   :  { %7597 = vset.pattern.permute.xlu0 %v9198_v34  ;;  %7590 = vset.pattern.permute.xlu1 %v9202_v9  ;;  %v9206_v34 = vmov 7  }
0x5ed7   :  { %5562 = vperm.xlu0 %7597, %v5559_v31   ;;  %5587 = vperm.xlu1 %7590, %v5559_v31  }
0x5edb   :  { %7591 = vset.pattern.permute.xlu1 %v9203_v63  ;;  %7599 = vset.pattern.permute.xlu0 %v9199_v51  ;;  %v5809_v63 = vpop.f32.mrb[58].mxu0 }
0x5edc   :  { %5603 = vperm.xlu1 %7591, %v5559_v31  }
0x5ee0   :  { %7592 = vset.pattern.permute.xlu1 %v9204_v56 }
0x5ee1   :  { %5613 = vperm.xlu1 %7592, %v5559_v31  }
0x5ee5   :  { %7593 = vset.pattern.permute.xlu1 %v9205_v42  ;;  %v7821_v42 = vld [vmem:[%s9169_s7 + $0x28] ss:$0 sm:$0xff] }
0x5ee6   :  { %5623 = vperm.xlu1 %7593, %v5559_v31  }
0x5eea   :  { %7594 = vset.pattern.permute.xlu1 %v9195_v23 }
0x5eeb   :  { %5639 = vperm.xlu1 %7594, %v5559_v31  }
0x5eef   :  { %7595 = vset.pattern.permute.xlu1 %v9196_v25 }
0x5ef0   :  { %5649 = vperm.xlu1 %7595, %v5559_v31  }
0x5ef4   :  { %7596 = vset.pattern.permute.xlu1 %v9197_v28 }
0x5ef5   :  { %5659 = vperm.xlu1 %7596, %v5559_v31  }
0x5ef9   :  { %7598 = vset.pattern.permute.xlu1 %v9206_v34 }
0x5efa   :  { %5597 = vperm.xlu1 %7598, %v5559_v31  }
0x5f51   :  { %v5578_v51 = vpop.permute.xlu0 %5577  ;;  %v5568_v50 = vpop.permute.xlu1 %5567 }
0x5f52   :  { %v5580_v32 = vmul.f32 %v5578_v51, %v8306_v36  ;;  %v5570_v26 = vmul.f32 %v5568_v50, %v8289_v10 }
0x5f54   :  { %5582 = vrot.lane.b32.xlu0 %v5580_v32, %s7844_s21  ;;  %5572 = vrot.lane.b32.xlu1 %v5570_v26, %s7844_s21  ;;  %v7823_v26 = vld [vmem:[%s9171_s5] ss:$0 sm:$0xff] }
0x5f56   :  { %v5588_v23 = vpop.permute.xlu1 %5587  ;;  %v5563_v19 = vpop.permute.xlu0 %5562 }
0x5f57   :  { %v5590_v25 = vmul.f32 %v5588_v23, %v8323_v60  ;;  %v5565_v5 = vmul.f32 %v5563_v19, %v8255_v3 }
0x5f58   :  { %5633 = vperm.xlu0 %7599, %v5559_v31  }
0x5f59   :  { %5592 = vrot.lane.b32.xlu1 %v5590_v25, %s7844_s21 }
0x5f5b   :  { %v5604_v6 = vpop.permute.xlu1 %5603 }
0x5f5c   :  { %v5606_v59 = vmul.f32 %v5604_v6, %v8362_v47  ;;  %7600 = vset.pattern.permute.xlu0 %v9197_v28 }
0x5f5e   :  { %5608 = vrot.lane.b32.xlu1 %v5606_v59, %s7844_s21 }
0x5f60   :  { %v5614_v36 = vpop.permute.xlu1 %5613 }
0x5f61   :  { %v5616_v10 = vmul.f32 %v5614_v36, %v8379_v15 }
0x5f63   :  { %5618 = vrot.lane.b32.xlu1 %v5616_v10, %s7844_s21 }
0x5f65   :  { %v5624_v8 = vpop.permute.xlu1 %5623 }
0x5f66   :  { %v5626_v1 = vmul.f32 %v5624_v8, %v8396_v40 }
0x5f68   :  { %5628 = vrot.lane.b32.xlu0 %v5626_v1, %s7844_s21 }
0x5f6a   :  { %v5640_v60 = vpop.permute.xlu1 %5639 }
0x5f6b   :  { %v5642_v48 = vmul.f32 %v5640_v60, %v8435_v33 }
0x5f6d   :  { %5644 = vrot.lane.b32.xlu1 %v5642_v48, %s7844_s21 }
0x5f6f   :  { %v5650_v47 = vpop.permute.xlu1 %5649 }
0x5f70   :  { %v5652_v28 = vmul.f32 %v5650_v47, %v8448_v55 }
0x5f72   :  { %5654 = vrot.lane.b32.xlu0 %v5652_v28, %s7844_s21  ;;  %v7824_v28 = vld [vmem:[%s9171_s5 + $0x3] ss:$0 sm:$0xff] }
0x5f74   :  { %v5660_v49 = vpop.permute.xlu1 %5659 }
0x5f75   :  { %v5662_v15 = vmul.f32 %v5660_v49, %v8502_v58 }
0x5f77   :  { %5664 = vrot.lane.b32.xlu1 %v5662_v15, %s7844_s21 }
0x5f79   :  { %v5598_v53 = vpop.permute.xlu1 %5597 }
0x5f7a   :  { %v5600_v55 = vmul.f32 %v5598_v53, %v8343_v22  ;;  %v7190_v22 = vpop.f32.mrb[59].mxu0 }
0x5fc6   :  { %v5573_v40 = vpop.permute.xlu1 %5572  ;;  %v5583_v54 = vpop.permute.xlu0 %5582 }
0x5fc7   :  { %v5575_v27 = vadd.f32 %v5573_v40, %v5565_v5 }
0x5fc9   :  { %v5585_v18 = vadd.f32 %v5583_v54, %v5575_v27 }
0x5fcb   :  { %v5593_v33 = vpop.permute.xlu1 %5592 }
0x5fcc   :  { %v5595_v46 = vadd.f32 %v5593_v33, %v5585_v18 }
0x5fce   :  { %v5601_v43 = vadd.f32 %v5600_v55, %v5595_v46 }
0x5fd0   :  { %v5609_v41 = vpop.permute.xlu1 %5608 }
0x5fd1   :  { %v5611_v61 = vadd.f32 %v5609_v41, %v5601_v43 }
0x5fd5   :  { %v5619_v13 = vpop.permute.xlu1 %5618 }
0x5fd6   :  { %v5621_v35 = vadd.f32 %v5619_v13, %v5611_v61 }
0x5fd7   :  { %v5634_v11 = vpop.permute.xlu0 %5633 }
0x5fd8   :  { %v5636_v21 = vmul.f32 %v5634_v11, %v8416_v62 }
0x5fdb   :  { %v5629_v58 = vpop.permute.xlu0 %5628 }
0x5fdc   :  { %v5631_v2 = vadd.f32 %v5629_v58, %v5621_v35 }
0x5fde   :  { %v5637_v14 = vadd.f32 %v5636_v21, %v5631_v2 }
0x5fdf   :  { %v5645_v7 = vpop.permute.xlu1 %5644 }
0x5fe0   :  { %v5647_v0 = vadd.f32 %v5645_v7, %v5637_v14 }
0x5fe4   :  { %v5655_v3 = vpop.permute.xlu0 %5654 }
0x5fe5   :  { %v5657_v16 = vadd.f32 %v5655_v3, %v5647_v0  ;;  %v7826_v3 = vld [vmem:[%s9172_s8 + $0x20] ss:$0 sm:$0xff] }
0x5fe9   :  { %v5665_v31 = vpop.permute.xlu1 %5664 }
0x5fea   :  { %v5667_v9 = vadd.f32 %v5665_v31, %v5657_v16 }
0x5fec   :  { %5669 = vrot.lane.b32.xlu0 %v5667_v9, %s7831_s30 }
0x605e   :  { %v5670_v56 = vpop.permute.xlu0 %5669 }
0x605f   :  { %7184 = vmatmul.mubr.msk.f32.vlgmr.msra.gmra.mrb[60].mxu1 %vm140_vm3, %v5670_v56 }
0x6060   :  { %7512 = vmatpush3.bf16.msra.mxu1 %v8594_v12  ;;  %7204 = vmatprep.mubr.msk.f32.mxu1 %vm7829_vm1, %v9201_v44 }
0x6061   :  { %7513 = vmatprep.subr.bf16.mxu1 %v9194_v52 }
0x6064   :  { %7515 = vmatpush3.bf16.msra.mxu1 %v8604_v37 }
0x6065   :  { %7522 = vmatprep.subr.bf16.mxu1 %v9194_v52 }
0x6067   :  { %7205 = vmatmul.mubr.msk.f32.vlgmr.msra.gmra.mrb[62].mxu1 %vm140_vm3, %v9009_v57 }
0x6068   :  { %7524 = vmatpush3.bf16.msra.mxu1 %v8616_v20  ;;  %7226 = vmatprep.mubr.msk.f32.mxu1 %vm7829_vm1, %v9201_v44 }
0x6069   :  { %7525 = vmatprep.subr.bf16.mxu1 %v9194_v52 }
0x606c   :  { %7527 = vmatpush3.bf16.msra.mxu1 %v8627_v29  ;;  %v7822_v29 = vld [vmem:[%s9171_s5 + $0x1] ss:$0 sm:$0xff] }
0x606f   :  { %7227 = vmatmul.mubr.msk.f32.vlgmr.msra.gmra.mrb[64].mxu1 %vm140_vm3, %v9027_v38 }
0x6132   :  { %v5739_v62 = vpop.f32.mrb[60].mxu1 }
0x6133   :  { %v5810_v12 = vadd.f32 %v5809_v63, %v5739_v62  ;;  %v7185_v37 = vpop.f32.mrb[61].mxu1 }
0x6135   :  { %v5813_v57 = vadd.f32 %v7821_v42, %v5810_v12 }
0x6137   :  { %v5814_v34 = vmax.f32 %v5813_v57, 0.0 }
0x6139   :  { %7194 = vmatmul.mubr.msk.f32.vlgmr.msra.gmra.mrb[60].mxu0 %vm46_vm0, %v5814_v34 }
0x613a   :  { %v5954_v20 = vpop.f32.mrb[62].mxu1  ;;  %7518 = vmatpush3.bf16.msra.mxu0 %v8681_v45  ;;  %7215 = vmatprep.mubr.msk.f32.mxu0 %vm7829_vm1, %v9201_v44 }
0x613b   :  { %v5955_v38 = vadd.f32 %v7822_v29, %v5954_v20  ;;  %v7206_v51 = vpop.f32.mrb[63].mxu1  ;;  %7519 = vmatprep.subr.bf16.mxu0 %v9194_v52 }
0x613d   :  { %5966 = vrot.lane.b32.xlu1 %v5955_v38, %s7830_s23 }
0x613e   :  { %7521 = vmatpush3.bf16.msra.mxu0 %v8687_v17 }
0x613f   :  { %7528 = vmatprep.subr.bf16.mxu0 %v9194_v52 }
0x6142   :  { %v6125_v50 = vpop.f32.mrb[64].mxu1 }
0x6143   :  { %v7228_v32 = vpop.f32.mrb[65].mxu1  ;;  %v6126_v49 = vadd.f32 %v7824_v28, %v6125_v50 }
0x61af   :  { %v5967_v1 = vpop.permute.xlu1 %5966 }
0x620c   :  { %v5884_v45 = vpop.f32.mrb[60].mxu0 }
0x620d   :  { %v5885_v23 = vadd.f32 %v7823_v26, %v5884_v45  ;;  %v7195_v25 = vpop.f32.mrb[61].mxu0 }
0x620f   :  { %v5958_v6 = vadd.f32 %v5955_v38, %v5885_v23 }
0x6211   :  { %v6343_v59 = vmul.f32 -1.442695, %v5958_v6 }
0x6213   :  { %7805 = vpow2.f32 %v6343_v59 }
0x621d   :  { %v7806_v36 = vpop.eup %7805 }
0x621e   :  { %v5962_v10 = vadd.f32 1.0, %v7806_v36 }
0x6220   :  { %7807 = vrcp.f32 %v5962_v10 }
0x622a   :  { %v7808_v8 = vpop.eup %7807 }
0x622b   :  { %v5969_v17 = vmul.f32 %v7808_v8, %v5967_v1  ;;  %v5976_v15 = vsub.f32 1.0, %v7808_v8  ;;  %v5982_v19 = vmul.f32 %v7808_v8, %v9005_v4  ;;  %v7825_v4 = vld [vmem:[%s9171_s5 + $0x2] ss:$0 sm:$0xff] }
0x622d   :  { %5971 = vrot.lane.b32.xlu0 %v5969_v17, %s7830_s23 }
0x629f   :  { %v5972_v60 = vpop.permute.xlu0 %5971 }
0x62a0   :  { %v5974_v48 = vadd.f32 %v5972_v60, %v5885_v23 }
0x62a2   :  { %7809 = vtanh.f32 %v5974_v48 }
0x62ac   :  { %v7810_v47 = vpop.eup %7809 }
0x62ad   :  { %5978 = vrot.lane.b32.xlu1 %v7810_v47, %s7831_s30 }
0x62b1   :  { %6137 = vrot.lane.b32.xlu1 %v6126_v49, %s7830_s23 }
0x631f   :  { %v5979_v53 = vpop.permute.xlu1 %5978 }
0x6320   :  { %v5981_v40 = vmul.f32 %v5979_v53, %v5976_v15 }
0x6322   :  { %v5983_v5 = vadd.f32 %v5982_v19, %v5981_v40 }
0x6323   :  { %v6138_v11 = vpop.permute.xlu1 %6137 }
0x6324   :  { %5985 = vrot.lane.b32.xlu0 %v5983_v5, %s7831_s30 }
0x6396   :  { %v5986_v27 = vpop.permute.xlu0 %5985 }
0x6397   :  { %7216 = vmatmul.mubr.msk.f32.vlgmr.msra.gmra.mrb[62].mxu0 %vm140_vm3, %v5986_v27 }
0x6398   :  { %7530 = vmatpush3.bf16.msra.mxu0 %v8728_v30  ;;  %7237 = vmatprep.mubr.msk.f32.mxu0 %vm7829_vm1, %v9201_v44 }
0x6399   :  { %7531 = vmatprep.subr.bf16.mxu0 %v9194_v52 }
0x639c   :  { %7533 = vmatpush3.bf16.msra.mxu0 %v8734_v24 }
0x646a   :  { %v6055_v54 = vpop.f32.mrb[62].mxu0 }
0x646b   :  { %v6056_v33 = vadd.f32 %v7825_v4, %v6055_v54  ;;  %v7217_v18 = vpop.f32.mrb[63].mxu0 }
0x646d   :  { %v6129_v46 = vadd.f32 %v6126_v49, %v6056_v33 }
0x646f   :  { %v6346_v41 = vmul.f32 -1.442695, %v6129_v46 }
0x6471   :  { %7811 = vpow2.f32 %v6346_v41 }
0x647b   :  { %v7812_v55 = vpop.eup %7811 }
0x647c   :  { %v6133_v43 = vadd.f32 1.0, %v7812_v55 }
0x647e   :  { %7813 = vrcp.f32 %v6133_v43 }
0x6488   :  { %v7814_v30 = vpop.eup %7813 }
0x6489   :  { %v6140_v44 = vmul.f32 %v7814_v30, %v6138_v11  ;;  %v6147_v61 = vsub.f32 1.0, %v7814_v30  ;;  %v6153_v35 = vmul.f32 %v7814_v30, %v9023_v39 }
0x648b   :  { %6142 = vrot.lane.b32.xlu0 %v6140_v44, %s7830_s23 }
0x64fd   :  { %v6143_v52 = vpop.permute.xlu0 %6142 }
0x64fe   :  { %v6145_v24 = vadd.f32 %v6143_v52, %v6056_v33 }
0x6500   :  { %7815 = vtanh.f32 %v6145_v24 }
0x650a   :  { %v7816_v13 = vpop.eup %7815 }
0x650b   :  { %6149 = vrot.lane.b32.xlu1 %v7816_v13, %s7831_s30 }
0x657d   :  { %v6150_v58 = vpop.permute.xlu1 %6149 }
0x657e   :  { %v6152_v2 = vmul.f32 %v6150_v58, %v6147_v61 }
0x6580   :  { %v6154_v21 = vadd.f32 %v6153_v35, %v6152_v2 }
0x6582   :  { %6156 = vrot.lane.b32.xlu0 %v6154_v21, %s7831_s30 }
0x65f4   :  { %v6157_v14 = vpop.permute.xlu0 %6156 }
0x65f5   :  { %7238 = vmatmul.mubr.msk.f32.vlgmr.msra.gmra.mrb[64].mxu0 %vm140_vm3, %v6157_v14 }
0x66c8   :  { %v6226_v7 = vpop.f32.mrb[64].mxu0 }
0x66c9   :  { %v6227_v0 = vadd.f32 %v7826_v3, %v6226_v7  ;;  %v7239_v16 = vpop.f32.mrb[65].mxu0 }
0x66cb   :  { %6348 = vst.msk [vmem:[%s9173_s9 + $0x6] sm:$0x3] %vm3725_vm9, %v6227_v0 }

</bundles_post_ra>
